<compile_context>
chip_gen: v6e
topology: v6e:2x2x1
jax: 0.10.0
libtpu: 0.0.40
codegen_flags: <defaults>
</compile_context>

<pallas_src>
import functools

import jax
import jax.numpy as jnp
from jax.experimental import pallas as pl
from jax.experimental.pallas import tpu as pltpu


def _double_conv_kernel(x_ref, w1_ref, w2_ref, b1_ref, b2_ref,
                        o_ref, h_ref, col1_ref, col2_ref):
    """One grid step = (batch n, output row tile t).

    x_ref:    (H+4, W+2, Cin_p)    spatially padded input image for batch n (bf16,
                                   VMEM-resident across all row tiles of this n)
    w1_ref:   (3, 3*Cin_p,  Cout_p) conv1 weights (BN1 scale folded in), [dy, dx*Cin+ci, co]
    w2_ref:   (3, 3*Cout_p, Cout_p) conv2 weights (BN2 scale folded in)
    b*_ref:   (1, Cout_p)          folded BN bias (f32)
    o_ref:    (TH, W, Cout_p)      output row tile
    h_ref:    (TH+2, W+2, Cout_p)  stage-1 activations + 1-pixel halo (bf16 scratch)
    col1_ref: ((TH+4)*W, 3*Cin_p)  stage-1 dx-only im2col slab (bf16 scratch)
    col2_ref: ((TH+2)*W, 3*Cout_p) stage-2 dx-only im2col slab (bf16 scratch)
    """
    t = pl.program_id(1)
    n_t = pl.num_programs(1)
    TH = o_ref.shape[0]
    W = o_ref.shape[1]
    Cin_p = x_ref.shape[2]
    Cout_p = o_ref.shape[2]

    # ---------------- Stage 1: conv1 (+ folded BN1 scale) + bias + ReLU ----------------
    # h image rows [t*TH - 1, t*TH + TH] (TH+2 rows: output rows + conv2 halo) come
    # from padded-x rows [t*TH, t*TH + TH + 4).
    r0 = pl.multiple_of(t * TH, TH)

    # dx-only im2col slab over the full (TH+4)-row window; taps sliced straight from
    # x_ref (no big xwin temporary kept live).
    for dx in range(3):
        patch = x_ref[pl.ds(r0, TH + 4), pl.ds(dx, W), :]        # (TH+4, W, Cin_p)
        col1_ref[:, dx * Cin_p:(dx + 1) * Cin_p] = patch.reshape((TH + 4) * W, Cin_p)

    # 3 accumulating matmuls over dy; the dy shift is a row-offset view of the slab.
    M1 = (TH + 2) * W
    acc1 = jnp.dot(col1_ref[0:M1, :], w1_ref[0],
                   preferred_element_type=jnp.float32)           # (M1, Cout_p) f32
    for dy in (1, 2):
        acc1 = acc1 + jnp.dot(col1_ref[dy * W:dy * W + M1, :], w1_ref[dy],
                              preferred_element_type=jnp.float32)

    h = jnp.maximum(acc1 + b1_ref[...], 0.0)                     # bias + ReLU (f32)
    h = h.astype(h_ref.dtype).reshape(TH + 2, W, Cout_p)

    # Zero only the two halo columns (cheap), store the interior once.
    h_ref[:, 0:1, :] = jnp.zeros((TH + 2, 1, Cout_p), h_ref.dtype)
    h_ref[:, W + 1:W + 2, :] = jnp.zeros((TH + 2, 1, Cout_p), h_ref.dtype)
    h_ref[:, 1:W + 1, :] = h

    # Rows of h corresponding to image rows -1 / H must be conv2's zero padding (not
    # the conv of zero-padded x rows) -> overwrite with zeros at the image edges.
    @pl.when(t == 0)
    def _():
        h_ref[0:1, :, :] = jnp.zeros((1, W + 2, Cout_p), h_ref.dtype)

    @pl.when(t == n_t - 1)
    def _():
        h_ref[TH + 1:TH + 2, :, :] = jnp.zeros((1, W + 2, Cout_p), h_ref.dtype)

    # ---------------- Stage 2: conv2 (+ folded BN2 scale) + bias + ReLU ----------------
    for dx in range(3):
        patch = h_ref[:, pl.ds(dx, W), :]                        # (TH+2, W, Cout_p)
        col2_ref[:, dx * Cout_p:(dx + 1) * Cout_p] = patch.reshape((TH + 2) * W, Cout_p)

    M2 = TH * W
    acc2 = jnp.dot(col2_ref[0:M2, :], w2_ref[0],
                   preferred_element_type=jnp.float32)           # (M2, Cout_p) f32
    for dy in (1, 2):
        acc2 = acc2 + jnp.dot(col2_ref[dy * W:dy * W + M2, :], w2_ref[dy],
                              preferred_element_type=jnp.float32)

    y = jnp.maximum(acc2 + b2_ref[...], 0.0)
    o_ref[...] = y.reshape(TH, W, Cout_p).astype(o_ref.dtype)


def _fold_bn(conv_bias, gamma, beta, running_mean, running_var, eps=1e-5):
    scale = gamma / jnp.sqrt(running_var + eps)
    bias = (conv_bias - running_mean) * scale + beta
    return scale, bias


def _round_up(x, m):
    return (x + m - 1) // m * m


def _estimate_vmem_bytes(H, W, Cin_p, Cout_p, TH):
    """Rough per-core VMEM estimate for a given row tile (bf16 data, f32 acc)."""
    bf = 2
    x_blk = 2 * (H + 4) * (W + 2) * Cin_p * bf           # double-buffered input image
    w = 3 * 3 * (Cin_p + Cout_p) * Cout_p * bf           # single-buffered weights
    out_blk = 2 * TH * W * Cout_p * 4                    # double-buffered f32 output tile
    h = (TH + 2) * (W + 2) * Cout_p * bf
    col1 = (TH + 4) * W * 3 * Cin_p * bf
    col2 = (TH + 2) * W * 3 * Cout_p * bf
    acc = 2 * (TH + 2) * W * Cout_p * 4                  # f32 dot-result temporaries
    return x_blk + w + out_blk + h + col1 + col2 + acc


def _pick_row_tile(N, H, W, Cin_p, Cout_p, budget_bytes=40 * 1024 * 1024):
    cands = [c for c in (64, 32, 16, 8) if c <= H and H % c == 0]
    if not cands:
        return H
    for c in cands:
        if N == 1 and H // c < 2:
            continue  # keep >= 2 grid points so both v7x TensorCores get work
        if _estimate_vmem_bytes(H, W, Cin_p, Cout_p, c) <= budget_bytes:
            return c
    return cands[-1]


@functools.partial(jax.jit, static_argnames=("compute_dtype", "row_tile", "out_dtype"))
def double_conv_forward(x_nchw, params, *, compute_dtype=jnp.bfloat16, row_tile=None,
                        out_dtype=jnp.float32):
    """Forward pass matching DoubleConv (eval-mode BN). Input/output are NCHW."""
    N, Cin, H, W = x_nchw.shape
    Cout = params["w1"].shape[0]

    LANE = 128
    Cin_p = _round_up(Cin, LANE)
    Cout_p = _round_up(Cout, LANE)

    if row_tile is None:
        row_tile = _pick_row_tile(N, H, W, Cin_p, Cout_p)
    TH = row_tile
    assert H % TH == 0, (H, TH)

    # NCHW -> NHWC, cast to bf16, pad: rows by 2 (double-conv halo), cols by 1
    # (conv1 halo; conv2's column halo lives in the VMEM h scratch), channels to 128.
    # TODO(synk): this still materializes one padded copy of x in HBM; a pad-free
    # version would DMA row windows from a pl.ANY ref and mask in-kernel.
    x = jnp.transpose(x_nchw, (0, 2, 3, 1)).astype(compute_dtype)
    x = jnp.pad(x, ((0, 0), (2, 2), (1, 1), (0, Cin_p - Cin)))

    s1, b1 = _fold_bn(params["b1"], params["gamma1"], params["beta1"],
                      params["mean1"], params["var1"])
    s2, b2 = _fold_bn(params["b2"], params["gamma2"], params["beta2"],
                      params["mean2"], params["var2"])

    def prep_w(w, scale, cin_p):
        # (Cout, Cin, 3, 3) -> (dy, dx, ci, co); fold BN scale per output channel in
        # f32 BEFORE the bf16 cast; pad channels; reshape to (3, 3*cin_p, Cout_p).
        w = jnp.transpose(w, (2, 3, 1, 0)).astype(jnp.float32) * scale[None, None, None, :]
        w = jnp.pad(w, ((0, 0), (0, 0),
                        (0, cin_p - w.shape[2]), (0, Cout_p - w.shape[3])))
        return w.reshape(3, 3 * cin_p, Cout_p).astype(compute_dtype)

    w1 = prep_w(params["w1"], s1, Cin_p)
    w2 = prep_w(params["w2"], s2, Cout_p)

    def prep_b(v):
        return jnp.pad(v, (0, Cout_p - Cout)).reshape(1, Cout_p).astype(jnp.float32)

    b1p, b2p = prep_b(b1), prep_b(b2)

    const = dict(pipeline_mode=pl.Buffered(1))   # constant-index operands: single-buffer

    out = pl.pallas_call(
        _double_conv_kernel,
        out_shape=jax.ShapeDtypeStruct((N, H, W, Cout_p), out_dtype),
        grid_spec=pltpu.PrefetchScalarGridSpec(
            num_scalar_prefetch=0,
            grid=(N, H // TH),
            in_specs=[
                # Whole padded image for batch n; block index independent of t, so it
                # is DMA'd once per n and stays VMEM-resident across row tiles.
                pl.BlockSpec((None, H + 4, W + 2, Cin_p), lambda n, t: (n, 0, 0, 0)),
                pl.BlockSpec((3, 3 * Cin_p, Cout_p), lambda n, t: (0, 0, 0), **const),
                pl.BlockSpec((3, 3 * Cout_p, Cout_p), lambda n, t: (0, 0, 0), **const),
                pl.BlockSpec((1, Cout_p), lambda n, t: (0, 0), **const),
                pl.BlockSpec((1, Cout_p), lambda n, t: (0, 0), **const),
            ],
            out_specs=pl.BlockSpec((None, TH, W, Cout_p), lambda n, t: (n, t, 0, 0)),
            scratch_shapes=[
                pltpu.VMEM((TH + 2, W + 2, Cout_p), compute_dtype),     # h (+halo)
                pltpu.VMEM(((TH + 4) * W, 3 * Cin_p), compute_dtype),   # im2col stage 1
                pltpu.VMEM(((TH + 2) * W, 3 * Cout_p), compute_dtype),  # im2col stage 2
            ],
        ),
        compiler_params=pltpu.CompilerParams(
            dimension_semantics=("parallel", "parallel"),
            vmem_limit_bytes=48 * 1024 * 1024,   # safe on v7x (64 MiB/TC) and below
        ),
    )(x, w1, w2, b1p, b2p)

    # Strip channel padding, NHWC -> NCHW.
    return jnp.transpose(out[..., :Cout], (0, 3, 1, 2))


def init_double_conv_params(key, in_channels, out_channels):
    """Deterministic synthetic parameters (PyTorch weight layout: (Cout, Cin, 3, 3))."""
    ks = jax.random.split(key, 10)
    p = {}
    p["w1"] = 0.1 * jax.random.normal(ks[0], (out_channels, in_channels, 3, 3), jnp.float32)
    p["b1"] = 0.05 * jax.random.normal(ks[1], (out_channels,), jnp.float32)
    p["gamma1"] = 1.0 + 0.1 * jax.random.normal(ks[2], (out_channels,), jnp.float32)
    p["beta1"] = 0.1 * jax.random.normal(ks[3], (out_channels,), jnp.float32)
    p["mean1"] = 0.05 * jax.random.normal(ks[4], (out_channels,), jnp.float32)
    p["var1"] = 1.0 + 0.1 * jax.random.uniform(ks[5], (out_channels,), jnp.float32)

    p["w2"] = 0.1 * jax.random.normal(ks[6], (out_channels, out_channels, 3, 3), jnp.float32)
    p["b2"] = 0.05 * jax.random.normal(ks[7], (out_channels,), jnp.float32)
    p["gamma2"] = 1.0 + 0.1 * jax.random.normal(ks[8], (out_channels,), jnp.float32)
    p["beta2"] = 0.1 * jax.random.normal(ks[9], (out_channels,), jnp.float32)
    p["mean2"] = jnp.zeros((out_channels,), jnp.float32)
    p["var2"] = jnp.ones((out_channels,), jnp.float32)
    return p


def _reference_forward(x_nchw, params, compute_dtype=jnp.float32):
    """Pure-JAX reference (lax conv). compute_dtype mirrors the kernel's matmul dtype."""
    def conv_bn_relu(x, w, cb, g, bt, m, v):
        y = jax.lax.conv_general_dilated(
            x.astype(compute_dtype), w.astype(compute_dtype),
            window_strides=(1, 1), padding=((1, 1), (1, 1)),
            dimension_numbers=("NCHW", "OIHW", "NCHW"),
            preferred_element_type=jnp.float32)
        y = y + cb[None, :, None, None]
        y = (y - m[None, :, None, None]) / jnp.sqrt(v[None, :, None, None] + 1e-5)
        y = y * g[None, :, None, None] + bt[None, :, None, None]
        return jnp.maximum(y, 0.0)

    h = conv_bn_relu(x_nchw, params["w1"], params["b1"], params["gamma1"],
                     params["beta1"], params["mean1"], params["var1"])
    return conv_bn_relu(h, params["w2"], params["b2"], params["gamma2"],
                        params["beta2"], params["mean2"], params["var2"])


if __name__ == "__main__":
    key = jax.random.PRNGKey(0)
    k_x, k_p = jax.random.split(key)

    N, Cin, Cout, H, W = 2, 4, 8, 16, 16
    x = jax.random.normal(k_x, (N, Cin, H, W), jnp.float32)
    params = init_double_conv_params(k_p, Cin, Cout)

    # row_tile=8 -> grid (2 batches x 2 row tiles): exercises the halo/boundary logic.
    out = double_conv_forward(x, params, row_tile=8)
    out = jax.block_until_ready(out)
    assert out.shape == (N, Cout, H, W), out.shape

    # Check against a reference using the same mixed precision (bf16 in, f32 acc).
    ref_mixed = _reference_forward(x, params, compute_dtype=jnp.bfloat16)
    err_mixed = float(jnp.max(jnp.abs(out - ref_mixed)))
    assert jnp.allclose(out, ref_mixed, atol=3e-2, rtol=3e-2), err_mixed

    # Loose check against the full-f32 reference (bf16 rounding is the only difference).
    ref_f32 = _reference_forward(x, params, compute_dtype=jnp.float32)
    err_f32 = float(jnp.max(jnp.abs(out - ref_f32)))
    assert jnp.allclose(out, ref_f32, atol=1.5e-1, rtol=1.5e-1), err_f32

    # Also exercise the VMEM-budget-aware default row-tile path once.
    out2 = jax.block_until_ready(double_conv_forward(x, params))
    assert jnp.allclose(out2, out, atol=1e-5, rtol=1e-5)

    print("KERNEL_OK")
</pallas_src>

<mosaic_0001>
module attributes {stable_mosaic.version = 11 : i64} {
  func.func @_double_conv_kernel(%arg0: i32, %arg1: i32, %arg2: memref<1x20x18x128xbf16, #tpu.memory_space<vmem>>, %arg3: memref<3x384x128xbf16, #tpu.memory_space<vmem>>, %arg4: memref<3x384x128xbf16, #tpu.memory_space<vmem>>, %arg5: memref<1x128xf32, #tpu.memory_space<vmem>>, %arg6: memref<1x128xf32, #tpu.memory_space<vmem>>, %arg7: memref<1x8x16x128xf32, #tpu.memory_space<vmem>>, %arg8: memref<10x18x128xbf16, #tpu.memory_space<vmem>>, %arg9: memref<192x384xbf16, #tpu.memory_space<vmem>>, %arg10: memref<160x384xbf16, #tpu.memory_space<vmem>>) attributes {dimension_semantics = [#tpu.dimension_semantics<parallel>, #tpu.dimension_semantics<parallel>], iteration_bounds = array<i64: 2, 2>, scalar_prefetch = 0 : i64, scratch_operands = 3 : i64, tpu.core_type = #tpu.core_type<tc>, window_params = [{transform_indices = @transform_0, window_bounds = array<i64: 1, 20, 18, 128>}, {pipeline_mode = #tpu.pipeline_mode<synchronous>, transform_indices = @transform_1, window_bounds = array<i64: 3, 384, 128>}, {pipeline_mode = #tpu.pipeline_mode<synchronous>, transform_indices = @transform_2, window_bounds = array<i64: 3, 384, 128>}, {pipeline_mode = #tpu.pipeline_mode<synchronous>, transform_indices = @transform_3, window_bounds = array<i64: 1, 128>}, {pipeline_mode = #tpu.pipeline_mode<synchronous>, transform_indices = @transform_4, window_bounds = array<i64: 1, 128>}, {transform_indices = @transform_5, window_bounds = array<i64: 1, 8, 16, 128>}]} {
    %c8_i32 = arith.constant 8 : i32
    %0 = arith.muli %arg1, %c8_i32 : i32
    %1 = tpu.assume_multiple %0, 8 : i32
    %c0 = arith.constant 0 : index
    %2 = arith.index_cast %1 : i32 to index
    %c0_0 = arith.constant 0 : index
    %c0_1 = arith.constant 0 : index
    %3 = vector.load %arg2[%c0, %2, %c0_0, %c0_1] : memref<1x20x18x128xbf16, #tpu.memory_space<vmem>>, vector<1x12x16x128xbf16>
    %4 = vector.shape_cast %3 : vector<1x12x16x128xbf16> to vector<12x16x128xbf16>
    %5 = vector.shape_cast %4 : vector<12x16x128xbf16> to vector<192x128xbf16>
    %c0_2 = arith.constant 0 : index
    %c0_3 = arith.constant 0 : index
    %6 = vector.load %arg9[%c0_2, %c0_3] : memref<192x384xbf16, #tpu.memory_space<vmem>>, vector<192x128xbf16>
    tpu.vector_store %arg9[%c0_2, %c0_3], %5 {strides = array<i32>} : memref<192x384xbf16, #tpu.memory_space<vmem>>, vector<192x128xbf16>,
    %c0_4 = arith.constant 0 : index
    %7 = arith.index_cast %1 : i32 to index
    %c1 = arith.constant 1 : index
    %c0_5 = arith.constant 0 : index
    %8 = vector.load %arg2[%c0_4, %7, %c1, %c0_5] : memref<1x20x18x128xbf16, #tpu.memory_space<vmem>>, vector<1x12x16x128xbf16>
    %9 = vector.shape_cast %8 : vector<1x12x16x128xbf16> to vector<12x16x128xbf16>
    %10 = vector.shape_cast %9 : vector<12x16x128xbf16> to vector<192x128xbf16>
    %c0_6 = arith.constant 0 : index
    %c128 = arith.constant 128 : index
    %11 = vector.load %arg9[%c0_6, %c128] : memref<192x384xbf16, #tpu.memory_space<vmem>>, vector<192x128xbf16>
    tpu.vector_store %arg9[%c0_6, %c128], %10 {strides = array<i32>} : memref<192x384xbf16, #tpu.memory_space<vmem>>, vector<192x128xbf16>,
    %c0_7 = arith.constant 0 : index
    %12 = arith.index_cast %1 : i32 to index
    %c2 = arith.constant 2 : index
    %c0_8 = arith.constant 0 : index
    %13 = vector.load %arg2[%c0_7, %12, %c2, %c0_8] : memref<1x20x18x128xbf16, #tpu.memory_space<vmem>>, vector<1x12x16x128xbf16>
    %14 = vector.shape_cast %13 : vector<1x12x16x128xbf16> to vector<12x16x128xbf16>
    %15 = vector.shape_cast %14 : vector<12x16x128xbf16> to vector<192x128xbf16>
    %c0_9 = arith.constant 0 : index
    %c256 = arith.constant 256 : index
    %16 = vector.load %arg9[%c0_9, %c256] : memref<192x384xbf16, #tpu.memory_space<vmem>>, vector<192x128xbf16>
    tpu.vector_store %arg9[%c0_9, %c256], %15 {strides = array<i32>} : memref<192x384xbf16, #tpu.memory_space<vmem>>, vector<192x128xbf16>,
    %c0_10 = arith.constant 0 : index
    %c0_11 = arith.constant 0 : index
    %17 = vector.load %arg9[%c0_10, %c0_11] : memref<192x384xbf16, #tpu.memory_space<vmem>>, vector<160x384xbf16>
    %c0_12 = arith.constant 0 : index
    %c0_13 = arith.constant 0 : index
    %c0_14 = arith.constant 0 : index
    %18 = vector.load %arg3[%c0_12, %c0_13, %c0_14] : memref<3x384x128xbf16, #tpu.memory_space<vmem>>, vector<1x384x128xbf16>
    %19 = vector.shape_cast %18 : vector<1x384x128xbf16> to vector<384x128xbf16>
    %cst = arith.constant dense<0.000000e+00> : vector<160x128xf32>
    %20 = tpu.matmul %17, %19, %cst {dimension_numbers = #tpu.dot_dimension_numbers<[1], [0], [0], [1], [0, 0, 1, 1], [], []>} : vector<160x384xbf16>, vector<384x128xbf16>, vector<160x128xf32> -> vector<160x128xf32>
    %c16 = arith.constant 16 : index
    %c0_15 = arith.constant 0 : index
    %21 = vector.load %arg9[%c16, %c0_15] : memref<192x384xbf16, #tpu.memory_space<vmem>>, vector<160x384xbf16>
    %c1_16 = arith.constant 1 : index
    %c0_17 = arith.constant 0 : index
    %c0_18 = arith.constant 0 : index
    %22 = vector.load %arg3[%c1_16, %c0_17, %c0_18] : memref<3x384x128xbf16, #tpu.memory_space<vmem>>, vector<1x384x128xbf16>
    %23 = vector.shape_cast %22 : vector<1x384x128xbf16> to vector<384x128xbf16>
    %cst_19 = arith.constant dense<0.000000e+00> : vector<160x128xf32>
    %24 = tpu.matmul %21, %23, %cst_19 {dimension_numbers = #tpu.dot_dimension_numbers<[1], [0], [0], [1], [0, 0, 1, 1], [], []>} : vector<160x384xbf16>, vector<384x128xbf16>, vector<160x128xf32> -> vector<160x128xf32>
    %25 = arith.addf %20, %24 : vector<160x128xf32>
    %c32 = arith.constant 32 : index
    %c0_20 = arith.constant 0 : index
    %26 = vector.load %arg9[%c32, %c0_20] : memref<192x384xbf16, #tpu.memory_space<vmem>>, vector<160x384xbf16>
    %c2_21 = arith.constant 2 : index
    %c0_22 = arith.constant 0 : index
    %c0_23 = arith.constant 0 : index
    %27 = vector.load %arg3[%c2_21, %c0_22, %c0_23] : memref<3x384x128xbf16, #tpu.memory_space<vmem>>, vector<1x384x128xbf16>
    %28 = vector.shape_cast %27 : vector<1x384x128xbf16> to vector<384x128xbf16>
    %cst_24 = arith.constant dense<0.000000e+00> : vector<160x128xf32>
    %29 = tpu.matmul %26, %28, %cst_24 {dimension_numbers = #tpu.dot_dimension_numbers<[1], [0], [0], [1], [0, 0, 1, 1], [], []>} : vector<160x384xbf16>, vector<384x128xbf16>, vector<160x128xf32> -> vector<160x128xf32>
    %30 = arith.addf %25, %29 : vector<160x128xf32>
    %c0_25 = arith.constant 0 : index
    %c0_26 = arith.constant 0 : index
    %31 = vector.load %arg5[%c0_25, %c0_26] : memref<1x128xf32, #tpu.memory_space<vmem>>, vector<1x128xf32>
    %32 = vector.broadcast %31 : vector<1x128xf32> to vector<160x128xf32>
    %33 = arith.addf %30, %32 : vector<160x128xf32>
    %cst_27 = arith.constant 0.000000e+00 : f32
    %34 = vector.broadcast %cst_27 : f32 to vector<160x128xf32>
    %35 = arith.maximumf %33, %34 : vector<160x128xf32>
    %36 = arith.truncf %35 : vector<160x128xf32> to vector<160x128xbf16>
    %37 = vector.shape_cast %36 : vector<160x128xbf16> to vector<10x16x128xbf16>
    %cst_28 = arith.constant 0.000000e+00 : bf16
    %38 = vector.broadcast %cst_28 : bf16 to vector<10x1x128xbf16>
    %c0_29 = arith.constant 0 : index
    %c0_30 = arith.constant 0 : index
    %c0_31 = arith.constant 0 : index
    %39 = vector.load %arg8[%c0_29, %c0_30, %c0_31] : memref<10x18x128xbf16, #tpu.memory_space<vmem>>, vector<10x1x128xbf16>
    tpu.vector_store %arg8[%c0_29, %c0_30, %c0_31], %38 {strides = array<i32>} : memref<10x18x128xbf16, #tpu.memory_space<vmem>>, vector<10x1x128xbf16>,
    %cst_32 = arith.constant 0.000000e+00 : bf16
    %40 = vector.broadcast %cst_32 : bf16 to vector<10x1x128xbf16>
    %c0_33 = arith.constant 0 : index
    %c17 = arith.constant 17 : index
    %c0_34 = arith.constant 0 : index
    %41 = vector.load %arg8[%c0_33, %c17, %c0_34] : memref<10x18x128xbf16, #tpu.memory_space<vmem>>, vector<10x1x128xbf16>
    tpu.vector_store %arg8[%c0_33, %c17, %c0_34], %40 {strides = array<i32>} : memref<10x18x128xbf16, #tpu.memory_space<vmem>>, vector<10x1x128xbf16>,
    %c0_35 = arith.constant 0 : index
    %c1_36 = arith.constant 1 : index
    %c0_37 = arith.constant 0 : index
    %42 = vector.load %arg8[%c0_35, %c1_36, %c0_37] : memref<10x18x128xbf16, #tpu.memory_space<vmem>>, vector<10x16x128xbf16>
    tpu.vector_store %arg8[%c0_35, %c1_36, %c0_37], %37 {strides = array<i32>} : memref<10x18x128xbf16, #tpu.memory_space<vmem>>, vector<10x16x128xbf16>,
    %c0_i32 = arith.constant 0 : i32
    %43 = arith.cmpi eq, %arg1, %c0_i32 : i32
    %44 = arith.extui %43 : i1 to i32
    %c0_i32_38 = arith.constant 0 : i32
    %45 = arith.cmpi ne, %44, %c0_i32_38 : i32
    scf.if %45 {
      %cst_80 = arith.constant 0.000000e+00 : bf16
      %81 = vector.broadcast %cst_80 : bf16 to vector<1x18x128xbf16>
      %c0_81 = arith.constant 0 : index
      %c0_82 = arith.constant 0 : index
      %c0_83 = arith.constant 0 : index
      %82 = vector.load %arg8[%c0_81, %c0_82, %c0_83] : memref<10x18x128xbf16, #tpu.memory_space<vmem>>, vector<1x18x128xbf16>
      tpu.vector_store %arg8[%c0_81, %c0_82, %c0_83], %81 {strides = array<i32>} : memref<10x18x128xbf16, #tpu.memory_space<vmem>>, vector<1x18x128xbf16>,
    } else {
    }
    %c1_i32 = arith.constant 1 : i32
    %46 = arith.cmpi eq, %arg1, %c1_i32 : i32
    %47 = arith.extui %46 : i1 to i32
    %c0_i32_39 = arith.constant 0 : i32
    %48 = arith.cmpi ne, %47, %c0_i32_39 : i32
    scf.if %48 {
      %cst_80 = arith.constant 0.000000e+00 : bf16
      %81 = vector.broadcast %cst_80 : bf16 to vector<1x18x128xbf16>
      %c9 = arith.constant 9 : index
      %c0_81 = arith.constant 0 : index
      %c0_82 = arith.constant 0 : index
      %82 = vector.load %arg8[%c9, %c0_81, %c0_82] : memref<10x18x128xbf16, #tpu.memory_space<vmem>>, vector<1x18x128xbf16>
      tpu.vector_store %arg8[%c9, %c0_81, %c0_82], %81 {strides = array<i32>} : memref<10x18x128xbf16, #tpu.memory_space<vmem>>, vector<1x18x128xbf16>,
    } else {
    }
    %c0_40 = arith.constant 0 : index
    %c0_41 = arith.constant 0 : index
    %c0_42 = arith.constant 0 : index
    %49 = vector.load %arg8[%c0_40, %c0_41, %c0_42] : memref<10x18x128xbf16, #tpu.memory_space<vmem>>, vector<10x16x128xbf16>
    %50 = vector.shape_cast %49 : vector<10x16x128xbf16> to vector<160x128xbf16>
    %c0_43 = arith.constant 0 : index
    %c0_44 = arith.constant 0 : index
    %51 = vector.load %arg10[%c0_43, %c0_44] : memref<160x384xbf16, #tpu.memory_space<vmem>>, vector<160x128xbf16>
    tpu.vector_store %arg10[%c0_43, %c0_44], %50 {strides = array<i32>} : memref<160x384xbf16, #tpu.memory_space<vmem>>, vector<160x128xbf16>,
    %c0_45 = arith.constant 0 : index
    %c1_46 = arith.constant 1 : index
    %c0_47 = arith.constant 0 : index
    %52 = vector.load %arg8[%c0_45, %c1_46, %c0_47] : memref<10x18x128xbf16, #tpu.memory_space<vmem>>, vector<10x16x128xbf16>
    %53 = vector.shape_cast %52 : vector<10x16x128xbf16> to vector<160x128xbf16>
    %c0_48 = arith.constant 0 : index
    %c128_49 = arith.constant 128 : index
    %54 = vector.load %arg10[%c0_48, %c128_49] : memref<160x384xbf16, #tpu.memory_space<vmem>>, vector<160x128xbf16>
    tpu.vector_store %arg10[%c0_48, %c128_49], %53 {strides = array<i32>} : memref<160x384xbf16, #tpu.memory_space<vmem>>, vector<160x128xbf16>,
    %c0_50 = arith.constant 0 : index
    %c2_51 = arith.constant 2 : index
    %c0_52 = arith.constant 0 : index
    %55 = vector.load %arg8[%c0_50, %c2_51, %c0_52] : memref<10x18x128xbf16, #tpu.memory_space<vmem>>, vector<10x16x128xbf16>
    %56 = vector.shape_cast %55 : vector<10x16x128xbf16> to vector<160x128xbf16>
    %c0_53 = arith.constant 0 : index
    %c256_54 = arith.constant 256 : index
    %57 = vector.load %arg10[%c0_53, %c256_54] : memref<160x384xbf16, #tpu.memory_space<vmem>>, vector<160x128xbf16>
    tpu.vector_store %arg10[%c0_53, %c256_54], %56 {strides = array<i32>} : memref<160x384xbf16, #tpu.memory_space<vmem>>, vector<160x128xbf16>,
    %c0_55 = arith.constant 0 : index
    %c0_56 = arith.constant 0 : index
    %58 = vector.load %arg10[%c0_55, %c0_56] : memref<160x384xbf16, #tpu.memory_space<vmem>>, vector<128x384xbf16>
    %c0_57 = arith.constant 0 : index
    %c0_58 = arith.constant 0 : index
    %c0_59 = arith.constant 0 : index
    %59 = vector.load %arg4[%c0_57, %c0_58, %c0_59] : memref<3x384x128xbf16, #tpu.memory_space<vmem>>, vector<1x384x128xbf16>
    %60 = vector.shape_cast %59 : vector<1x384x128xbf16> to vector<384x128xbf16>
    %cst_60 = arith.constant dense<0.000000e+00> : vector<128x128xf32>
    %61 = tpu.matmul %58, %60, %cst_60 {dimension_numbers = #tpu.dot_dimension_numbers<[1], [0], [0], [1], [0, 0, 1, 1], [], []>} : vector<128x384xbf16>, vector<384x128xbf16>, vector<128x128xf32> -> vector<128x128xf32>
    %c16_61 = arith.constant 16 : index
    %c0_62 = arith.constant 0 : index
    %62 = vector.load %arg10[%c16_61, %c0_62] : memref<160x384xbf16, #tpu.memory_space<vmem>>, vector<128x384xbf16>
    %c1_63 = arith.constant 1 : index
    %c0_64 = arith.constant 0 : index
    %c0_65 = arith.constant 0 : index
    %63 = vector.load %arg4[%c1_63, %c0_64, %c0_65] : memref<3x384x128xbf16, #tpu.memory_space<vmem>>, vector<1x384x128xbf16>
    %64 = vector.shape_cast %63 : vector<1x384x128xbf16> to vector<384x128xbf16>
    %cst_66 = arith.constant dense<0.000000e+00> : vector<128x128xf32>
    %65 = tpu.matmul %62, %64, %cst_66 {dimension_numbers = #tpu.dot_dimension_numbers<[1], [0], [0], [1], [0, 0, 1, 1], [], []>} : vector<128x384xbf16>, vector<384x128xbf16>, vector<128x128xf32> -> vector<128x128xf32>
    %66 = arith.addf %61, %65 : vector<128x128xf32>
    %c32_67 = arith.constant 32 : index
    %c0_68 = arith.constant 0 : index
    %67 = vector.load %arg10[%c32_67, %c0_68] : memref<160x384xbf16, #tpu.memory_space<vmem>>, vector<128x384xbf16>
    %c2_69 = arith.constant 2 : index
    %c0_70 = arith.constant 0 : index
    %c0_71 = arith.constant 0 : index
    %68 = vector.load %arg4[%c2_69, %c0_70, %c0_71] : memref<3x384x128xbf16, #tpu.memory_space<vmem>>, vector<1x384x128xbf16>
    %69 = vector.shape_cast %68 : vector<1x384x128xbf16> to vector<384x128xbf16>
    %cst_72 = arith.constant dense<0.000000e+00> : vector<128x128xf32>
    %70 = tpu.matmul %67, %69, %cst_72 {dimension_numbers = #tpu.dot_dimension_numbers<[1], [0], [0], [1], [0, 0, 1, 1], [], []>} : vector<128x384xbf16>, vector<384x128xbf16>, vector<128x128xf32> -> vector<128x128xf32>
    %71 = arith.addf %66, %70 : vector<128x128xf32>
    %c0_73 = arith.constant 0 : index
    %c0_74 = arith.constant 0 : index
    %72 = vector.load %arg6[%c0_73, %c0_74] : memref<1x128xf32, #tpu.memory_space<vmem>>, vector<1x128xf32>
    %73 = vector.broadcast %72 : vector<1x128xf32> to vector<128x128xf32>
    %74 = arith.addf %71, %73 : vector<128x128xf32>
    %cst_75 = arith.constant 0.000000e+00 : f32
    %75 = vector.broadcast %cst_75 : f32 to vector<128x128xf32>
    %76 = arith.maximumf %74, %75 : vector<128x128xf32>
    %77 = vector.shape_cast %76 : vector<128x128xf32> to vector<8x16x128xf32>
    %c0_76 = arith.constant 0 : index
    %c0_77 = arith.constant 0 : index
    %c0_78 = arith.constant 0 : index
    %c0_79 = arith.constant 0 : index
    %78 = vector.load %arg7[%c0_76, %c0_77, %c0_78, %c0_79] : memref<1x8x16x128xf32, #tpu.memory_space<vmem>>, vector<1x8x16x128xf32>
    %79 = vector.shape_cast %78 : vector<1x8x16x128xf32> to vector<8x16x128xf32>
    %80 = vector.shape_cast %77 : vector<8x16x128xf32> to vector<1x8x16x128xf32>
    tpu.vector_store %arg7[%c0_76, %c0_77, %c0_78, %c0_79], %80 {strides = array<i32>} : memref<1x8x16x128xf32, #tpu.memory_space<vmem>>, vector<1x8x16x128xf32>,
    return
  }
  func.func @transform_0(%arg0: i32, %arg1: i32) -> (i32, i32, i32, i32) {
    %c0_i32 = arith.constant 0 : i32
    %c0_i32_0 = arith.constant 0 : i32
    %c0_i32_1 = arith.constant 0 : i32
    %c0_i32_2 = arith.constant 0 : i32
    return %arg0, %c0_i32, %c0_i32_0, %c0_i32_1 : i32, i32, i32, i32
  }
  func.func @transform_1(%arg0: i32, %arg1: i32) -> (i32, i32, i32) {
    %c0_i32 = arith.constant 0 : i32
    %c0_i32_0 = arith.constant 0 : i32
    %c0_i32_1 = arith.constant 0 : i32
    %c0_i32_2 = arith.constant 0 : i32
    return %c0_i32, %c0_i32_0, %c0_i32_1 : i32, i32, i32
  }
  func.func @transform_2(%arg0: i32, %arg1: i32) -> (i32, i32, i32) {
    %c0_i32 = arith.constant 0 : i32
    %c0_i32_0 = arith.constant 0 : i32
    %c0_i32_1 = arith.constant 0 : i32
    %c0_i32_2 = arith.constant 0 : i32
    return %c0_i32, %c0_i32_0, %c0_i32_1 : i32, i32, i32
  }
  func.func @transform_3(%arg0: i32, %arg1: i32) -> (i32, i32) {
    %c0_i32 = arith.constant 0 : i32
    %c0_i32_0 = arith.constant 0 : i32
    %c0_i32_1 = arith.constant 0 : i32
    return %c0_i32, %c0_i32_0 : i32, i32
  }
  func.func @transform_4(%arg0: i32, %arg1: i32) -> (i32, i32) {
    %c0_i32 = arith.constant 0 : i32
    %c0_i32_0 = arith.constant 0 : i32
    %c0_i32_1 = arith.constant 0 : i32
    return %c0_i32, %c0_i32_0 : i32, i32
  }
  func.func @transform_5(%arg0: i32, %arg1: i32) -> (i32, i32, i32, i32) {
    %c0_i32 = arith.constant 0 : i32
    %c0_i32_0 = arith.constant 0 : i32
    %c0_i32_1 = arith.constant 0 : i32
    return %arg0, %arg1, %c0_i32, %c0_i32_0 : i32, i32, i32, i32
  }
}

</mosaic_0001>

<bundles_post_ra>
// kernel: double_conv_forward.1
= control target key start
LH: loop header
LB: loop body
LE: loop exit
PB: predicated region body
PF: predicated region fallthrough
CT: control target
= control target key end

     0   :  { %s6862_s18 = smov 0   ;;  %s6864_s19 = smov 0   ;;  %s8394_s0 = inlined_call_operand.vmem [shape: bf16[2,20,18,128], index: 0, kind: input, shape index: {}]   ;;  %s8395_s1 = inlined_call_operand.vmem [shape: bf16[3,384,128], index: 1, kind: input, shape index: {}]   ;;  %s8396_s2 = inlined_call_operand.vmem [shape: bf16[3,384,128], index: 2, kind: input, shape index: {}]   ;;  %s8397_s3 = inlined_call_operand.vmem [shape: f32[1,128], index: 3, kind: input, shape index: {}]   ;;  %s8398_s4 = inlined_call_operand.vmem [shape: f32[1,128], index: 4, kind: input, shape index: {}]   ;;  %s8399_s5 = inlined_call_operand.vmem [shape: f32[2,16,16,128], index: 5, kind: output, shape index: {}]  }
   0x1   :  { %s6866_s20 = smov 0   ;;  %s6868_s21 = smov 0  }
   0x2   :  { %s6870_s22 = smov 0  }
   0x3 LB: > { %s24_s23 = sadd.s32 1, %s6820_s20  ;;  %s27_s24 = sadd.s32 1, %s6824_s21  ;;  %s6828_s22 = sphi %s6870_s22, %s15_s22   ;;  %s6824_s21 = sphi %s6868_s21, %s8415_s21   ;;  %s6820_s20 = sphi %s6866_s20, %s8414_s20   ;;  %s6816_s19 = sphi %s6864_s19, %s8413_s19   ;;  %s6812_s18 = sphi %s6862_s18, %s8412_s18  }
   0x4   : > { %p25_p0 = scmp.ge.s32.totalorder %s24_s23, 2  ;;  %p5229_p1 = scmp.ge.s32.totalorder %s6828_s22, 1 }
   0x5   : > { %p201_p2 = scmp.lt.s32.totalorder %s6828_s22, 5 }
   0x6   : > { %s8417_s23 = smov (%p25_p0, %s24_s23), 0  ;;  %s8419_s24 = smov (!%p25_p0, %s27_s24), %s6824_s21 }
   0x7   : > { %p202_p3 = pnand %p5229_p1, %p201_p2  ;;  %p29_p4 = scmp.ge.s32.totalorder %s8419_s24, 2 }
   0x8   : > { %p234_p5 = scmp.lt.s32.totalorder (!%p202_p3), %s6816_s19, 1  ;;  %s5231_s29 = sshll.u32 (!%p202_p3), %s6812_s18, 3 }
   0x9   : > { %s8421_s24 = smov (%p29_p4, %s8419_s24), 0  ;;  %205 = sbr.rel (%p202_p3) target bundleno = 888 (0x378), region = 40 }
   0xa   : > { %p242_p6 = scmp.lt.s32.totalorder (!%p202_p3), %s5231_s29, 15  ;;  %s5736_s8 = smul.u32 (!%p202_p3), 96, %s6812_s18 }
   0xb   : > { %p5502_p7 = scmp.ne.s32.totalorder (!%p202_p3), %s6812_s18, 0 }
   0xe   : > { %v6526_v0 = vld [vmem:[%s8395_s1 + $0x138] sm:$0xff]   ;;  %v6529_v3 = vld [vmem:[%s8395_s1 + $0x130] sm:$0xff]   ;;  %s8423_s19 = smov (!%p234_p5, %s6816_s19), 1  ;;  %s8425_s29 = smov (!%p242_p6, %s5231_s29), 15  ;;  %v6532_v6 = vld [vmem:[%s8395_s1 + $0x128] sm:$0xff]   ;;  %vm750_vm0 = vcmask 1042432  }
   0xf   : > { %v6527_v1 = vld [vmem:[%s8395_s1 + $0x178] sm:$0xff]   ;;  %5757 = vmatprep.subr.bf16.mxu0 %v6526_v0  ;;  %v6530_v4 = vld [vmem:[%s8395_s1 + $0x170] sm:$0xff]   ;;  %s5233_s15 = sshll.u32 %s8423_s19, 5  ;;  %v6533_v7 = vld [vmem:[%s8395_s1 + $0x168] sm:$0xff]   ;;  %s5232_s25 = sshll.u32 %s8425_s29, 1  ;;  %vm751_vm1 = vcmask 1046532  }
  0x10   : > { %v6528_v2 = vld [vmem:[%s8395_s1 + $0xf8] sm:$0xff]   ;;  %6279 = vmatprep.subr.bf16.mxu1 %v6527_v1  ;;  %v6531_v5 = vld [vmem:[%s8395_s1 + $0xf0] sm:$0xff]   ;;  %v6534_v8 = vld [vmem:[%s8395_s1 + $0xe8] sm:$0xff]   ;;  %s246_s28 = sadd.s32 %s5233_s15, %s5232_s25  ;;  %s6483_s25 = smul.u32 240, %s8423_s19  ;;  %vm339_vm2 = vsmask.f32 3328 }
  0x11   : > { %5758 = vmatpush3.bf16.msra.mxu0 %v6528_v2  ;;  %6280 = vmatpush3.bf16.msra.mxu1 %v6527_v1  ;;  %v6535_v9 = vld [vmem:[%s8395_s1 + $0x120] sm:$0xff]   ;;  %s5234_s7 = sshll.u32 %s246_s28, 3  ;;  %v6538_v12 = vld [vmem:[%s8395_s1 + $0x118] sm:$0xff]   ;;  %v6541_v15 = vld [vmem:[%s8395_s1 + $0x110] sm:$0xff]   ;;  %vm340_vm3 = vsmask.f32 7440 }
  0x12   : > { %5759 = vmatprep.subr.bf16.mxu0 %v6529_v3  ;;  %6281 = vmatprep.subr.bf16.mxu1 %v6530_v4  ;;  %v6536_v10 = vld [vmem:[%s8395_s1 + $0x160] sm:$0xff]   ;;  %s6934_s11 = scalar_lea.vmem %s8399_s5, %s5234_s7  ;;  %v6539_v13 = vld [vmem:[%s8395_s1 + $0x158] sm:$0xff]   ;;  %v6542_v16 = vld [vmem:[%s8395_s1 + $0x150] sm:$0xff]   ;;  %s238_s19 = scalar_lea.vmem %s8394_s0, %s6483_s25  ;;  %vm2638_vm6 = vcmask 1040384   ;;  %vm2639_vm7 = vsmask.f32 256 }
  0x13   : > { %v6537_v11 = vld [vmem:[%s8395_s1 + $0xe0] sm:$0xff]   ;;  %v6540_v14 = vld [vmem:[%s8395_s1 + $0xd8] sm:$0xff]   ;;  %v6543_v17 = vld [vmem:[%s8395_s1 + $0xd0] sm:$0xff]   ;;  %s6968_s17 = scalar_lea.vmem %s238_s19, %s5736_s8  ;;  %vm2671_vm9 = vsmask.f32 7938  ;;  %vm2955_vm11 = vcmask 1043456  }
  0x14   : > { %v6544_v18 = vld [vmem:[%s8395_s1 + $0x108] sm:$0xff]   ;;  %v6547_v21 = vld [vmem:[%s8395_s1 + $0x100] sm:$0xff]   ;;  %v258_v24 = vld [vmem:[%s6968_s17 + $0x10] sm:$0xf]  ;;  %vm2753_vm13 = vsmask.f32 4368 }
  0x15   : > { %5760 = vmatpush3.bf16.msra.mxu0 %v6531_v5  ;;  %6282 = vmatpush3.bf16.msra.mxu1 %v6530_v4  ;;  %v6545_v19 = vld [vmem:[%s8395_s1 + $0x148] sm:$0xff]   ;;  %v6548_v22 = vld [vmem:[%s8395_s1 + $0x140] sm:$0xff]   ;;  %282 = vst [vmem:[#allocation3 + $0x24] sm:$0xf] %v258_v24  ;;  %v307_v26 = vld [vmem:[%s6968_s17 + $0x10] sm:$0xf] }
  0x16   : > { %5761 = vmatprep.subr.bf16.mxu0 %v6532_v6  ;;  %6283 = vmatprep.subr.bf16.mxu1 %v6533_v7  ;;  %v6546_v20 = vld [vmem:[%s8395_s1 + $0xc8] sm:$0xff]   ;;  %v308_v27 = vld [vmem:[%s6968_s17 + $0x14] sm:$0x1]  ;;  %v6549_v28 = vld [vmem:[%s8395_s1 + $0xc0] sm:$0xff]   ;;  %v376_v31 = vshll.u32 %v307_v26, 16  ;;  %v380_v32 = vshrl.u32 %v307_v26, 16 }
  0x17   : > { %v257_v23 = vld [vmem:[%s6968_s17 + $0xc] sm:$0xf]  ;;  %v386_v33 = vshll.u32 %v308_v27, 16  ;;  %v682_v35 = vld [vmem:[%s6968_s17 + $0x10] sm:$0xf]  ;;  %v6992_v36 = vld [vmem:[%s8395_s1 + $0xb8] sm:$0xff]  }
  0x18   : > { %v306_v25 = vld [vmem:[%s6968_s17 + $0xc] sm:$0xf]  ;;  %281 = vst [vmem:[#allocation3 + $0x18] sm:$0xf] %v257_v23  ;;  %v378_v39 = vrot.slane %v376_v31, 5  ;;  %vm6997_vm4 = vmor %vm750_vm0, %vm751_vm1  ;;  %v382_v43 = vrot.slane %v380_v32, 4 }
  0x19   : > { %5762 = vmatpush3.bf16.msra.mxu0 %v6534_v8  ;;  %6284 = vmatpush3.bf16.msra.mxu1 %v6533_v7  ;;  %v367_v29 = vshrl.u32 %v306_v25, 16  ;;  %v370_v30 = vshll.u32 %v306_v25, 16  ;;  %v681_v34 = vld [vmem:[%s6968_s17 + $0xc] sm:$0xe]  ;;  %v683_v40 = vld [vmem:[%s6968_s17 + $0x14] sm:$0x1]  ;;  %vm7009_vm5 = vmor %vm339_vm2, %vm340_vm3 }
  0x1a   : > { %5763 = vmatprep.subr.bf16.mxu0 %v6535_v9  ;;  %6285 = vmatprep.subr.bf16.mxu1 %v6536_v10  ;;  %v5239_v42 = vrot.slane %v681_v34, 9  ;;  %v388_v44 = vrot.slane %v386_v33, 5  ;;  %v762_v45 = vrot.slane %v682_v35, 5  ;;  %v765_v46 = vrot.slane %v683_v40, 5  ;;  %v684_v47 = vld [vmem:[%s6968_s17 + $0x18] sm:$0xe]  ;;  %vm7453_vm8 = vmand %vm2638_vm6, %vm2639_vm7 }
  0x1b   : > { %v369_v37 = vrot.slane %v367_v29, 4  ;;  %v372_v38 = vrot.slane %v370_v30, 5  ;;  %v685_v49 = vld [vmem:[%s6968_s17 + $0x1c] sm:$0xf]  ;;  %v686_v50 = vld [vmem:[%s6968_s17 + $0x20] sm:$0x1]  ;;  %v383_v54 = vor.u32 %v382_v43, %v378_v39  ;;  %vm7462_vm10 = vmand %vm2638_vm6, %vm2671_vm9 }
  0x1c   : > { %v5240_v51 = vrot.slane %v684_v47, 9  ;;  %v6561_v52 = vld [vmem:[%s8395_s1 + $0x78] sm:$0xff]   ;;  %v763_v55 = vsel %vm6997_vm4, %v5239_v42, %v762_v45  ;;  %v764_v56 = vrot.slane %v762_v45, 4  ;;  %v769_v57 = vrot.slane %v685_v49, 5  ;;  %v311_v5 = vld [vmem:[%s6968_s17 + $0x20] sm:$0x1]  ;;  %vm7657_vm12 = vmand %vm2955_vm11, %vm2671_vm9 }
  0x1d   : > { %5764 = vmatpush3.bf16.msra.mxu0 %v6537_v11  ;;  %6286 = vmatpush3.bf16.msra.mxu1 %v6536_v10  ;;  %v373_v48 = vor.u32 %v372_v38, %v369_v37  ;;  %863 = vst [vmem:[#allocation3 + $0x20] sm:$0xf] %v763_v55  ;;  %v772_v59 = vrot.slane %v686_v50, 5  ;;  %v259_v60 = vld [vmem:[%s6968_s17 + $0x18] sm:$0xf]  ;;  %v384_v62 = vrot.slane %v383_v54, 4  ;;  %vm7669_vm14 = vmor %vm2639_vm7, %vm2753_vm13 }
  0x1e   : > { %5765 = vmatprep.subr.bf16.mxu0 %v6538_v12  ;;  %6287 = vmatprep.subr.bf16.mxu1 %v6539_v13  ;;  %v260_v61 = vld [vmem:[%s6968_s17 + $0x1c] sm:$0xf]  ;;  %v766_v63 = vsel %vm6997_vm4, %v764_v56, %v765_v46  ;;  %v770_v0 = vsel %vm6997_vm4, %v5240_v51, %v769_v57  ;;  %v771_v1 = vrot.slane %v769_v57, 4  ;;  %283 = vst [vmem:[#allocation3 + $0x30] sm:$0xf] %v259_v60  ;;  %v410_v12 = vshll.u32 %v311_v5, 16 }
  0x1f   : > { %v374_v58 = vrot.slane %v373_v48, 4  ;;  %284 = vst [vmem:[#allocation3 + $0x3c] sm:$0xf] %v260_v61  ;;  %v309_v2 = vld [vmem:[%s6968_s17 + $0x18] sm:$0xf]  ;;  %v389_v9 = vsel %vm7009_vm5, %v384_v62, %v388_v44  ;;  %v6563_v44 = vld [vmem:[%s8395_s1 + $0xb0] sm:$0xff]  }
  0x20   : > { %v310_v3 = vld [vmem:[%s6968_s17 + $0x1c] sm:$0xf]  ;;  %864 = vst [vmem:[#allocation3 + $0x2c] sm:$0xf] %v766_v63  ;;  %865 = vst [vmem:[#allocation3 + $0x38] sm:$0xf] %v770_v0  ;;  %v773_v10 = vsel %vm6997_vm4, %v771_v1, %v772_v59 }
  0x21   : > { %5766 = vmatpush3.bf16.msra.mxu0 %v6540_v14  ;;  %6288 = vmatpush3.bf16.msra.mxu1 %v6539_v13  ;;  %v379_v4 = vsel %vm7009_vm5, %v374_v58, %v378_v39  ;;  %v391_v6 = vshrl.u32 %v309_v2, 16  ;;  %v394_v7 = vshll.u32 %v309_v2, 16  ;;  %v400_v8 = vshll.u32 %v310_v3, 16  ;;  %v687_v13 = vld [vmem:[%s6968_s17 + $0x24] sm:$0xe]  ;;  %v6562_v39 = vld [vmem:[%s8395_s1 + $0x38] sm:$0xff]  }
  0x22   : > { %5767 = vmatprep.subr.bf16.mxu0 %v6541_v15  ;;  %6289 = vmatprep.subr.bf16.mxu1 %v6542_v16  ;;  %656 = vst [vmem:[#allocation3 + $0x1c] sm:$0xf] %v379_v4  ;;  %v404_v11 = vshrl.u32 %v310_v3, 16  ;;  %v688_v14 = vld [vmem:[%s6968_s17 + $0x28] sm:$0xf]  ;;  %v412_v25 = vrot.slane %v410_v12, 5 }
  0x23   : > { %657 = vst [vmem:[#allocation3 + $0x28] sm:$0xf] %v389_v9  ;;  %866 = vst [vmem:[#allocation3 + $0x44] sm:$0xf] %v773_v10  ;;  %v393_v15 = vrot.slane %v391_v6, 4  ;;  %v6564_v45 = vld [vmem:[%s8395_s1 + $0x70] sm:$0xff]  }
  0x24   : > { %v690_v23 = vld [vmem:[%s6968_s17 + $0x30] sm:$0xe]  ;;  %v691_v26 = vld [vmem:[%s6968_s17 + $0x34] sm:$0xf]  ;;  %v692_v27 = vld [vmem:[%s6968_s17 + $0x38] sm:$0x1] }
  0x25   : > { %5768 = vmatpush3.bf16.msra.mxu0 %v6543_v17  ;;  %6290 = vmatpush3.bf16.msra.mxu1 %v6542_v16  ;;  %v396_v16 = vrot.slane %v394_v7, 5  ;;  %v402_v17 = vrot.slane %v400_v8, 5  ;;  %v783_v32 = vrot.slane %v691_v26, 5  ;;  %v786_v34 = vrot.slane %v692_v27, 5  ;;  %v7054_v46 = vld [vmem:[#allocation3 + $0x18] ss:$12 sps:$4 sm:$0xff]  }
  0x26   : > { %5769 = vmatprep.subr.bf16.mxu0 %v6544_v18  ;;  %6291 = vmatprep.subr.bf16.mxu1 %v6545_v19  ;;  %v689_v18 = vld [vmem:[%s6968_s17 + $0x2c] sm:$0x1]  ;;  %v6565_v51 = vld [vmem:[%s8395_s1 + $0x30] sm:$0xff]   ;;  %v262_v54 = vld [vmem:[%s6968_s17 + $0x28] sm:$0xf] }
  0x27   : > { %v397_v24 = vor.u32 %v396_v16, %v393_v15  ;;  %v6553_v35 = vld [vmem:[#allocation3 + $0x20] ss:$12 sps:$4 sm:$0xff]   ;;  %v785_v43 = vrot.slane %v783_v32, 4  ;;  %286 = vst [vmem:[#allocation3 + $0x54] sm:$0xf] %v262_v54  ;;  %v6572_v2 = vld [vmem:[%s8395_s1 + $0x28] sm:$0xff]  }
  0x28   : > { %6295 = vmatprep.mubr.bf16.mxu1 %v6553_v35  ;;  %v312_v55 = vld [vmem:[%s6968_s17 + $0x24] sm:$0xf]  ;;  %v313_v56 = vld [vmem:[%s6968_s17 + $0x28] sm:$0xf]  ;;  %v314_v57 = vld [vmem:[%s6968_s17 + $0x2c] sm:$0x1] }
  0x29   : > { %5770 = vmatpush3.bf16.msra.mxu0 %v6546_v20  ;;  %6292 = vmatpush3.bf16.msra.mxu1 %v6545_v19  ;;  %v5241_v19 = vrot.slane %v687_v13, 9  ;;  %v406_v20 = vrot.slane %v404_v11, 4  ;;  %v398_v33 = vrot.slane %v397_v24, 4  ;;  %v787_v50 = vsel %vm6997_vm4, %v785_v43, %v786_v34  ;;  %v693_v0 = vld [vmem:[%s6968_s17 + $0x3c] sm:$0xe]  ;;  %v6574_v27 = vld [vmem:[%s8395_s1 + $0xa8] sm:$0xff]  }
  0x2a   : > { %5771 = vmatprep.subr.bf16.mxu0 %v6547_v21  ;;  %6293 = vmatprep.subr.bf16.mxu1 %v6548_v22  ;;  %v776_v21 = vrot.slane %v688_v14, 5  ;;  %v7056_v47 = vld [vmem:[#allocation3 + $0x1c] ss:$12 sps:$4 sm:$0xff]   ;;  %v6554_v48 = vld [vmem:[#allocation3 + $0x38] ss:$12 sps:$4 sm:$0xff]   ;;  %v415_v59 = vshrl.u32 %v312_v55, 16 }
  0x2b   : > { %v407_v29 = vor.u32 %v406_v20, %v402_v17  ;;  %v403_v40 = vsel %vm7009_vm5, %v398_v33, %v402_v17  ;;  %1362 = vmatprep.mubr.bf16.mxu0 %v7056_v47  ;;  %870 = vst [vmem:[#allocation3 + $0x74] sm:$0xf] %v787_v50  ;;  %v418_v60 = vshll.u32 %v312_v55, 16  ;;  %v424_v61 = vshll.u32 %v313_v56, 16  ;;  %v694_v1 = vld [vmem:[%s6968_s17 + $0x40] sm:$0xf] }
  0x2c   : > { %v777_v30 = vsel %vm6997_vm4, %v5241_v19, %v776_v21  ;;  %v778_v31 = vrot.slane %v776_v21, 4  ;;  %658 = vst [vmem:[#allocation3 + $0x34] sm:$0xf] %v403_v40  ;;  %v428_v62 = vshrl.u32 %v313_v56, 16  ;;  %v434_v63 = vshll.u32 %v314_v57, 16  ;;  %v6581_v34 = vld [vmem:[%s8395_s1 + $0x58] sm:$0xff]  }
  0x2d   : > { %5772 = vmatpush3.bf16.msra.mxu0 %v6549_v28  ;;  %6294 = vmatpush3.bf16.msra.mxu1 %v6548_v22  ;;  %v779_v22 = vrot.slane %v689_v18, 5  ;;  %v5242_v28 = vrot.slane %v690_v23, 9  ;;  %867 = vst [vmem:[#allocation3 + $0x50] sm:$0xf] %v777_v30  ;;  %v408_v42 = vrot.slane %v407_v29, 4  ;;  %v417_v5 = vrot.slane %v415_v59, 4 }
  0x2e   : > { %6315 = vmatprep.subr.bf16.mxu0 %v6992_v36  ;;  %5851 = vmatprep.subr.bf16.mxu1 %v6561_v52  ;;  %v261_v52 = vld [vmem:[%s6968_s17 + $0x24] sm:$0xf]  ;;  %v7083_v4 = vld [vmem:[#allocation3 + $0x30] ss:$12 sps:$4 sm:$0xff]   ;;  %v420_v7 = vrot.slane %v418_v60, 5  ;;  %v426_v8 = vrot.slane %v424_v61, 5 }
  0x2f   : > { %v780_v37 = vsel %vm6997_vm4, %v778_v31, %v779_v22  ;;  %v784_v38 = vsel %vm6997_vm4, %v5242_v28, %v783_v32  ;;  %v413_v49 = vsel %vm7009_vm5, %v408_v42, %v412_v25  ;;  %285 = vst [vmem:[#allocation3 + $0x48] sm:$0xf] %v261_v52  ;;  %v430_v9 = vrot.slane %v428_v62, 4  ;;  %v695_v11 = vld [vmem:[%s6968_s17 + $0x44] sm:$0x1] }
  0x30   : > { %868 = vst [vmem:[#allocation3 + $0x5c] sm:$0xf] %v780_v37  ;;  %869 = vst [vmem:[#allocation3 + $0x68] sm:$0xf] %v784_v38  ;;  %1363 = vmatmul.mubr.bf16.vlgmr.msra.gmra.mxu0 %v7054_v46  ;;  %6296 = vmatmul.mubr.bf16.vlgmr.msra.gmra.mxu1 %v6554_v48  ;;  %v436_v10 = vrot.slane %v434_v63, 5  ;;  %v5243_v12 = vrot.slane %v693_v0, 9  ;;  %v421_v14 = vor.u32 %v420_v7, %v417_v5 }
  0x31   : > { %659 = vst [vmem:[#allocation3 + $0x40] sm:$0xf] %v413_v49  ;;  %6316 = vmatpush3.bf16.msra.mxu0 %v6992_v36  ;;  %5852 = vmatpush3.bf16.msra.mxu1 %v6562_v39  ;;  %v6571_v36 = vld [vmem:[%s8395_s1 + $0x68] sm:$0xff]   ;;  %v790_v13 = vrot.slane %v694_v1, 5  ;;  %v793_v15 = vrot.slane %v695_v11, 5  ;;  %v6573_v18 = vld [vmem:[%s8395_s1 + $0x60] sm:$0xff]   ;;  %v431_v19 = vor.u32 %v430_v9, %v426_v8 }
  0x32   : > { %6317 = vmatprep.subr.bf16.mxu0 %v6563_v44  ;;  %5853 = vmatprep.subr.bf16.mxu1 %v6564_v45  ;;  %v696_v16 = vld [vmem:[%s6968_s17 + $0x48] sm:$0xe]  ;;  %v697_v17 = vld [vmem:[%s6968_s17 + $0x4c] sm:$0xf]  ;;  %v698_v22 = vld [vmem:[%s6968_s17 + $0x50] sm:$0x1] }
  0x33   : > { %v791_v20 = vsel %vm6997_vm4, %v5243_v12, %v790_v13  ;;  %v792_v21 = vrot.slane %v790_v13, 4  ;;  %v5244_v23 = vrot.slane %v696_v16, 9  ;;  %v422_v24 = vrot.slane %v421_v14, 4  ;;  %v6575_v30 = vld [vmem:[%s8395_s1 + $0x20] sm:$0xff]   ;;  %v263_v38 = vld [vmem:[%s6968_s17 + $0x30] sm:$0xf] }
  0x34   : > { %871 = vst [vmem:[#allocation3 + $0x80] sm:$0xf] %v791_v20  ;;  %v797_v25 = vrot.slane %v697_v17, 5  ;;  %v800_v26 = vrot.slane %v698_v22, 5  ;;  %v432_v28 = vrot.slane %v431_v19, 4  ;;  %v6583_v22 = vld [vmem:[%s8395_s1 + $0x50] sm:$0xff]  }
  0x35   : > { %6318 = vmatpush3.bf16.msra.mxu0 %v6563_v44  ;;  %5854 = vmatpush3.bf16.msra.mxu1 %v6565_v51  ;;  %v794_v29 = vsel %vm6997_vm4, %v792_v21, %v793_v15  ;;  %v427_v31 = vsel %vm7009_vm5, %v422_v24, %v426_v8  ;;  %v264_v39 = vld [vmem:[%s6968_s17 + $0x34] sm:$0xf]  ;;  %287 = vst [vmem:[#allocation3 + $0x60] sm:$0xf] %v263_v38  ;;  %v315_v40 = vld [vmem:[%s6968_s17 + $0x30] sm:$0xf] }
  0x36   : > { %5855 = vmatprep.subr.bf16.mxu1 %v6571_v36  ;;  %872 = vst [vmem:[#allocation3 + $0x8c] sm:$0xf] %v794_v29  ;;  %v798_v32 = vsel %vm6997_vm4, %v5244_v23, %v797_v25  ;;  %v799_v33 = vrot.slane %v797_v25, 4  ;;  %6319 = vmatprep.subr.bf16.mxu0 %v6574_v27  ;;  %v437_v35 = vsel %vm7009_vm5, %v432_v28, %v436_v10  ;;  %660 = vst [vmem:[#allocation3 + $0x4c] sm:$0xf] %v427_v31  ;;  %v6582_v15 = vld [vmem:[%s8395_s1 + $0x18] sm:$0xff]  }
  0x37   : > { %v6558_v58 = vld [vmem:[#allocation3 + $0x50] ss:$12 sps:$4 sm:$0xff]   ;;  %v6560_v6 = vld [vmem:[#allocation3 + $0x68] ss:$12 sps:$4 sm:$0xff]   ;;  %873 = vst [vmem:[#allocation3 + $0x98] sm:$0xf] %v798_v32 }
  0x38   : > { %6299 = vmatprep.mubr.bf16.mxu1 %v6558_v58  ;;  %v7081_v3 = vld [vmem:[#allocation3 + $0x34] ss:$12 sps:$4 sm:$0xff]   ;;  %661 = vst [vmem:[#allocation3 + $0x58] sm:$0xf] %v437_v35  ;;  %v801_v37 = vsel %vm6997_vm4, %v799_v33, %v800_v26  ;;  %288 = vst [vmem:[#allocation3 + $0x6c] sm:$0xf] %v264_v39 }
  0x39   : > { %1370 = vmatprep.mubr.bf16.mxu0 %v7081_v3  ;;  %6300 = vmatmul.mubr.bf16.gmra.mxu1 %v6560_v6  ;;  %874 = vst [vmem:[#allocation3 + $0xa4] sm:$0xf] %v801_v37  ;;  %v316_v42 = vld [vmem:[%s6968_s17 + $0x34] sm:$0xf]  ;;  %v317_v43 = vld [vmem:[%s6968_s17 + $0x38] sm:$0x1] }
  0x3a   : > { %1371 = vmatmul.mubr.bf16.gmra.mxu0 %v7083_v4  ;;  %5856 = vmatpush3.bf16.msra.mxu1 %v6572_v2  ;;  %v439_v44 = vshrl.u32 %v315_v40, 16  ;;  %v442_v45 = vshll.u32 %v315_v40, 16  ;;  %v448_v48 = vshll.u32 %v316_v42, 16  ;;  %v452_v49 = vshrl.u32 %v316_v42, 16  ;;  %v699_v50 = vld [vmem:[%s6968_s17 + $0x54] sm:$0xe] }
  0x3b   : > { %5857 = vmatprep.subr.bf16.mxu1 %v6573_v18  ;;  %6320 = vmatpush3.bf16.msra.mxu0 %v6574_v27  ;;  %v458_v51 = vshll.u32 %v317_v43, 16  ;;  %v700_v52 = vld [vmem:[%s6968_s17 + $0x58] sm:$0xf]  ;;  %v5245_v54 = vrot.slane %v699_v50, 9  ;;  %v701_v59 = vld [vmem:[%s6968_s17 + $0x5c] sm:$0x1] }
  0x3c   : > { %v441_v55 = vrot.slane %v439_v44, 4  ;;  %v444_v56 = vrot.slane %v442_v45, 5  ;;  %v450_v57 = vrot.slane %v448_v48, 5  ;;  %v454_v58 = vrot.slane %v452_v49, 4  ;;  %v702_v1 = vld [vmem:[%s6968_s17 + $0x60] sm:$0xe] }
  0x3d   : > { %v6568_v60 = vld [vmem:[#allocation3 + $0x80] ss:$12 sps:$4 sm:$0xff]   ;;  %v460_v61 = vrot.slane %v458_v51, 5  ;;  %v804_v62 = vrot.slane %v700_v52, 5  ;;  %v807_v0 = vrot.slane %v701_v59, 5  ;;  %v5246_v14 = vrot.slane %v702_v1, 9 }
  0x3e   : > { %5858 = vmatpush3.bf16.msra.mxu1 %v6575_v30  ;;  %v445_v36 = vor.u32 %v444_v56, %v441_v55  ;;  %v455_v63 = vor.u32 %v454_v58, %v450_v57  ;;  %6303 = vmatprep.mubr.bf16.mxu1 %v6568_v60  ;;  %v7126_v5 = vld [vmem:[#allocation3 + $0x48] ss:$12 sps:$4 sm:$0xff]   ;;  %v703_v12 = vld [vmem:[%s6968_s17 + $0x64] sm:$0xf]  ;;  %v704_v13 = vld [vmem:[%s6968_s17 + $0x68] sm:$0x1] }
  0x3f   : > { %5859 = vmatprep.subr.bf16.mxu1 %v6581_v34  ;;  %v7124_v2 = vld [vmem:[#allocation3 + $0x4c] ss:$12 sps:$4 sm:$0xff]   ;;  %v805_v6 = vsel %vm6997_vm4, %v5245_v54, %v804_v62  ;;  %v806_v7 = vrot.slane %v804_v62, 4  ;;  %v811_v18 = vrot.slane %v703_v12, 5  ;;  %v814_v19 = vrot.slane %v704_v13, 5  ;;  %v6591_v45 = vld [vmem:[%s8395_s1 + $0x48] sm:$0xff]  }
  0x40   : > { %v6570_v8 = vld [vmem:[#allocation3 + $0x98] ss:$12 sps:$4 sm:$0xff]   ;;  %v446_v9 = vrot.slane %v445_v36, 4  ;;  %v456_v10 = vrot.slane %v455_v63, 4  ;;  %875 = vst [vmem:[#allocation3 + $0xb0] sm:$0xf] %v805_v6  ;;  %1378 = vmatprep.mubr.bf16.mxu0 %v7124_v2 }
  0x41   : > { %v808_v11 = vsel %vm6997_vm4, %v806_v7, %v807_v0  ;;  %6304 = vmatmul.mubr.bf16.gmra.mxu1 %v6570_v8  ;;  %v812_v20 = vsel %vm6997_vm4, %v5246_v14, %v811_v18  ;;  %v813_v21 = vrot.slane %v811_v18, 4  ;;  %v6584_v23 = vld [vmem:[%s8395_s1 + $0x10] sm:$0xff]   ;;  %v6585_v25 = vld [vmem:[%s8395_s1 + $0xa0] sm:$0xff]   ;;  %v265_v26 = vld [vmem:[%s6968_s17 + $0x3c] sm:$0xf] }
  0x42   : > { %1379 = vmatmul.mubr.bf16.gmra.mxu0 %v7126_v5  ;;  %v451_v16 = vsel %vm7009_vm5, %v446_v9, %v450_v57  ;;  %v461_v17 = vsel %vm7009_vm5, %v456_v10, %v460_v61  ;;  %876 = vst [vmem:[#allocation3 + $0xbc] sm:$0xf] %v808_v11  ;;  %5860 = vmatpush3.bf16.msra.mxu1 %v6582_v15  ;;  %877 = vst [vmem:[#allocation3 + $0xc8] sm:$0xf] %v812_v20  ;;  %v266_v27 = vld [vmem:[%s6968_s17 + $0x40] sm:$0xf] }
  0x43   : > { %662 = vst [vmem:[#allocation3 + $0x64] sm:$0xf] %v451_v16  ;;  %663 = vst [vmem:[#allocation3 + $0x70] sm:$0xf] %v461_v17  ;;  %v815_v24 = vsel %vm6997_vm4, %v813_v21, %v814_v19  ;;  %5861 = vmatprep.subr.bf16.mxu1 %v6583_v22  ;;  %v318_v28 = vld [vmem:[%s6968_s17 + $0x3c] sm:$0xf]  ;;  %6321 = vmatprep.subr.bf16.mxu0 %v6585_v25 }
  0x44   : > { %878 = vst [vmem:[#allocation3 + $0xd4] sm:$0xf] %v815_v24  ;;  %289 = vst [vmem:[#allocation3 + $0x78] sm:$0xf] %v265_v26  ;;  %v319_v29 = vld [vmem:[%s6968_s17 + $0x40] sm:$0xf]  ;;  %6322 = vmatpush3.bf16.msra.mxu0 %v6585_v25 }
  0x45   : > { %290 = vst [vmem:[#allocation3 + $0x84] sm:$0xf] %v266_v27  ;;  %v320_v30 = vld [vmem:[%s6968_s17 + $0x44] sm:$0x1]  ;;  %v463_v31 = vshrl.u32 %v318_v28, 16  ;;  %v466_v32 = vshll.u32 %v318_v28, 16 }
  0x46   : > { %5862 = vmatpush3.bf16.msra.mxu1 %v6584_v23  ;;  %v472_v34 = vshll.u32 %v319_v29, 16  ;;  %v476_v35 = vshrl.u32 %v319_v29, 16  ;;  %v7166_v40 = vld [vmem:[#allocation3 + $0x60] ss:$12 sps:$4 sm:$0xff]   ;;  %v482_v44 = vshll.u32 %v320_v30, 16  ;;  %v6592_v57 = vld [vmem:[%s8395_s1 + $0x8] sm:$0xff]  }
  0x47   : > { %v465_v38 = vrot.slane %v463_v31, 4  ;;  %v468_v39 = vrot.slane %v466_v32, 5  ;;  %v705_v49 = vld [vmem:[%s6968_s17 + $0x6c] sm:$0xe]  ;;  %v706_v50 = vld [vmem:[%s6968_s17 + $0x70] sm:$0xf]  ;;  %5863 = vmatprep.subr.bf16.mxu1 %v6591_v45 }
  0x48   : > { %v474_v42 = vrot.slane %v472_v34, 5  ;;  %v478_v43 = vrot.slane %v476_v35, 4  ;;  %v484_v52 = vrot.slane %v482_v44, 5  ;;  %v707_v54 = vld [vmem:[%s6968_s17 + $0x74] sm:$0x1]  ;;  %v5247_v55 = vrot.slane %v705_v49, 9 }
  0x49   : > { %v7161_v33 = vld [vmem:[#allocation3 + $0xb0] ss:$12 sps:$4 sm:$0xff]   ;;  %v469_v48 = vor.u32 %v468_v39, %v465_v38  ;;  %v818_v56 = vrot.slane %v706_v50, 5  ;;  %v821_v60 = vrot.slane %v707_v54, 5  ;;  %v708_v63 = vld [vmem:[%s6968_s17 + $0x78] sm:$0xe] }
  0x4a   : > { %v7163_v37 = vld [vmem:[#allocation3 + $0x64] ss:$12 sps:$4 sm:$0xff]   ;;  %6307 = vmatprep.mubr.bf16.mxu1 %v7161_v33  ;;  %v479_v51 = vor.u32 %v478_v43, %v474_v42  ;;  %5864 = vmatpush3.bf16.msra.mxu1 %v6592_v57  ;;  %v710_v6 = vld [vmem:[%s6968_s17 + $0x80] sm:$0x1]  ;;  %v5248_v7 = vrot.slane %v708_v63, 9 }
  0x4b   : > { %1386 = vmatprep.mubr.bf16.mxu0 %v7163_v37  ;;  %v7179_v58 = vld [vmem:[#allocation3 + $0xc8] ss:$12 sps:$4 sm:$0xff]   ;;  %v470_v59 = vrot.slane %v469_v48, 4  ;;  %v819_v62 = vsel %vm6997_vm4, %v5247_v55, %v818_v56  ;;  %v820_v36 = vrot.slane %v818_v56, 4  ;;  %v709_v0 = vld [vmem:[%s6968_s17 + $0x7c] sm:$0xf] }
  0x4c   : > { %1387 = vmatmul.mubr.bf16.gmra.mxu0 %v7166_v40  ;;  %v480_v61 = vrot.slane %v479_v51, 4  ;;  %6308 = vmatmul.mubr.bf16.gmra.mxu1 %v7179_v58  ;;  %879 = vst [vmem:[#allocation3 + $0xe0] sm:$0xf] %v819_v62  ;;  %v825_v8 = vrot.slane %v709_v0, 5  ;;  %v828_v11 = vrot.slane %v710_v6, 5  ;;  %v6593_v12 = vld [vmem:[%s8395_s1 + $0x40] sm:$0xff]  }
  0x4d   : > { %v475_v1 = vsel %vm7009_vm5, %v470_v59, %v474_v42  ;;  %v822_v10 = vsel %vm6997_vm4, %v820_v36, %v821_v60  ;;  %v6594_v15 = vld [vmem:[%s8395_s1] sm:$0xff]   ;;  %5865 = vmatprep.subr.bf16.mxu1 %v6593_v12  ;;  %v267_v17 = vld [vmem:[%s6968_s17 + $0x48] sm:$0xf]  ;;  %v268_v18 = vld [vmem:[%s6968_s17 + $0x4c] sm:$0xf] }
  0x4e   : > { %v485_v9 = vsel %vm7009_vm5, %v480_v61, %v484_v52  ;;  %664 = vst [vmem:[#allocation3 + $0x7c] sm:$0xf] %v475_v1  ;;  %880 = vst [vmem:[#allocation3 + $0xec] sm:$0xf] %v822_v10  ;;  %v826_v13 = vsel %vm6997_vm4, %v5248_v7, %v825_v8  ;;  %v827_v14 = vrot.slane %v825_v8, 4  ;;  %5866 = vmatpush3.bf16.msra.mxu1 %v6594_v15  ;;  %v6601_v28 = vld [vmem:[%s8395_s1 + $0x98] sm:$0xff]  }
  0x4f   : > { %665 = vst [vmem:[#allocation3 + $0x88] sm:$0xf] %v485_v9  ;;  %881 = vst [vmem:[#allocation3 + $0xf8] sm:$0xf] %v826_v13  ;;  %v321_v19 = vld [vmem:[%s6968_s17 + $0x48] sm:$0xf]  ;;  %6323 = vmatprep.subr.bf16.mxu0 %v6601_v28 }
  0x50   : > { %v829_v16 = vsel %vm6997_vm4, %v827_v14, %v828_v11  ;;  %291 = vst [vmem:[#allocation3 + $0x90] sm:$0xf] %v267_v17  ;;  %292 = vst [vmem:[#allocation3 + $0x9c] sm:$0xf] %v268_v18  ;;  %v322_v20 = vld [vmem:[%s6968_s17 + $0x4c] sm:$0xf]  ;;  %6324 = vmatpush3.bf16.msra.mxu0 %v6601_v28 }
  0x51   : > { %882 = vst [vmem:[#allocation3 + $0x104] sm:$0xf] %v829_v16  ;;  %v323_v21 = vld [vmem:[%s6968_s17 + $0x50] sm:$0x1]  ;;  %v487_v22 = vshrl.u32 %v321_v19, 16  ;;  %v490_v23 = vshll.u32 %v321_v19, 16 }
  0x52   : > { %v496_v24 = vshll.u32 %v322_v20, 16  ;;  %v500_v25 = vshrl.u32 %v322_v20, 16  ;;  %v506_v26 = vshll.u32 %v323_v21, 16  ;;  %v255_v27 = vld [vmem:[%s6968_s17] sm:$0xf]  ;;  %v6605_v62 = vld [vmem:[%s8395_s1 + $0x90] sm:$0xff]  }
  0x53   : > { %v489_v29 = vrot.slane %v487_v22, 4  ;;  %v492_v30 = vrot.slane %v490_v23, 5  ;;  %v256_v31 = vld [vmem:[%s6968_s17 + $0x4] sm:$0xf]  ;;  %279 = vst [vmem:[#allocation3] sm:$0xf] %v255_v27  ;;  %6325 = vmatprep.subr.bf16.mxu0 %v6605_v62 }
  0x54   : > { %v498_v32 = vrot.slane %v496_v24, 5  ;;  %v502_v34 = vrot.slane %v500_v25, 4  ;;  %v508_v35 = vrot.slane %v506_v26, 5  ;;  %280 = vst [vmem:[#allocation3 + $0xc] sm:$0xf] %v256_v31  ;;  %v6609_v1 = vld [vmem:[%s8395_s1 + $0x88] sm:$0xff]   ;;  %6326 = vmatpush3.bf16.msra.mxu0 %v6605_v62 }
  0x55   : > { %v303_v38 = vld [vmem:[%s6968_s17] sm:$0xf]  ;;  %v493_v42 = vor.u32 %v492_v30, %v489_v29  ;;  %v7216_v44 = vld [vmem:[#allocation3 + $0xe0] ss:$12 sps:$4 sm:$0xff]   ;;  %v7218_v45 = vld [vmem:[#allocation3 + $0x78] ss:$12 sps:$4 sm:$0xff]   ;;  %6327 = vmatprep.subr.bf16.mxu0 %v6609_v1 }
  0x56   : > { %v7214_v39 = vld [vmem:[#allocation3 + $0x7c] ss:$12 sps:$4 sm:$0xff]   ;;  %v343_v43 = vshrl.u32 %v303_v38, 16  ;;  %v503_v48 = vor.u32 %v502_v34, %v498_v32  ;;  %v304_v50 = vld [vmem:[%s6968_s17 + $0x4] sm:$0xf]  ;;  %6311 = vmatprep.mubr.bf16.mxu1 %v7216_v44  ;;  %v346_v56 = vshll.u32 %v303_v38, 16 }
  0x57   : > { %1394 = vmatprep.mubr.bf16.mxu0 %v7214_v39  ;;  %v494_v49 = vrot.slane %v493_v42, 4  ;;  %v305_v51 = vld [vmem:[%s6968_s17 + $0x8] sm:$0x1]  ;;  %v352_v59 = vshll.u32 %v304_v50, 16  ;;  %v356_v60 = vshrl.u32 %v304_v50, 16  ;;  %v6613_v18 = vld [vmem:[%s8395_s1 + $0x80] sm:$0xff]  }
  0x58   : > { %v345_v52 = vrot.slane %v343_v43, 4  ;;  %1395 = vmatmul.mubr.bf16.gmra.mxu0 %v7218_v45  ;;  %v6590_v54 = vld [vmem:[#allocation3 + $0xf8] ss:$12 sps:$4 sm:$0xff]   ;;  %v504_v55 = vrot.slane %v503_v48, 4  ;;  %v362_v61 = vshll.u32 %v305_v51, 16  ;;  %v348_v63 = vrot.slane %v346_v56, 5 }
  0x59   : > { %v499_v57 = vsel %vm7009_vm5, %v494_v49, %v498_v32  ;;  %6312 = vmatmul.mubr.bf16.gmra.mxu1 %v6590_v54  ;;  %v269_v0 = vld [vmem:[%s6968_s17 + $0x54] sm:$0xf]  ;;  %v354_v6 = vrot.slane %v352_v59, 5  ;;  %v358_v7 = vrot.slane %v356_v60, 4  ;;  %v270_v9 = vld [vmem:[%s6968_s17 + $0x58] sm:$0xf]  ;;  %6328 = vmatpush3.bf16.msra.mxu0 %v6609_v1 }
  0x5a   : > { %v509_v36 = vsel %vm7009_vm5, %v504_v55, %v508_v35  ;;  %666 = vst [vmem:[#allocation3 + $0x94] sm:$0xf] %v499_v57  ;;  %v364_v8 = vrot.slane %v362_v61, 5  ;;  %293 = vst [vmem:[#allocation3 + $0xa8] sm:$0xf] %v269_v0  ;;  %v349_v10 = vor.u32 %v348_v63, %v345_v52  ;;  %v6618_v27 = vld [vmem:[%s8395_s1 + $0x1f8] sm:$0xff]   ;;  %6329 = vmatprep.subr.bf16.mxu0 %v6613_v18 }
  0x5b   : > { %667 = vst [vmem:[#allocation3 + $0xa0] sm:$0xf] %v509_v36  ;;  %294 = vst [vmem:[#allocation3 + $0xb4] sm:$0xf] %v270_v9  ;;  %v324_v11 = vld [vmem:[%s6968_s17 + $0x54] sm:$0xf]  ;;  %v359_v14 = vor.u32 %v358_v7, %v354_v6 }
  0x5c   : > { %v325_v12 = vld [vmem:[%s6968_s17 + $0x58] sm:$0xf]  ;;  %v326_v13 = vld [vmem:[%s6968_s17 + $0x5c] sm:$0x1]  ;;  %v511_v15 = vshrl.u32 %v324_v11, 16  ;;  %v514_v16 = vshll.u32 %v324_v11, 16 }
  0x5d   : > { %v520_v17 = vshll.u32 %v325_v12, 16  ;;  %v350_v19 = vrot.slane %v349_v10, 4  ;;  %v524_v20 = vshrl.u32 %v325_v12, 16  ;;  %v530_v21 = vshll.u32 %v326_v13, 16  ;;  %v271_v26 = vld [vmem:[%s6968_s17 + $0x60] sm:$0xf]  ;;  %6330 = vmatpush3.bf16.msra.mxu0 %v6613_v18 }
  0x5e   : > { %v360_v22 = vrot.slane %v359_v14, 4  ;;  %v513_v23 = vrot.slane %v511_v15, 4  ;;  %v516_v24 = vrot.slane %v514_v16, 5  ;;  %v272_v31 = vld [vmem:[%s6968_s17 + $0x64] sm:$0xf]  ;;  %v6620_v61 = vld [vmem:[%s8395_s1 + $0x238] sm:$0xff]   ;;  %5945 = vmatprep.subr.bf16.mxu0 %v6618_v27 }
  0x5f   : > { %v522_v25 = vrot.slane %v520_v17, 5  ;;  %v355_v28 = vsel %vm7009_vm5, %v350_v19, %v354_v6  ;;  %v526_v29 = vrot.slane %v524_v20, 4  ;;  %v532_v30 = vrot.slane %v530_v21, 5  ;;  %295 = vst [vmem:[#allocation3 + $0xc0] sm:$0xf] %v271_v26  ;;  %6351 = vmatprep.subr.bf16.mxu1 %v6620_v61 }
  0x60   : > { %v327_v32 = vld [vmem:[%s6968_s17 + $0x60] sm:$0xf]  ;;  %v365_v34 = vsel %vm7009_vm5, %v360_v22, %v364_v8  ;;  %654 = vst [vmem:[#allocation3 + $0x4] sm:$0xf] %v355_v28  ;;  %v517_v35 = vor.u32 %v516_v24, %v513_v23  ;;  %296 = vst [vmem:[#allocation3 + $0xcc] sm:$0xf] %v272_v31 }
  0x61   : > { %v328_v38 = vld [vmem:[%s6968_s17 + $0x64] sm:$0xf]  ;;  %v329_v42 = vld [vmem:[%s6968_s17 + $0x68] sm:$0x1]  ;;  %v535_v43 = vshrl.u32 %v327_v32, 16  ;;  %v527_v50 = vor.u32 %v526_v29, %v522_v25  ;;  %v538_v51 = vshll.u32 %v327_v32, 16 }
  0x62   : > { %v7255_v48 = vld [vmem:[#allocation3 + $0x94] ss:$12 sps:$4 sm:$0xff]   ;;  %655 = vst [vmem:[#allocation3 + $0x10] sm:$0xf] %v365_v34  ;;  %v7257_v49 = vld [vmem:[#allocation3 + $0x90] ss:$12 sps:$4 sm:$0xff]  }
  0x63   : > { %v518_v52 = vrot.slane %v517_v35, 4  ;;  %v537_v54 = vrot.slane %v535_v43, 4  ;;  %v544_v55 = vshll.u32 %v328_v38, 16  ;;  %v548_v56 = vshrl.u32 %v328_v38, 16  ;;  %1402 = vmatprep.mubr.bf16.mxu0 %v7255_v48  ;;  %v273_v0 = vld [vmem:[%s6968_s17 + $0x6c] sm:$0xf] }
  0x64   : > { %v528_v57 = vrot.slane %v527_v50, 4  ;;  %v540_v59 = vrot.slane %v538_v51, 5  ;;  %v554_v60 = vshll.u32 %v329_v42, 16  ;;  %1403 = vmatmul.mubr.bf16.gmra.mxu0 %v7257_v49  ;;  %v274_v1 = vld [vmem:[%s6968_s17 + $0x70] sm:$0xf] }
  0x65   : > { %v523_v62 = vsel %vm7009_vm5, %v518_v52, %v522_v25  ;;  %v546_v36 = vrot.slane %v544_v55, 5  ;;  %v550_v63 = vrot.slane %v548_v56, 4  ;;  %297 = vst [vmem:[#allocation3 + $0xd8] sm:$0xf] %v273_v0  ;;  %298 = vst [vmem:[#allocation3 + $0xe4] sm:$0xf] %v274_v1 }
  0x66   : > { %v533_v6 = vsel %vm7009_vm5, %v528_v57, %v532_v30  ;;  %668 = vst [vmem:[#allocation3 + $0xac] sm:$0xf] %v523_v62  ;;  %v541_v7 = vor.u32 %v540_v59, %v537_v54  ;;  %v556_v8 = vrot.slane %v554_v60, 5  ;;  %v330_v9 = vld [vmem:[%s6968_s17 + $0x6c] sm:$0xf] }
  0x67   : > { %v331_v10 = vld [vmem:[%s6968_s17 + $0x70] sm:$0xf]  ;;  %669 = vst [vmem:[#allocation3 + $0xb8] sm:$0xf] %v533_v6  ;;  %v551_v11 = vor.u32 %v550_v63, %v546_v36  ;;  %v332_v12 = vld [vmem:[%s6968_s17 + $0x74] sm:$0x1] }
  0x68   : > { %v559_v13 = vshrl.u32 %v330_v9, 16  ;;  %v562_v14 = vshll.u32 %v330_v9, 16  ;;  %v568_v15 = vshll.u32 %v331_v10, 16  ;;  %v542_v16 = vrot.slane %v541_v7, 4  ;;  %v6597_v19 = vld [vmem:[#allocation3] ss:$12 sps:$4 sm:$0xff]  }
  0x69   : > { %v572_v17 = vshrl.u32 %v331_v10, 16  ;;  %v578_v18 = vshll.u32 %v332_v12, 16  ;;  %v6599_v20 = vld [vmem:[#allocation3 + $0x4] ss:$12 sps:$4 sm:$0xff]   ;;  %v552_v21 = vrot.slane %v551_v11, 4  ;;  %v6625_v10 = vld [vmem:[%s8395_s1 + $0x230] sm:$0xff]  }
  0x6a   : > { %v547_v22 = vsel %vm7009_vm5, %v542_v16, %v546_v36  ;;  %v561_v23 = vrot.slane %v559_v13, 4  ;;  %v564_v24 = vrot.slane %v562_v14, 5  ;;  %v570_v25 = vrot.slane %v568_v15, 5  ;;  %1748 = vmatprep.mubr.bf16.mxu1 %v6599_v20  ;;  %v275_v29 = vld [vmem:[%s6968_s17 + $0x78] sm:$0xf] }
  0x6b   : > { %v557_v26 = vsel %vm7009_vm5, %v552_v21, %v556_v8  ;;  %670 = vst [vmem:[#allocation3 + $0xc4] sm:$0xf] %v547_v22  ;;  %v574_v27 = vrot.slane %v572_v17, 4  ;;  %v580_v28 = vrot.slane %v578_v18, 5  ;;  %v276_v30 = vld [vmem:[%s6968_s17 + $0x7c] sm:$0xf]  ;;  %1749 = vmatmul.mubr.bf16.vlgmr.msra.gmra.mxu1 %v6597_v19 }
  0x6c   : > { %671 = vst [vmem:[#allocation3 + $0xd0] sm:$0xf] %v557_v26  ;;  %v565_v31 = vor.u32 %v564_v24, %v561_v23  ;;  %299 = vst [vmem:[#allocation3 + $0xf0] sm:$0xf] %v275_v29  ;;  %v333_v32 = vld [vmem:[%s6968_s17 + $0x78] sm:$0xf]  ;;  %1756 = vmatprep.mubr.bf16.mxu1 %v7056_v47  ;;  %6352 = vmatpush3.bf16.msra.mxu1 %v6620_v61 }
  0x6d   : > { %300 = vst [vmem:[#allocation3 + $0xfc] sm:$0xf] %v276_v30  ;;  %v334_v34 = vld [vmem:[%s6968_s17 + $0x7c] sm:$0xf]  ;;  %v335_v35 = vld [vmem:[%s6968_s17 + $0x80] sm:$0x1]  ;;  %v575_v38 = vor.u32 %v574_v27, %v570_v25  ;;  %6353 = vmatprep.subr.bf16.mxu1 %v6625_v10 }
  0x6e   : > { %v583_v42 = vshrl.u32 %v333_v32, 16  ;;  %v586_v43 = vshll.u32 %v333_v32, 16  ;;  %v592_v50 = vshll.u32 %v334_v34, 16  ;;  %v678_v51 = vld [vmem:[%s6968_s17] sm:$0xe]  ;;  %v566_v55 = vrot.slane %v565_v31, 4 }
  0x6f   : > { %v7284_v52 = vld [vmem:[#allocation3 + $0xac] ss:$12 sps:$4 sm:$0xff]   ;;  %v7286_v54 = vld [vmem:[#allocation3 + $0xa8] ss:$12 sps:$4 sm:$0xff]   ;;  %v576_v56 = vrot.slane %v575_v38, 4  ;;  %v596_v36 = vshrl.u32 %v334_v34, 16 }
  0x70   : > { %v585_v57 = vrot.slane %v583_v42, 4  ;;  %v588_v59 = vrot.slane %v586_v43, 5  ;;  %v594_v60 = vrot.slane %v592_v50, 5  ;;  %v679_v62 = vld [vmem:[%s6968_s17 + $0x4] sm:$0xf]  ;;  %1410 = vmatprep.mubr.bf16.mxu0 %v7284_v52  ;;  %v571_v47 = vsel %vm7009_vm5, %v566_v55, %v570_v25  ;;  %6354 = vmatpush3.bf16.msra.mxu1 %v6625_v10  ;;  %v6628_v22 = vld [vmem:[%s8395_s1 + $0x228] sm:$0xff]  }
  0x71   : > { %v602_v63 = vshll.u32 %v335_v35, 16  ;;  %v680_v0 = vld [vmem:[%s6968_s17 + $0x8] sm:$0x1]  ;;  %v5238_v1 = vrot.slane %v678_v51, 9  ;;  %1411 = vmatmul.mubr.bf16.gmra.mxu0 %v7286_v54  ;;  %v581_v61 = vsel %vm7009_vm5, %v576_v56, %v580_v28  ;;  %672 = vst [vmem:[#allocation3 + $0xdc] sm:$0xf] %v571_v47  ;;  %6355 = vmatprep.subr.bf16.mxu1 %v6628_v22 }
  0x72   : > { %v589_v6 = vor.u32 %v588_v59, %v585_v57  ;;  %v755_v7 = vrot.slane %v679_v62, 5  ;;  %673 = vst [vmem:[#allocation3 + $0xe8] sm:$0xf] %v581_v61  ;;  %v598_v8 = vrot.slane %v596_v36, 4  ;;  %v758_v9 = vrot.slane %v680_v0, 5  ;;  %v6631_v24 = vld [vmem:[%s8395_s1 + $0x220] sm:$0xff]  }
  0x73   : > { %v7299_v11 = vld [vmem:[#allocation3 + $0xc4] ss:$12 sps:$4 sm:$0xff]   ;;  %v7301_v12 = vld [vmem:[#allocation3 + $0xc0] ss:$12 sps:$4 sm:$0xff]   ;;  %1757 = vmatmul.mubr.bf16.gmra.mxu1 %v7054_v46  ;;  %v604_v16 = vrot.slane %v602_v63, 5  ;;  %v6636_v26 = vld [vmem:[%s8395_s1 + $0x210] sm:$0xff]  }
  0x74   : > { %v590_v13 = vrot.slane %v589_v6, 4  ;;  %v756_v14 = vsel %vm6997_vm4, %v5238_v1, %v755_v7  ;;  %v599_v15 = vor.u32 %v598_v8, %v594_v60  ;;  %v757_v17 = vrot.slane %v755_v7, 4  ;;  %1418 = vmatprep.mubr.bf16.mxu0 %v7299_v11  ;;  %1764 = vmatprep.mubr.bf16.mxu1 %v7081_v3  ;;  %v7318_v3 = vld [vmem:[#allocation3 + $0xd8] ss:$12 sps:$4 sm:$0xff]   ;;  %v7337_v25 = vld [vmem:[#allocation3 + $0xf0] ss:$12 sps:$4 sm:$0xff]  }
  0x75   : > { %861 = vst [vmem:[#allocation3 + $0x8] sm:$0xf] %v756_v14  ;;  %6356 = vmatpush3.bf16.msra.mxu1 %v6628_v22  ;;  %v6619_v27 = vld [vmem:[%s8395_s1 + $0x1b8] sm:$0xff]   ;;  %v6621_v28 = vld [vmem:[%s8395_s1 + $0x1f0] sm:$0xff]   ;;  %v6641_v29 = vld [vmem:[%s8395_s1 + $0x200] sm:$0xff]  }
  0x76   : > { %v595_v18 = vsel %vm7009_vm5, %v590_v13, %v594_v60  ;;  %v600_v19 = vrot.slane %v599_v15, 4  ;;  %v759_v20 = vsel %vm6997_vm4, %v757_v17, %v758_v9  ;;  %6357 = vmatprep.subr.bf16.mxu1 %v6631_v24  ;;  %v6661_v30 = vld [vmem:[#allocation3 + $0x20] ss:$12 sps:$4 sm:$0xff]   ;;  %v6622_v31 = vld [vmem:[%s8395_s1 + $0x1b0] sm:$0xff]   ;;  %v6623_v34 = vld [vmem:[%s8395_s1 + $0x1e8] sm:$0xff]  }
  0x77   : > { %674 = vst [vmem:[#allocation3 + $0xf4] sm:$0xf] %v595_v18  ;;  %862 = vst [vmem:[#allocation3 + $0x14] sm:$0xf] %v759_v20  ;;  %v6662_v32 = vld [vmem:[#allocation3 + $0x38] ss:$12 sps:$4 sm:$0xff]  }
  0x78   : > { %v605_v46 = vsel %vm7009_vm5, %v600_v19, %v604_v16  ;;  %v6624_v35 = vld [vmem:[%s8395_s1 + $0x1a8] sm:$0xff]   ;;  %v6626_v38 = vld [vmem:[%s8395_s1 + $0x1e0] sm:$0xff]   ;;  %v6629_v1 = vld [vmem:[%s8395_s1 + $0x1d8] sm:$0xff]  }
  0x79   : > { %1419 = vmatmul.mubr.bf16.gmra.mxu0 %v7301_v12  ;;  %v7315_v21 = vld [vmem:[#allocation3 + $0xdc] ss:$12 sps:$4 sm:$0xff]   ;;  %675 = vst [vmem:[#allocation3 + $0x100] sm:$0xf] %v605_v46  ;;  %6358 = vmatpush3.bf16.msra.mxu1 %v6631_v24  ;;  %v711_v42 = vld [vmem:[%s6968_s17 + $0x84] sm:$0xe] }
  0x7a   : > { %1426 = vmatprep.mubr.bf16.mxu0 %v7315_v21  ;;  %v6627_v43 = vld [vmem:[%s8395_s1 + $0x1a0] sm:$0xff]   ;;  %v712_v50 = vld [vmem:[%s6968_s17 + $0x88] sm:$0xf]  ;;  %v713_v51 = vld [vmem:[%s6968_s17 + $0x8c] sm:$0x1]  ;;  %v5249_v55 = vrot.slane %v711_v42, 9 }
  0x7b   : > { %1765 = vmatmul.mubr.bf16.gmra.mxu1 %v7083_v4  ;;  %v6663_v56 = vld [vmem:[#allocation3 + $0x50] ss:$12 sps:$4 sm:$0xff]   ;;  %v832_v57 = vrot.slane %v712_v50, 5  ;;  %v835_v59 = vrot.slane %v713_v51, 5  ;;  %v277_v60 = vld [vmem:[%s6968_s17 + $0x84] sm:$0xf] }
  0x7c   : > { %1772 = vmatprep.mubr.bf16.mxu1 %v7124_v2  ;;  %v6634_v2 = vld [vmem:[%s8395_s1 + $0x218] sm:$0xff]   ;;  %v278_v62 = vld [vmem:[%s6968_s17 + $0x88] sm:$0xf]  ;;  %v6664_v47 = vld [vmem:[#allocation3 + $0x68] ss:$12 sps:$4 sm:$0xff]  }
  0x7d   : > { %6359 = vmatprep.subr.bf16.mxu1 %v6634_v2  ;;  %301 = vst [vmem:[#allocation3 + $0x108] sm:$0xf] %v277_v60  ;;  %302 = vst [vmem:[#allocation3 + $0x114] sm:$0xf] %v278_v62  ;;  %v336_v36 = vld [vmem:[%s6968_s17 + $0x84] sm:$0xf]  ;;  %v833_v61 = vsel %vm6997_vm4, %v5249_v55, %v832_v57 }
  0x7e   : > { %v6617_v4 = vld [vmem:[#allocation3 + $0x8] ss:$12 sps:$4 sm:$0xff]   ;;  %6360 = vmatpush3.bf16.msra.mxu1 %v6634_v2  ;;  %v337_v63 = vld [vmem:[%s6968_s17 + $0x88] sm:$0xf]  ;;  %v834_v6 = vrot.slane %v832_v57, 4  ;;  %v607_v7 = vshrl.u32 %v336_v36, 16 }
  0x7f   : > { %6361 = vmatprep.subr.bf16.mxu1 %v6636_v26  ;;  %v338_v0 = vld [vmem:[%s6968_s17 + $0x8c] sm:$0x1]  ;;  %v610_v8 = vshll.u32 %v336_v36, 16  ;;  %883 = vst [vmem:[#allocation3 + $0x110] sm:$0xf] %v833_v61  ;;  %v616_v9 = vshll.u32 %v337_v63, 16 }
  0x80   : > { %v7325_v23 = vld [vmem:[#allocation3 + $0xf4] ss:$12 sps:$4 sm:$0xff]   ;;  %v620_v10 = vshrl.u32 %v337_v63, 16  ;;  %v626_v13 = vshll.u32 %v338_v0, 16  ;;  %v836_v14 = vsel %vm6997_vm4, %v834_v6, %v835_v59  ;;  %v609_v15 = vrot.slane %v607_v7, 4  ;;  %v6632_v20 = vld [vmem:[%s8395_s1 + $0x1d0] sm:$0xff]  }
  0x81   : > { %1427 = vmatmul.mubr.bf16.gmra.mxu0 %v7318_v3  ;;  %v612_v16 = vrot.slane %v610_v8, 5  ;;  %v6630_v17 = vld [vmem:[%s8395_s1 + $0x198] sm:$0xff]   ;;  %884 = vst [vmem:[#allocation3 + $0x11c] sm:$0xf] %v836_v14  ;;  %v618_v18 = vrot.slane %v616_v9, 5 }
  0x82   : > { %1434 = vmatprep.mubr.bf16.mxu0 %v7325_v23  ;;  %6362 = vmatpush3.bf16.msra.mxu1 %v6636_v26  ;;  %v622_v19 = vrot.slane %v620_v10, 4  ;;  %v628_v24 = vrot.slane %v626_v13, 5  ;;  %v6666_v26 = vld [vmem:[#allocation3 + $0x98] ss:$12 sps:$4 sm:$0xff]   ;;  %v6646_v42 = vld [vmem:[#allocation3 + $0x50] ss:$12 sps:$4 sm:$0xff]  }
  0x83   : > { %1773 = vmatmul.mubr.bf16.gmra.mxu1 %v7126_v5  ;;  %v6638_v5 = vld [vmem:[%s8395_s1 + $0x208] sm:$0xff]   ;;  %v613_v46 = vor.u32 %v612_v16, %v609_v15  ;;  %v6651_v51 = vld [vmem:[#allocation3 + $0x80] ss:$12 sps:$4 sm:$0xff]   ;;  %v6652_v55 = vld [vmem:[#allocation3 + $0x98] ss:$12 sps:$4 sm:$0xff]  }
  0x84   : > { %1780 = vmatprep.mubr.bf16.mxu1 %v7163_v37  ;;  %6363 = vmatprep.subr.bf16.mxu1 %v6638_v5  ;;  %v623_v22 = vor.u32 %v622_v19, %v618_v18  ;;  %v6649_v50 = vld [vmem:[#allocation3 + $0x48] ss:$12 sps:$4 sm:$0xff]   ;;  %v6655_v57 = vld [vmem:[#allocation3 + $0xe0] ss:$12 sps:$4 sm:$0xff]   ;;  %v6656_v59 = vld [vmem:[#allocation3 + $0xf8] ss:$12 sps:$4 sm:$0xff]  }
  0x85   : > { %v614_v2 = vrot.slane %v613_v46, 4  ;;  %v6660_v15 = vld [vmem:[#allocation3 + $0x108] ss:$12 sps:$4 sm:$0xff]  }
  0x86   : > { %6364 = vmatpush3.bf16.msra.mxu1 %v6638_v5  ;;  %v6633_v5 = vld [vmem:[%s8395_s1 + $0x190] sm:$0xff]  }
  0x87   : > { %6365 = vmatprep.subr.bf16.mxu1 %v6641_v29 }
  0x88   : > { %v6657_v60 = vld [vmem:[#allocation3 + $0x110] ss:$12 sps:$4 sm:$0xff]  }
  0x89   : > { %1435 = vmatmul.mubr.bf16.gmra.mxu0 %v7337_v25 }
  0x8a   : > { %6331 = vmatprep.mubr.bf16.mxu0 %v6617_v4  ;;  %6366 = vmatpush3.bf16.msra.mxu1 %v6641_v29  ;;  %v6665_v4 = vld [vmem:[#allocation3 + $0x80] ss:$12 sps:$4 sm:$0xff]   ;;  %v619_v29 = vsel %vm7009_vm5, %v614_v2, %v618_v18 }
  0x8b   : > { %1781 = vmatmul.mubr.bf16.gmra.mxu1 %v7166_v40  ;;  %676 = vst [vmem:[#allocation3 + $0x10c] sm:$0xf] %v619_v29 }
  0x8c   : > { %1788 = vmatprep.mubr.bf16.mxu1 %v7214_v39 }
  0x91   : > { %6332 = vmatmul.mubr.bf16.vlgmr.msra.gmra.mxu0 %v6661_v30 }
  0x92   : > { %5946 = vmatpush3.bf16.msra.mxu0 %v6619_v27  ;;  %6335 = vmatprep.mubr.bf16.mxu0 %v6662_v32  ;;  %v624_v27 = vrot.slane %v623_v22, 4  ;;  %v6639_v32 = vld [vmem:[%s8395_s1 + $0x1c0] sm:$0xff]  }
  0x93   : > { %5947 = vmatprep.subr.bf16.mxu0 %v6621_v28  ;;  %1789 = vmatmul.mubr.bf16.gmra.mxu1 %v7218_v45  ;;  %v6635_v28 = vld [vmem:[%s8395_s1 + $0x1c8] sm:$0xff]  }
  0x94   : > { %1796 = vmatprep.mubr.bf16.mxu1 %v7255_v48  ;;  %v629_v30 = vsel %vm7009_vm5, %v624_v27, %v628_v24 }
  0x95   : > { %677 = vst [vmem:[#allocation3 + $0x118] sm:$0xf] %v629_v30  ;;  %v2673_v30 = vld [vmem:[#allocation2 + $0x8] sm:$0x1] }
  0x96   : > { %5948 = vmatpush3.bf16.msra.mxu0 %v6622_v31  ;;  %v6637_v31 = vld [vmem:[%s8395_s1 + $0x188] sm:$0xff]  }
  0x97   : > { %5949 = vmatprep.subr.bf16.mxu0 %v6623_v34  ;;  %v6640_v34 = vld [vmem:[%s8395_s1 + $0x180] sm:$0xff]  }
  0x99   : > { %6336 = vmatmul.mubr.bf16.gmra.mxu0 %v6663_v56  ;;  %v6654_v56 = vld [vmem:[#allocation3 + $0xc8] ss:$12 sps:$4 sm:$0xff]  }
  0x9a   : > { %5950 = vmatpush3.bf16.msra.mxu0 %v6624_v35  ;;  %6339 = vmatprep.mubr.bf16.mxu0 %v6664_v47  ;;  %v6644_v35 = vld [vmem:[#allocation3 + $0x34] ss:$12 sps:$4 sm:$0xff]  }
  0x9b   : > { %5951 = vmatprep.subr.bf16.mxu0 %v6626_v38  ;;  %1797 = vmatmul.mubr.bf16.gmra.mxu1 %v7257_v49  ;;  %v6645_v38 = vld [vmem:[#allocation3 + $0x38] ss:$12 sps:$4 sm:$0xff]  }
  0x9c   : > { %1804 = vmatprep.mubr.bf16.mxu1 %v7284_v52  ;;  %v6658_v9 = vld [vmem:[#allocation3 + $0x10c] ss:$12 sps:$4 sm:$0xff]  }
  0x9e   : > { %5952 = vmatpush3.bf16.msra.mxu0 %v6627_v43  ;;  %v6650_v43 = vld [vmem:[#allocation3 + $0x68] ss:$12 sps:$4 sm:$0xff]  }
  0x9f   : > { %5953 = vmatprep.subr.bf16.mxu0 %v6629_v1 }
  0xa1   : > { %6340 = vmatmul.mubr.bf16.gmra.mxu0 %v6665_v4 }
  0xa2   : > { %5954 = vmatpush3.bf16.msra.mxu0 %v6630_v17  ;;  %6343 = vmatprep.mubr.bf16.mxu0 %v6666_v26 }
  0xa3   : > { %5955 = vmatprep.subr.bf16.mxu0 %v6632_v20  ;;  %1805 = vmatmul.mubr.bf16.gmra.mxu1 %v7286_v54 }
  0xa4   : > { %1812 = vmatprep.mubr.bf16.mxu1 %v7299_v11 }
  0xa6   : > { %5956 = vmatpush3.bf16.msra.mxu0 %v6633_v5 }
  0xa7   : > { %5957 = vmatprep.subr.bf16.mxu0 %v6635_v28 }
  0xa9   : > { %6344 = vmatmul.mubr.bf16.gmra.mxu0 %v7161_v33  ;;  %v6642_v33 = vld [vmem:[#allocation3 + $0x30] ss:$12 sps:$4 sm:$0xff]  }
  0xaa   : > { %6347 = vmatprep.mubr.bf16.mxu0 %v7179_v58  ;;  %5958 = vmatpush3.bf16.msra.mxu0 %v6637_v31  ;;  %v6647_v58 = vld [vmem:[#allocation3 + $0x4c] ss:$12 sps:$4 sm:$0xff]  }
  0xab   : > { %5959 = vmatprep.subr.bf16.mxu0 %v6639_v32  ;;  %1813 = vmatmul.mubr.bf16.gmra.mxu1 %v7301_v12 }
  0xac   : > { %1820 = vmatprep.mubr.bf16.mxu1 %v7315_v21 }
  0xae   : > { %5960 = vmatpush3.bf16.msra.mxu0 %v6640_v34  ;;  %v2674_v34 = vsel %vm7462_vm10, 0, %v2673_v30 }
  0xaf   : > { %2675 = vst [vmem:[#allocation2 + $0x8] sm:$0x1] %v2674_v34 }
  0xb1   : > { %6348 = vmatmul.mubr.bf16.gmra.mxu0 %v7216_v44  ;;  %v6653_v44 = vld [vmem:[#allocation3 + $0xb0] ss:$12 sps:$4 sm:$0xff]  }
  0xb2   : > { %2367 = vmatprep.mubr.bf16.mxu0 %v6644_v35 }
  0xb3   : > { %1821 = vmatmul.mubr.bf16.gmra.mxu1 %v7318_v3 }
  0xb4   : > { %6367 = vmatprep.mubr.bf16.mxu1 %v6645_v38 }
  0xb9   : > { %2368 = vmatmul.mubr.bf16.vlgmr.msra.gmra.mxu0 %v6642_v33 }
  0xba   : > { %2375 = vmatprep.mubr.bf16.mxu0 %v6647_v58  ;;  %v2644_v58 = vld [vmem:[#allocation2 + $0xc] sm:$0x1] }
  0xbb   : > { %6368 = vmatmul.mubr.bf16.vlgmr.msra.gmra.mxu1 %v6646_v42 }
  0xbc   : > { %6371 = vmatprep.mubr.bf16.mxu1 %v6650_v43 }
  0xc1   : > { %2376 = vmatmul.mubr.bf16.gmra.mxu0 %v6649_v50  ;;  %v2645_v50 = vsel %vm7453_vm8, 0, %v2644_v58 }
  0xc2   : > { %2383 = vmatprep.mubr.bf16.mxu0 %v7163_v37  ;;  %2646 = vst [vmem:[#allocation2 + $0xc] sm:$0x1] %v2645_v50 }
  0xc3   : > { %6372 = vmatmul.mubr.bf16.gmra.mxu1 %v6651_v51 }
  0xc4   : > { %6375 = vmatprep.mubr.bf16.mxu1 %v6652_v55  ;;  %v2676_v55 = vld [vmem:[#allocation2 + $0x14] sm:$0x1] }
  0xc9   : > { %2384 = vmatmul.mubr.bf16.gmra.mxu0 %v7166_v40 }
  0xca   : > { %2391 = vmatprep.mubr.bf16.mxu0 %v7214_v39 }
  0xcb   : > { %6376 = vmatmul.mubr.bf16.gmra.mxu1 %v6653_v44 }
  0xcc   : > { %6379 = vmatprep.mubr.bf16.mxu1 %v6654_v56  ;;  %v2677_v56 = vsel %vm7462_vm10, 0, %v2676_v55 }
  0xcd   : > { %2678 = vst [vmem:[#allocation2 + $0x14] sm:$0x1] %v2677_v56 }
  0xd1   : > { %2392 = vmatmul.mubr.bf16.gmra.mxu0 %v7218_v45 }
  0xd2   : > { %2399 = vmatprep.mubr.bf16.mxu0 %v7255_v48 }
  0xd3   : > { %6380 = vmatmul.mubr.bf16.gmra.mxu1 %v6655_v57  ;;  %v2647_v57 = vld [vmem:[#allocation2 + $0x18] sm:$0x1] }
  0xd4   : > { %6383 = vmatprep.mubr.bf16.mxu1 %v6656_v59 }
  0xd9   : > { %2400 = vmatmul.mubr.bf16.gmra.mxu0 %v7257_v49 }
  0xda   : > { %2407 = vmatprep.mubr.bf16.mxu0 %v7284_v52 }
  0xdb   : > { %6384 = vmatmul.mubr.bf16.gmra.mxu1 %v6657_v60 }
  0xe1   : > { %2408 = vmatmul.mubr.bf16.gmra.mxu0 %v7286_v54 }
  0xe2   : > { %2415 = vmatprep.mubr.bf16.mxu0 %v7299_v11 }
  0xe9   : > { %2416 = vmatmul.mubr.bf16.gmra.mxu0 %v7301_v12 }
  0xea   : > { %2423 = vmatprep.mubr.bf16.mxu0 %v7315_v21 }
  0xf0   : > { %v5773_v37 = vpop.f32.mrf.mxu0  ;;  %v6297_v40 = vpop.f32.mrf.mxu1 }
  0xf1   : > { %2424 = vmatmul.mubr.bf16.gmra.mxu0 %v7318_v3 }
  0xf2   : > { %v5774_v39 = vpop.f32.mrf.mxu0  ;;  %v1477_v62 = vpop.f32.mrf.mxu1  ;;  %2431 = vmatprep.mubr.bf16.mxu0 %v7325_v23 }
  0xf3   : > { %v5775_v45 = vadd.f32 %v5774_v39, %v5773_v37  ;;  %v2648_v37 = vsel %vm7453_vm8, 0, %v2647_v57 }
  0xf4   : > { %v5776_v48 = vpop.f32.mrf.mxu0  ;;  %v6298_v47 = vpop.f32.mrf.mxu1  ;;  %2649 = vst [vmem:[#allocation2 + $0x18] sm:$0x1] %v2648_v37 }
  0xf5   : > { %v7435_v36 = vadd.f32 %v5775_v45, %v1477_v62  ;;  %v2679_v62 = vld [vmem:[#allocation2 + $0x20] sm:$0x1] }
  0xf6   : > { %v5777_v49 = vpop.f32.mrf.mxu0  ;;  %v1480_v52 = vpop.f32.mrf.mxu1 }
  0xf7   : > { %v5778_v63 = vadd.f32 %v5777_v49, %v5776_v48 }
  0xf9   : > { %v7437_v0 = vadd.f32 %v5778_v63, %v1480_v52  ;;  %v6301_v11 = vpop.f32.mrf.mxu1  ;;  %2432 = vmatmul.mubr.bf16.gmra.mxu0 %v7337_v25  ;;  %v2641_v25 = vld [vmem:[#allocation2] sm:$0x1] }
  0xfa   : > { %v5779_v54 = vpop.f32.mrf.mxu0  ;;  %2439 = vmatprep.mubr.bf16.mxu0 %v6658_v9  ;;  %v2642_v26 = vsel %vm7453_vm8, 0, %v2641_v25 }
  0xfb   : > { %v1493_v12 = vpop.f32.mrf.mxu1  ;;  %2643 = vst [vmem:[#allocation2] sm:$0x1] %v2642_v26 }
  0xfc   : > { %v5780_v1 = vpop.f32.mrf.mxu0 }
  0xfd   : > { %v5781_v61 = vadd.f32 %v5780_v1, %v5779_v54  ;;  %v6302_v10 = vpop.f32.mrf.mxu1  ;;  %v2650_v54 = vld [vmem:[#allocation2 + $0x24] sm:$0x1] }
  0xfe   : > { %v5782_v6 = vpop.f32.mrf.mxu0  ;;  %v2651_v1 = vsel %vm7453_vm8, 0, %v2650_v54 }
  0xff   : > { %v7441_v7 = vadd.f32 %v6297_v40, %v5781_v61  ;;  %v1496_v14 = vpop.f32.mrf.mxu1  ;;  %2652 = vst [vmem:[#allocation2 + $0x24] sm:$0x1] %v2651_v1 }
 0x100   : > { %v5783_v21 = vpop.f32.mrf.mxu0 }
 0x101   : > { %v5784_v8 = vadd.f32 %v5783_v21, %v5782_v6  ;;  %v7446_v3 = vpop.f32.mrf.mxu1  ;;  %2440 = vmatmul.mubr.bf16.gmra.mxu0 %v6660_v15 }
 0x102   : > { %v5785_v16 = vpop.f32.mrf.mxu0 }
 0x103   : > { %v7443_v13 = vadd.f32 %v6298_v47, %v5784_v8  ;;  %v1509_v23 = vpop.f32.mrf.mxu1  ;;  %v2680_v47 = vsel %vm7462_vm10, 0, %v2679_v62 }
 0x104   : > { %v5786_v17 = vpop.f32.mrf.mxu0  ;;  %2681 = vst [vmem:[#allocation2 + $0x20] sm:$0x1] %v2680_v47 }
 0x105   : > { %v5787_v18 = vadd.f32 %v5786_v17, %v5785_v16  ;;  %v7450_v46 = vpop.f32.mrf.mxu1 }
 0x106   : > { %v5788_v19 = vpop.f32.mrf.mxu0 }
 0x107   : > { %v7448_v20 = vadd.f32 %v5787_v18, %v1493_v12  ;;  %v1512_v5 = vpop.f32.mrf.mxu1  ;;  %v2682_v12 = vld [vmem:[#allocation2 + $0x2c] sm:$0x1] }
 0x108   : > { %v5789_v22 = vpop.f32.mrf.mxu0  ;;  %v2683_v21 = vsel %vm7462_vm10, 0, %v2682_v12  ;;  %v2691_v12 = vld [vmem:[#allocation2 + $0x50] sm:$0x1] }
 0x109   : > { %v5790_v24 = vadd.f32 %v5789_v22, %v5788_v19  ;;  %2684 = vst [vmem:[#allocation2 + $0x2c] sm:$0x1] %v2683_v21  ;;  %v2685_v19 = vld [vmem:[#allocation2 + $0x38] sm:$0x1] }
 0x10a   : > { %v2686_v25 = vsel %vm7462_vm10, 0, %v2685_v19 }
 0x10b   : > { %v7457_v2 = vadd.f32 %v5790_v24, %v1496_v14  ;;  %2687 = vst [vmem:[#allocation2 + $0x38] sm:$0x1] %v2686_v25 }
 0x10c   : > { %v5791_v27 = vpop.f32.mrf.mxu0  ;;  %v7466_v31 = vpop.f32.mrf.mxu1 }
 0x10e   : > { %v5792_v29 = vpop.f32.mrf.mxu0  ;;  %v7472_v42 = vpop.f32.mrf.mxu1 }
 0x10f   : > { %v5793_v32 = vadd.f32 %v5792_v29, %v5791_v27  ;;  %v2656_v29 = vld [vmem:[#allocation2 + $0x3c] sm:$0x1] }
 0x110   : > { %v5794_v35 = vpop.f32.mrf.mxu0  ;;  %v7478_v44 = vpop.f32.mrf.mxu1 }
 0x111   : > { %v7470_v38 = vadd.f32 %v6301_v11, %v5793_v32  ;;  %v2657_v32 = vsel %vm7453_vm8, 0, %v2656_v29 }
 0x112   : > { %v5795_v33 = vpop.f32.mrf.mxu0  ;;  %v7482_v59 = vpop.f32.mrf.mxu1  ;;  %2658 = vst [vmem:[#allocation2 + $0x3c] sm:$0x1] %v2657_v32 }
 0x113   : > { %v5796_v43 = vadd.f32 %v5795_v33, %v5794_v35 }
 0x115   : > { %v7476_v51 = vadd.f32 %v6302_v10, %v5796_v43  ;;  %v2653_v10 = vld [vmem:[#allocation2 + $0x30] sm:$0x1]  ;;  %v2688_v43 = vld [vmem:[#allocation2 + $0x44] sm:$0x1] }
 0x116   : > { %v2654_v16 = vsel %vm7453_vm8, 0, %v2653_v10 }
 0x117   : > { %2655 = vst [vmem:[#allocation2 + $0x30] sm:$0x1] %v2654_v16 }
 0x118   : > { %v5797_v60 = vpop.f32.mrf.mxu0 }
 0x119   : > { %v7486_v45 = vpop.f32.mrf.mxu1 }
 0x11a   : > { %v5798_v40 = vpop.f32.mrf.mxu0 }
 0x11b   : > { %v5799_v39 = vadd.f32 %v5798_v40, %v5797_v60  ;;  %v7492_v11 = vpop.f32.mrf.mxu1 }
 0x11c   : > { %v5800_v48 = vpop.f32.mrf.mxu0 }
 0x11d   : > { %v7490_v49 = vadd.f32 %v5799_v39, %v1509_v23  ;;  %v7498_v6 = vpop.f32.mrf.mxu1  ;;  %v2659_v39 = vld [vmem:[#allocation2 + $0x48] sm:$0x1] }
 0x11e   : > { %v5801_v52 = vpop.f32.mrf.mxu0  ;;  %v2660_v47 = vsel %vm7453_vm8, 0, %v2659_v39 }
 0x11f   : > { %v5802_v63 = vadd.f32 %v5801_v52, %v5800_v48  ;;  %v7502_v14 = vpop.f32.mrf.mxu1  ;;  %2661 = vst [vmem:[#allocation2 + $0x48] sm:$0x1] %v2660_v47 }
 0x121   : > { %v7496_v61 = vadd.f32 %v5802_v63, %v1512_v5 }
 0x124   : > { %v5803_v8 = vpop.f32.mrf.mxu0 }
 0x126   : > { %v5804_v9 = vpop.f32.mrf.mxu0 }
 0x127   : > { %v5805_v15 = vadd.f32 %v5804_v9, %v5803_v8  ;;  %v2692_v9 = vsel %vm7462_vm10, 0, %v2691_v12 }
 0x128   : > { %v5806_v17 = vpop.f32.mrf.mxu0  ;;  %2693 = vst [vmem:[#allocation2 + $0x50] sm:$0x1] %v2692_v9 }
 0x129   : > { %v7507_v23 = vadd.f32 %v7446_v3, %v5805_v15 }
 0x12a   : > { %v5807_v18 = vpop.f32.mrf.mxu0 }
 0x12b   : > { %v5867_v22 = vpop.f32.mrf.mxu1  ;;  %v5808_v24 = vadd.f32 %v5807_v18, %v5806_v17  ;;  %v2662_v18 = vld [vmem:[#allocation2 + $0x54] sm:$0x1] }
 0x12d   : > { %v5868_v26 = vpop.f32.mrf.mxu1  ;;  %v7512_v5 = vadd.f32 %v7450_v46, %v5808_v24  ;;  %v2689_v46 = vsel %vm7462_vm10, 0, %v2688_v43  ;;  %v2663_v24 = vsel %vm7453_vm8, 0, %v2662_v18 }
 0x12e   : > { %v5869_v27 = vadd.f32 %v5868_v26, %v5867_v22  ;;  %2690 = vst [vmem:[#allocation2 + $0x44] sm:$0x1] %v2689_v46  ;;  %2664 = vst [vmem:[#allocation2 + $0x54] sm:$0x1] %v2663_v24 }
 0x12f   : > { %v5870_v30 = vpop.f32.mrf.mxu1 }
 0x130   : > { %v7517_v34 = vadd.f32 %v5869_v27, %v7435_v36 }
 0x131   : > { %v5809_v3 = vpop.f32.mrf.mxu0  ;;  %v5871_v35 = vpop.f32.mrf.mxu1 }
 0x132   : > { %v5872_v33 = vadd.f32 %v5871_v35, %v5870_v30  ;;  %v2694_v30 = vld [vmem:[#allocation2 + $0x5c] sm:$0x1] }
 0x133   : > { %v5810_v58 = vpop.f32.mrf.mxu0  ;;  %v5873_v50 = vpop.f32.mrf.mxu1  ;;  %v2695_v35 = vsel %vm7462_vm10, 0, %v2694_v30 }
 0x134   : > { %v5811_v55 = vadd.f32 %v5810_v58, %v5809_v3  ;;  %v7522_v57 = vadd.f32 %v5872_v33, %v7437_v0  ;;  %2696 = vst [vmem:[#allocation2 + $0x5c] sm:$0x1] %v2695_v35 }
 0x135   : > { %v5812_v56 = vpop.f32.mrf.mxu0  ;;  %v5874_v36 = vpop.f32.mrf.mxu1 }
 0x136   : > { %v7525_v60 = vadd.f32 %v5811_v55, %v7472_v42  ;;  %v5875_v37 = vadd.f32 %v5874_v36, %v5873_v50  ;;  %v2665_v55 = vld [vmem:[#allocation2 + $0x60] sm:$0x1] }
 0x137   : > { %v5813_v40 = vpop.f32.mrf.mxu0  ;;  %v5876_v62 = vpop.f32.mrf.mxu1  ;;  %v2666_v36 = vsel %vm7453_vm8, 0, %v2665_v55 }
 0x138   : > { %v5814_v48 = vadd.f32 %v5813_v40, %v5812_v56  ;;  %v7530_v63 = vadd.f32 %v5875_v37, %v7441_v7  ;;  %2667 = vst [vmem:[#allocation2 + $0x60] sm:$0x1] %v2666_v36 }
 0x139   : > { %v5815_v52 = vpop.f32.mrf.mxu0  ;;  %v5877_v54 = vpop.f32.mrf.mxu1 }
 0x13a   : > { %v7533_v0 = vadd.f32 %v5814_v48, %v7482_v59  ;;  %v5878_v42 = vadd.f32 %v5877_v54, %v5876_v62  ;;  %v2697_v48 = vld [vmem:[#allocation2 + $0x68] sm:$0x1] }
 0x13b   : > { %v5816_v1 = vpop.f32.mrf.mxu0  ;;  %v5879_v21 = vpop.f32.mrf.mxu1  ;;  %v2698_v54 = vsel %vm7462_vm10, 0, %v2697_v48 }
 0x13c   : > { %v5817_v8 = vadd.f32 %v5816_v1, %v5815_v52  ;;  %v7538_v15 = vadd.f32 %v5878_v42, %v7443_v13  ;;  %2699 = vst [vmem:[#allocation2 + $0x68] sm:$0x1] %v2698_v54 }
 0x13d   : > { %v5818_v10 = vpop.f32.mrf.mxu0  ;;  %v5880_v16 = vpop.f32.mrf.mxu1 }
 0x13e   : > { %v7541_v7 = vadd.f32 %v7466_v31, %v5817_v8  ;;  %v5881_v59 = vadd.f32 %v5880_v16, %v5879_v21  ;;  %v2668_v8 = vld [vmem:[#allocation2 + $0x6c] sm:$0x1] }
 0x13f   : > { %v5819_v17 = vpop.f32.mrf.mxu0  ;;  %v5882_v19 = vpop.f32.mrf.mxu1  ;;  %v2669_v16 = vsel %vm7453_vm8, 0, %v2668_v8 }
 0x140   : > { %v5820_v22 = vadd.f32 %v5819_v17, %v5818_v10  ;;  %v7546_v26 = vadd.f32 %v5881_v59, %v7448_v20  ;;  %2670 = vst [vmem:[#allocation2 + $0x6c] sm:$0x1] %v2669_v16 }
 0x141   : > { %v5821_v25 = vpop.f32.mrf.mxu0  ;;  %v5883_v27 = vpop.f32.mrf.mxu1 }
 0x142   : > { %v7549_v13 = vadd.f32 %v7478_v44, %v5820_v22  ;;  %v5884_v31 = vadd.f32 %v5883_v27, %v5882_v19  ;;  %v2700_v22 = vld [vmem:[#allocation2 + $0x74] sm:$0x1] }
 0x143   : > { %v5822_v29 = vpop.f32.mrf.mxu0  ;;  %v5885_v32 = vpop.f32.mrf.mxu1 }
 0x144   : > { %v5823_v3 = vadd.f32 %v5822_v29, %v5821_v25  ;;  %v7554_v58 = vadd.f32 %v5884_v31, %v7457_v2  ;;  %v2701_v25 = vsel %vm7462_vm10, 0, %v2700_v22 }
 0x145   : > { %v5824_v33 = vpop.f32.mrf.mxu0  ;;  %v5886_v43 = vpop.f32.mrf.mxu1  ;;  %2702 = vst [vmem:[#allocation2 + $0x74] sm:$0x1] %v2701_v25 }
 0x146   : > { %v7557_v20 = vadd.f32 %v5823_v3, %v7492_v11  ;;  %v5887_v44 = vadd.f32 %v5886_v43, %v5885_v32 }
 0x147   : > { %v5825_v50 = vpop.f32.mrf.mxu0  ;;  %v5888_v46 = vpop.f32.mrf.mxu1 }
 0x148   : > { %v5826_v56 = vadd.f32 %v5825_v50, %v5824_v33  ;;  %v7562_v40 = vadd.f32 %v5887_v44, %v7470_v38 }
 0x149   : > { %v5827_v37 = vpop.f32.mrf.mxu0  ;;  %v5889_v39 = vpop.f32.mrf.mxu1 }
 0x14a   : > { %v7565_v2 = vadd.f32 %v5826_v56, %v7502_v14  ;;  %v5890_v11 = vadd.f32 %v5889_v39, %v5888_v46 }
 0x14b   : > { %v5828_v62 = vpop.f32.mrf.mxu0  ;;  %v5891_v47 = vpop.f32.mrf.mxu1 }
 0x14c   : > { %v5829_v52 = vadd.f32 %v5828_v62, %v5827_v37  ;;  %v7570_v1 = vadd.f32 %v5890_v11, %v7476_v51 }
 0x14d   : > { %v5830_v42 = vpop.f32.mrf.mxu0  ;;  %v5892_v12 = vpop.f32.mrf.mxu1 }
 0x14e   : > { %v7573_v38 = vadd.f32 %v7486_v45, %v5829_v52  ;;  %v5893_v14 = vadd.f32 %v5892_v12, %v5891_v47 }
 0x14f   : > { %v5831_v21 = vpop.f32.mrf.mxu0  ;;  %v5894_v9 = vpop.f32.mrf.mxu1 }
 0x150   : > { %v5832_v10 = vadd.f32 %v5831_v21, %v5830_v42  ;;  %v7580_v17 = vadd.f32 %v5893_v14, %v7490_v49 }
 0x151   : > { %v7577_v59 = vpop.f32.mrf.mxu0  ;;  %v5895_v45 = vpop.f32.mrf.mxu1 }
 0x152   : > { %v7583_v51 = vadd.f32 %v7498_v6, %v5832_v10  ;;  %v5896_v18 = vadd.f32 %v5895_v45, %v5894_v9 }
 0x153   : > { %v7585_v19 = vpop.f32.mrf.mxu0  ;;  %v5897_v24 = vpop.f32.mrf.mxu1 }
 0x154   : > { %v7592_v31 = vadd.f32 %v5896_v18, %v7496_v61 }
 0x155   : > { %v7589_v27 = vpop.f32.mrf.mxu0  ;;  %v5898_v49 = vpop.f32.mrf.mxu1 }
 0x156   : > { %v5899_v29 = vadd.f32 %v5898_v49, %v5897_v24 }
 0x157   : > { %v7594_v30 = vpop.f32.mrf.mxu0  ;;  %v5900_v6 = vpop.f32.mrf.mxu1 }
 0x158   : > { %v1791_v3 = vadd.f32 %v5899_v29, %v7507_v23 }
 0x159   : > { %v7596_v32 = vpop.f32.mrf.mxu0  ;;  %v5901_v35 = vpop.f32.mrf.mxu1 }
 0x15a   : > { %v5902_v33 = vadd.f32 %v5901_v35, %v5900_v6 }
 0x15b   : > { %v7599_v43 = vpop.f32.mrf.mxu0  ;;  %v5903_v28 = vpop.f32.mrf.mxu1 }
 0x15c   : > { %v1794_v61 = vadd.f32 %v5902_v33, %v7512_v5 }
 0x15d   : > { %v7601_v44 = vpop.f32.mrf.mxu0  ;;  %v5904_v50 = vpop.f32.mrf.mxu1 }
 0x15e   : > { %v5905_v55 = vadd.f32 %v5904_v50, %v5903_v28 }
 0x15f   : > { %v7604_v46 = vpop.f32.mrf.mxu0  ;;  %v5906_v56 = vpop.f32.mrf.mxu1 }
 0x160   : > { %v1799_v37 = vadd.f32 %v5905_v55, %v7525_v60 }
 0x161   : > { %v6341_v36 = vpop.f32.mrf.mxu0  ;;  %v5907_v39 = vpop.f32.mrf.mxu1 }
 0x162   : > { %v7607_v11 = vadd.f32 %v6341_v36, %v1791_v3  ;;  %v5908_v23 = vadd.f32 %v5907_v39, %v5906_v56 }
 0x163   : > { %v7609_v62 = vpop.f32.mrf.mxu0  ;;  %v5909_v48 = vpop.f32.mrf.mxu1 }
 0x164   : > { %v1802_v52 = vadd.f32 %v5908_v23, %v7533_v0 }
 0x165   : > { %v6342_v47 = vpop.f32.mrf.mxu0  ;;  %v5910_v54 = vpop.f32.mrf.mxu1 }
 0x166   : > { %v7612_v5 = vadd.f32 %v6342_v47, %v1794_v61  ;;  %v5911_v42 = vadd.f32 %v5910_v54, %v5909_v48 }
 0x167   : > { %v7614_v12 = vpop.f32.mrf.mxu0  ;;  %v5912_v14 = vpop.f32.mrf.mxu1 }
 0x168   : > { %v1807_v21 = vadd.f32 %v5911_v42, %v7541_v7 }
 0x169   : > { %v6345_v60 = vpop.f32.mrf.mxu0  ;;  %v5913_v8 = vpop.f32.mrf.mxu1 }
 0x16a   : > { %v5914_v9 = vadd.f32 %v5913_v8, %v5912_v14  ;;  %v7617_v10 = vadd.f32 %v6345_v60, %v1807_v21 }
 0x16b   : > { %v1911_v16 = vpop.f32.mrf.mxu0  ;;  %v5915_v45 = vpop.f32.mrf.mxu1 }
 0x16c   : > { %v7619_v18 = vadd.f32 %v1911_v16, %v1799_v37  ;;  %v1810_v0 = vadd.f32 %v5914_v9, %v7549_v13  ;;  %v1864_v16 = vadd.f32 %v7585_v19, %v7517_v34 }
 0x16d   : > { %v6346_v22 = vpop.f32.mrf.mxu0  ;;  %v5916_v24 = vpop.f32.mrf.mxu1 }
 0x16e   : > { %v5917_v25 = vadd.f32 %v5916_v24, %v5915_v45  ;;  %v7622_v49 = vadd.f32 %v6346_v22, %v1810_v0 }
 0x16f   : > { %v1914_v29 = vpop.f32.mrf.mxu0  ;;  %v5918_v6 = vpop.f32.mrf.mxu1 }
 0x170   : > { %v7624_v3 = vadd.f32 %v1914_v29, %v1802_v52  ;;  %v1815_v35 = vadd.f32 %v5917_v25, %v7557_v20 }
 0x171   : > { %v6349_v7 = vpop.f32.mrf.mxu0  ;;  %v5919_v33 = vpop.f32.mrf.mxu1 }
 0x172   : > { %v5920_v28 = vadd.f32 %v5919_v33, %v5918_v6 }
 0x173   : > { %v1927_v61 = vpop.f32.mrf.mxu0  ;;  %v5921_v50 = vpop.f32.mrf.mxu1 }
 0x174   : > { %v7627_v55 = vadd.f32 %v1927_v61, %v1815_v35  ;;  %v1818_v13 = vadd.f32 %v5920_v28, %v7565_v2 }
 0x175   : > { %v6350_v56 = vpop.f32.mrf.mxu0  ;;  %v5922_v36 = vpop.f32.mrf.mxu1 }
 0x176   : > { %v5923_v37 = vadd.f32 %v5922_v36, %v5921_v50 }
 0x177   : > { %v1930_v39 = vpop.f32.mrf.mxu0  ;;  %v5924_v23 = vpop.f32.mrf.mxu1 }
 0x178   : > { %v7630_v48 = vadd.f32 %v1930_v39, %v1818_v13  ;;  %v1823_v47 = vadd.f32 %v5923_v37, %v7573_v38  ;;  %v7643_v38 = vld [vmem:[%s8397_s3] ss:$0 sm:$0xff]  ;;  %v1872_v13 = vadd.f32 %v7577_v59, %v7530_v63 }
 0x179   : > { %v5961_v52 = vpop.f32.mrf.mxu0  ;;  %v5925_v54 = vpop.f32.mrf.mxu1 }
 0x17a   : > { %v7633_v20 = vadd.f32 %v6349_v7, %v1823_v47  ;;  %v5926_v42 = vadd.f32 %v5925_v54, %v5924_v23 }
 0x17b   : > { %v5962_v14 = vpop.f32.mrf.mxu0  ;;  %v6369_v60 = vpop.f32.mrf.mxu1 }
 0x17c   : > { %v5963_v21 = vadd.f32 %v5962_v14, %v5961_v52  ;;  %v1826_v8 = vadd.f32 %v5926_v42, %v7583_v51  ;;  %v1867_v51 = vadd.f32 %v7594_v30, %v7522_v57  ;;  %v1875_v14 = vadd.f32 %v7589_v27, %v7538_v15 }
 0x17d   : > { %v5964_v9 = vpop.f32.mrf.mxu0  ;;  %v2482_v2 = vpop.f32.mrf.mxu1 }
 0x17e   : > { %v7638_v45 = vadd.f32 %v6350_v56, %v1826_v8  ;;  %v2483_v0 = vadd.f32 %v5963_v21, %v2482_v2 }
 0x17f   : > { %v5965_v22 = vpop.f32.mrf.mxu0  ;;  %v6370_v25 = vpop.f32.mrf.mxu1 }
 0x180   : > { %v5966_v24 = vadd.f32 %v5965_v22, %v5964_v9  ;;  %v2561_v29 = vadd.f32 %v2483_v0, %v1864_v16  ;;  %v2957_v16 = vld [vmem:[#allocation2] sm:$0xf] }
 0x181   : > { %v5967_v6 = vpop.f32.mrf.mxu0  ;;  %v2485_v7 = vpop.f32.mrf.mxu1 }
 0x182   : > { %v2588_v35 = vadd.f32 %v7643_v38, %v2561_v29  ;;  %v2486_v34 = vadd.f32 %v5966_v24, %v2485_v7 }
 0x183   : > { %v5968_v19 = vpop.f32.mrf.mxu0  ;;  %v7648_v28 = vpop.f32.mrf.mxu1 }
 0x184   : > { %v5969_v33 = vadd.f32 %v5968_v19, %v5967_v6  ;;  %v2608_v61 = vmax.f32 %v2588_v35, 0.0  ;;  %v2562_v50 = vadd.f32 %v2486_v34, %v1867_v51 }
 0x185   : > { %v5970_v56 = vpop.f32.mrf.mxu0  ;;  %v2498_v30 = vpop.f32.mrf.mxu1 }
 0x186   : > { %v2491_v36 = vadd.f32 %v6369_v60, %v5969_v33  ;;  %v5737_v37 = vpack.c.bf16 %v2608_v61, %v2608_v61  ;;  %v2589_v39 = vadd.f32 %v7643_v38, %v2562_v50 }
 0x187   : > { %v5971_v23 = vpop.f32.mrf.mxu0  ;;  %v7661_v29 = vpop.f32.mrf.mxu1 }
 0x188   : > { %v2563_v47 = vadd.f32 %v2491_v36, %v1872_v13  ;;  %v5972_v57 = vadd.f32 %v5971_v23, %v5970_v56  ;;  %v2756_v52 = vshrl.u32 %v5737_v37, 16  ;;  %v2609_v54 = vmax.f32 %v2589_v39, 0.0  ;;  %v2961_v56 = vld [vmem:[#allocation2 + $0x8] sm:$0x1] }
 0x189   : > { %v5973_v42 = vpop.f32.mrf.mxu0  ;;  %v2759_v63 = vshll.u32 %v5737_v37, 16 }
 0x18a   : > { %v2590_v21 = vadd.f32 %v7643_v38, %v2563_v47  ;;  %v2494_v8 = vadd.f32 %v6370_v25, %v5972_v57  ;;  %v2758_v9 = vrot.slane %v2756_v52, 7  ;;  %v5738_v59 = vpack.c.bf16 %v2609_v54, %v2609_v54 }
 0x18b   : > { %v5974_v60 = vpop.f32.mrf.mxu0  ;;  %v1880_v25 = vadd.f32 %v7599_v43, %v7546_v26  ;;  %v2501_v43 = vpop.f32.mrf.mxu1 }
 0x18c   : > { %v2610_v0 = vmax.f32 %v2590_v21, 0.0  ;;  %v2564_v22 = vadd.f32 %v2494_v8, %v1875_v14  ;;  %v5975_v24 = vadd.f32 %v5974_v60, %v5973_v42  ;;  %v2761_v6 = vor.u32 %v2759_v63, %v2758_v9  ;;  %v2964_v63 = vld [vmem:[#allocation2 + $0xc] sm:$0xf] }
 0x18d   : > { %v2764_v15 = vshrl.u32 %v5738_v59, 16  ;;  %v5976_v27 = vpop.f32.mrf.mxu0  ;;  %v2767_v33 = vshll.u32 %v5738_v59, 16  ;;  %v2762_v37 = vrot.slane %v2758_v9, 4  ;;  %v1883_v14 = vadd.f32 %v7604_v46, %v7554_v58 }
 0x18e   : > { %v5739_v7 = vpack.c.bf16 %v2610_v0, %v2610_v0  ;;  %v2591_v51 = vadd.f32 %v7643_v38, %v2564_v22  ;;  %v2499_v35 = vadd.f32 %v5975_v24, %v2498_v30  ;;  %v2958_v34 = vsel %vm7657_vm12, %v2761_v6, %v2957_v16  ;;  %v7680_v0 = vpop.f32.mrf.mxu1 }
 0x18f   : > { %v2766_v19 = vrot.slane %v2764_v15, 7  ;;  %v5977_v61 = vpop.f32.mrf.mxu0  ;;  %2959 = vst [vmem:[#allocation2] sm:$0xf] %v2958_v34 }
 0x190   : > { %v2773_v13 = vshrl.u32 %v5739_v7, 16  ;;  %v2611_v36 = vmax.f32 %v2591_v51, 0.0  ;;  %v2565_v26 = vadd.f32 %v2499_v35, %v1880_v25  ;;  %v5978_v47 = vadd.f32 %v5977_v61, %v5976_v27 }
 0x191   : > { %v2769_v39 = vor.u32 %v2767_v33, %v2766_v19  ;;  %v2771_v23 = vrot.slane %v2766_v19, 4  ;;  %v5979_v57 = vpop.f32.mrf.mxu0  ;;  %v2776_v52 = vshll.u32 %v5739_v7, 16  ;;  %v1888_v25 = vadd.f32 %v7596_v32, %v7562_v40  ;;  %v2968_v7 = vld [vmem:[#allocation2 + $0x14] sm:$0x1] }
 0x192   : > { %v2775_v30 = vrot.slane %v2773_v13, 7  ;;  %v5740_v54 = vpack.c.bf16 %v2611_v36, %v2611_v36  ;;  %v2592_v42 = vadd.f32 %v7643_v38, %v2565_v26  ;;  %v2502_v9 = vadd.f32 %v5978_v47, %v2501_v43  ;;  %v2514_v36 = vpop.f32.mrf.mxu1 }
 0x193   : > { %v2770_v21 = vsel %vm7669_vm14, %v2762_v37, %v2769_v39  ;;  %v2962_v8 = vsel %vm7453_vm8, %v2771_v23, %v2961_v56  ;;  %v5980_v59 = vpop.f32.mrf.mxu0  ;;  %v1891_v40 = vadd.f32 %v7601_v44, %v7570_v1 }
 0x194   : > { %2960 = vst [vmem:[#allocation2 + $0x4] sm:$0xf] %v2770_v21  ;;  %2963 = vst [vmem:[#allocation2 + $0x8] sm:$0x1] %v2962_v8  ;;  %v2778_v60 = vor.u32 %v2776_v52, %v2775_v30  ;;  %v2781_v16 = vshrl.u32 %v5740_v54, 16  ;;  %v2612_v22 = vmax.f32 %v2592_v42, 0.0  ;;  %v2566_v24 = vadd.f32 %v2502_v9, %v1883_v14  ;;  %v7696_v1 = vpop.f32.mrf.mxu1 }
 0x195   : > { %v5981_v6 = vadd.f32 %v5980_v59, %v5979_v57  ;;  %v5982_v15 = vpop.f32.mrf.mxu0  ;;  %v2784_v27 = vshll.u32 %v5740_v54, 16  ;;  %v2779_v33 = vrot.slane %v2775_v30, 4  ;;  %v2971_v42 = vld [vmem:[#allocation2 + $0x18] sm:$0xf]  ;;  %v1896_v9 = vadd.f32 %v7609_v62, %v7580_v17 }
 0x196   : > { %v2965_v58 = vsel %vm7657_vm12, %v2778_v60, %v2964_v63  ;;  %v2783_v46 = vrot.slane %v2781_v16, 7  ;;  %v5741_v51 = vpack.c.bf16 %v2612_v22, %v2612_v22  ;;  %v2593_v35 = vadd.f32 %v7643_v38, %v2566_v24 }
 0x197   : > { %2966 = vst [vmem:[#allocation2 + $0xc] sm:$0xf] %v2965_v58  ;;  %v2507_v34 = vadd.f32 %v7648_v28, %v5981_v6  ;;  %v5983_v19 = vpop.f32.mrf.mxu0 }
 0x198   : > { %v2786_v61 = vor.u32 %v2784_v27, %v2783_v46  ;;  %v2788_v56 = vrot.slane %v2783_v46, 4  ;;  %v5984_v13 = vadd.f32 %v5983_v19, %v5982_v15  ;;  %v2790_v26 = vshrl.u32 %v5741_v51, 16  ;;  %v2975_v15 = vld [vmem:[#allocation2 + $0x20] sm:$0x1] }
 0x199   : > { %v2613_v43 = vmax.f32 %v2593_v35, 0.0  ;;  %v2567_v37 = vadd.f32 %v2507_v34, %v1888_v25  ;;  %v5985_v39 = vpop.f32.mrf.mxu0  ;;  %v2793_v57 = vshll.u32 %v5741_v51, 16 }
 0x19a   : > { %v2787_v32 = vsel %vm7669_vm14, %v2779_v33, %v2786_v61  ;;  %v2969_v23 = vsel %vm7453_vm8, %v2788_v56, %v2968_v7  ;;  %v2510_v28 = vadd.f32 %v7661_v29, %v5984_v13  ;;  %v2792_v47 = vrot.slane %v2790_v26, 7  ;;  %v2517_v7 = vpop.f32.mrf.mxu1 }
 0x19b   : > { %2967 = vst [vmem:[#allocation2 + $0x10] sm:$0xf] %v2787_v32  ;;  %2970 = vst [vmem:[#allocation2 + $0x14] sm:$0x1] %v2969_v23  ;;  %v5742_v30 = vpack.c.bf16 %v2613_v43, %v2613_v43  ;;  %v2594_v52 = vadd.f32 %v7643_v38, %v2567_v37  ;;  %v5986_v54 = vpop.f32.mrf.mxu0  ;;  %v1899_v61 = vadd.f32 %v7614_v12, %v7592_v31  ;;  %v2978_v23 = vld [vmem:[#allocation2 + $0x24] sm:$0xf] }
 0x19c   : > { %v2568_v14 = vadd.f32 %v2510_v28, %v1891_v40  ;;  %v5987_v21 = vadd.f32 %v5986_v54, %v5985_v39  ;;  %v2795_v44 = vor.u32 %v2793_v57, %v2792_v47  ;;  %v2796_v51 = vrot.slane %v2792_v47, 4  ;;  %v7710_v43 = vpop.f32.mrf.mxu1 }
 0x19d   : > { %v2798_v8 = vshrl.u32 %v5742_v30, 16  ;;  %v5988_v63 = vpop.f32.mrf.mxu0  ;;  %v2614_v29 = vmax.f32 %v2594_v52, 0.0  ;;  %v2801_v24 = vshll.u32 %v5742_v30, 16 }
 0x19e   : > { %v2595_v59 = vadd.f32 %v7643_v38, %v2568_v14  ;;  %v2515_v60 = vadd.f32 %v5987_v21, %v2514_v36  ;;  %v2972_v16 = vsel %vm7657_vm12, %v2795_v44, %v2971_v42  ;;  %v2982_v42 = vld [vmem:[#allocation2 + $0x2c] sm:$0x1] }
 0x19f   : > { %v2800_v22 = vrot.slane %v2798_v8, 7  ;;  %v5989_v6 = vpop.f32.mrf.mxu0  ;;  %2973 = vst [vmem:[#allocation2 + $0x18] sm:$0xf] %v2972_v16  ;;  %v5743_v58 = vpack.c.bf16 %v2614_v29, %v2614_v29  ;;  %v2530_v8 = vpop.f32.mrf.mxu1 }
 0x1a0   : > { %v2615_v46 = vmax.f32 %v2595_v59, 0.0  ;;  %v2569_v27 = vadd.f32 %v2515_v60, %v1896_v9  ;;  %v5990_v25 = vadd.f32 %v5989_v6, %v5988_v63 }
 0x1a1   : > { %v2803_v35 = vor.u32 %v2801_v24, %v2800_v22  ;;  %v2805_v17 = vrot.slane %v2800_v22, 4  ;;  %v5991_v62 = vpop.f32.mrf.mxu0  ;;  %v2807_v34 = vshrl.u32 %v5743_v58, 16  ;;  %v2810_v39 = vshll.u32 %v5743_v58, 16 }
 0x1a2   : > { %v5744_v19 = vpack.c.bf16 %v2615_v46, %v2615_v46  ;;  %v2596_v33 = vadd.f32 %v7643_v38, %v2569_v27  ;;  %v2518_v36 = vadd.f32 %v5990_v25, %v2517_v7  ;;  %v2985_v46 = vld [vmem:[#allocation2 + $0x30] sm:$0xf] }
 0x1a3   : > { %v2804_v56 = vsel %vm7669_vm14, %v2796_v51, %v2803_v35  ;;  %v2976_v13 = vsel %vm7453_vm8, %v2805_v17, %v2975_v15  ;;  %v5992_v26 = vpop.f32.mrf.mxu0  ;;  %v2809_v37 = vrot.slane %v2807_v34, 7 }
 0x1a4   : > { %2974 = vst [vmem:[#allocation2 + $0x1c] sm:$0xf] %v2804_v56  ;;  %2977 = vst [vmem:[#allocation2 + $0x20] sm:$0x1] %v2976_v13  ;;  %v2815_v40 = vshrl.u32 %v5744_v19, 16  ;;  %v2616_v32 = vmax.f32 %v2596_v33, 0.0  ;;  %v2570_v28 = vadd.f32 %v2518_v36, %v1899_v61  ;;  %v5993_v47 = vadd.f32 %v5992_v26, %v5991_v62 }
 0x1a5   : > { %v5994_v31 = vpop.f32.mrf.mxu0  ;;  %v2812_v12 = vor.u32 %v2810_v39, %v2809_v37  ;;  %v2818_v30 = vshll.u32 %v5744_v19, 16  ;;  %v2813_v54 = vrot.slane %v2809_v37, 4 }
 0x1a6   : > { %v2817_v57 = vrot.slane %v2815_v40, 7  ;;  %v5745_v52 = vpack.c.bf16 %v2616_v32, %v2616_v32  ;;  %v2597_v14 = vadd.f32 %v7643_v38, %v2570_v28  ;;  %v2523_v21 = vadd.f32 %v7680_v0, %v5993_v47  ;;  %v2989_v40 = vld [vmem:[#allocation2 + $0x38] sm:$0x1] }
 0x1a7   : > { %v5995_v44 = vpop.f32.mrf.mxu0  ;;  %v2979_v63 = vsel %vm7657_vm12, %v2812_v12, %v2978_v23 }
 0x1a8   : > { %v2820_v9 = vor.u32 %v2818_v30, %v2817_v57  ;;  %v2822_v29 = vrot.slane %v2817_v57, 4  ;;  %v2824_v59 = vshrl.u32 %v5745_v52, 16  ;;  %2980 = vst [vmem:[#allocation2 + $0x24] sm:$0xf] %v2979_v63  ;;  %v2617_v60 = vmax.f32 %v2597_v14, 0.0 }
 0x1a9   : > { %v2571_v16 = vadd.f32 %v2523_v21, %v7607_v11  ;;  %v5996_v22 = vadd.f32 %v5995_v44, %v5994_v31  ;;  %v5997_v24 = vpop.f32.mrf.mxu0  ;;  %v2827_v58 = vshll.u32 %v5745_v52, 16  ;;  %v7723_v11 = vpop.f32.mrf.mxu1 }
 0x1aa   : > { %v2821_v6 = vsel %vm7669_vm14, %v2813_v54, %v2820_v9  ;;  %v2983_v0 = vsel %vm7453_vm8, %v2822_v29, %v2982_v42  ;;  %v2826_v15 = vrot.slane %v2824_v59, 7  ;;  %v5746_v27 = vpack.c.bf16 %v2617_v60, %v2617_v60 }
 0x1ab   : > { %2981 = vst [vmem:[#allocation2 + $0x28] sm:$0xf] %v2821_v6  ;;  %2984 = vst [vmem:[#allocation2 + $0x2c] sm:$0x1] %v2983_v0  ;;  %v2598_v25 = vadd.f32 %v7643_v38, %v2571_v16  ;;  %v2526_v7 = vadd.f32 %v7696_v1, %v5996_v22  ;;  %v5998_v51 = vpop.f32.mrf.mxu0  ;;  %v2533_v39 = vpop.f32.mrf.mxu1 }
 0x1ac   : > { %v2829_v35 = vor.u32 %v2827_v58, %v2826_v15  ;;  %v5999_v17 = vadd.f32 %v5998_v51, %v5997_v24  ;;  %v2832_v62 = vshrl.u32 %v5746_v27, 16  ;;  %v2835_v36 = vshll.u32 %v5746_v27, 16 }
 0x1ad   : > { %v2618_v34 = vmax.f32 %v2598_v25, 0.0  ;;  %v2572_v19 = vadd.f32 %v2526_v7, %v7612_v5  ;;  %v6000_v33 = vpop.f32.mrf.mxu0  ;;  %v2830_v28 = vrot.slane %v2826_v15, 4 }
 0x1ae   : > { %v2986_v61 = vsel %vm7657_vm12, %v2829_v35, %v2985_v46  ;;  %v2531_v56 = vadd.f32 %v5999_v17, %v2530_v8  ;;  %v2834_v13 = vrot.slane %v2832_v62, 7  ;;  %v2992_v8 = vld [vmem:[#allocation2 + $0x3c] sm:$0xf]  ;;  %v2996_v35 = vld [vmem:[#allocation2 + $0x44] sm:$0x1] }
 0x1af   : > { %2987 = vst [vmem:[#allocation2 + $0x30] sm:$0xf] %v2986_v61  ;;  %v5747_v26 = vpack.c.bf16 %v2618_v34, %v2618_v34  ;;  %v2599_v1 = vadd.f32 %v7643_v38, %v2572_v19  ;;  %v6001_v37 = vpop.f32.mrf.mxu0 }
 0x1b0   : > { %v2573_v32 = vadd.f32 %v2531_v56, %v7619_v18  ;;  %v6002_v23 = vadd.f32 %v6001_v37, %v6000_v33  ;;  %v2837_v47 = vor.u32 %v2835_v36, %v2834_v13  ;;  %v2839_v5 = vrot.slane %v2834_v13, 4  ;;  %v7735_v18 = vpop.f32.mrf.mxu1  ;;  %v2999_v36 = vld [vmem:[#allocation2 + $0x48] sm:$0xf] }
 0x1b1   : > { %v2841_v31 = vshrl.u32 %v5747_v26, 16  ;;  %v6003_v12 = vpop.f32.mrf.mxu0  ;;  %v2619_v57 = vmax.f32 %v2599_v1, 0.0  ;;  %v2844_v21 = vshll.u32 %v5747_v26, 16 }
 0x1b2   : > { %v2600_v30 = vadd.f32 %v7643_v38, %v2573_v32  ;;  %v2534_v52 = vadd.f32 %v6002_v23, %v2533_v39  ;;  %v2838_v54 = vsel %vm7669_vm14, %v2830_v28, %v2837_v47  ;;  %v2990_v42 = vsel %vm7453_vm8, %v2839_v5, %v2989_v40  ;;  %v2546_v46 = vpop.f32.mrf.mxu1 }
 0x1b3   : > { %v2843_v14 = vrot.slane %v2841_v31, 7  ;;  %v6004_v44 = vpop.f32.mrf.mxu0  ;;  %2988 = vst [vmem:[#allocation2 + $0x34] sm:$0xf] %v2838_v54  ;;  %2991 = vst [vmem:[#allocation2 + $0x38] sm:$0x1] %v2990_v42  ;;  %v5748_v63 = vpack.c.bf16 %v2619_v57, %v2619_v57 }
 0x1b4   : > { %v2620_v9 = vmax.f32 %v2600_v30, 0.0  ;;  %v2574_v29 = vadd.f32 %v2534_v52, %v7624_v3  ;;  %v6005_v59 = vadd.f32 %v6004_v44, %v6003_v12  ;;  %v7745_v37 = vpop.f32.mrf.mxu1  ;;  %v3003_v42 = vld [vmem:[#allocation2 + $0x50] sm:$0x1] }
 0x1b5   : > { %v2846_v60 = vor.u32 %v2844_v21, %v2843_v14  ;;  %v6006_v16 = vpop.f32.mrf.mxu0  ;;  %v2849_v22 = vshrl.u32 %v5748_v63, 16  ;;  %v2852_v25 = vshll.u32 %v5748_v63, 16  ;;  %v2847_v3 = vrot.slane %v2843_v14, 4 }
 0x1b6   : > { %v5749_v24 = vpack.c.bf16 %v2620_v9, %v2620_v9  ;;  %v2601_v6 = vadd.f32 %v7643_v38, %v2574_v29  ;;  %v2539_v15 = vadd.f32 %v7710_v43, %v6005_v59  ;;  %v2549_v54 = vpop.f32.mrf.mxu1 }
 0x1b7   : > { %v2993_v0 = vsel %vm7657_vm12, %v2846_v60, %v2992_v8  ;;  %v6007_v58 = vpop.f32.mrf.mxu0  ;;  %v2851_v27 = vrot.slane %v2849_v22, 7 }
 0x1b8   : > { %2994 = vst [vmem:[#allocation2 + $0x3c] sm:$0xf] %v2993_v0  ;;  %v2858_v7 = vshrl.u32 %v5749_v24, 16  ;;  %v2621_v51 = vmax.f32 %v2601_v6, 0.0  ;;  %v2861_v17 = vshll.u32 %v5749_v24, 16  ;;  %v2575_v62 = vadd.f32 %v2539_v15, %v7617_v10 }
 0x1b9   : > { %v6008_v34 = vadd.f32 %v6007_v58, %v6006_v16  ;;  %v6009_v19 = vpop.f32.mrf.mxu0  ;;  %v2854_v33 = vor.u32 %v2852_v25, %v2851_v27  ;;  %v2856_v61 = vrot.slane %v2851_v27, 4  ;;  %v3006_v15 = vld [vmem:[#allocation2 + $0x54] sm:$0xf] }
 0x1ba   : > { %v2860_v56 = vrot.slane %v2858_v7, 7  ;;  %v5750_v13 = vpack.c.bf16 %v2621_v51, %v2621_v51  ;;  %v2602_v43 = vadd.f32 %v7643_v38, %v2575_v62 }
 0x1bb   : > { %v2542_v26 = vadd.f32 %v7723_v11, %v6008_v34  ;;  %v6010_v1 = vpop.f32.mrf.mxu0  ;;  %v2855_v39 = vsel %vm7669_vm14, %v2847_v3, %v2854_v33  ;;  %v2997_v10 = vsel %vm7453_vm8, %v2856_v61, %v2996_v35 }
 0x1bc   : > { %v2863_v40 = vor.u32 %v2861_v17, %v2860_v56  ;;  %2995 = vst [vmem:[#allocation2 + $0x40] sm:$0xf] %v2855_v39  ;;  %2998 = vst [vmem:[#allocation2 + $0x44] sm:$0x1] %v2997_v10  ;;  %v2866_v32 = vshrl.u32 %v5750_v13, 16  ;;  %v2622_v23 = vmax.f32 %v2602_v43, 0.0  ;;  %v6011_v5 = vadd.f32 %v6010_v1, %v6009_v19 }
 0x1bd   : > { %v2576_v28 = vadd.f32 %v2542_v26, %v7622_v49  ;;  %v6012_v47 = vpop.f32.mrf.mxu0  ;;  %v2869_v12 = vshll.u32 %v5750_v13, 16  ;;  %v2864_v44 = vrot.slane %v2860_v56, 4 }
 0x1be   : > { %v3000_v11 = vsel %vm7657_vm12, %v2863_v40, %v2999_v36  ;;  %v2868_v31 = vrot.slane %v2866_v32, 7  ;;  %v5751_v57 = vpack.c.bf16 %v2622_v23, %v2622_v23  ;;  %v2547_v14 = vadd.f32 %v6011_v5, %v2546_v46 }
 0x1bf   : > { %3001 = vst [vmem:[#allocation2 + $0x48] sm:$0xf] %v3000_v11  ;;  %v2603_v30 = vadd.f32 %v7643_v38, %v2576_v28  ;;  %v6013_v52 = vpop.f32.mrf.mxu0 }
 0x1c0   : > { %v6014_v21 = vadd.f32 %v6013_v52, %v6012_v47  ;;  %v2871_v8 = vor.u32 %v2869_v12, %v2868_v31  ;;  %v2873_v63 = vrot.slane %v2868_v31, 4  ;;  %v2875_v49 = vshrl.u32 %v5751_v57, 16 }
 0x1c1   : > { %v6015_v9 = vpop.f32.mrf.mxu0  ;;  %v2623_v29 = vmax.f32 %v2603_v30, 0.0  ;;  %v2577_v59 = vadd.f32 %v2547_v14, %v7627_v55  ;;  %v2878_v6 = vshll.u32 %v5751_v57, 16 }
 0x1c2   : > { %v2550_v60 = vadd.f32 %v6014_v21, %v2549_v54  ;;  %v2872_v16 = vsel %vm7669_vm14, %v2864_v44, %v2871_v8  ;;  %v3004_v22 = vsel %vm7453_vm8, %v2873_v63, %v3003_v42  ;;  %v2877_v24 = vrot.slane %v2875_v49, 7  ;;  %v3017_v42 = vld [vmem:[#allocation2 + $0x68] sm:$0x1] }
 0x1c3   : > { %v6016_v0 = vpop.f32.mrf.mxu0  ;;  %3002 = vst [vmem:[#allocation2 + $0x4c] sm:$0xf] %v2872_v16  ;;  %3005 = vst [vmem:[#allocation2 + $0x50] sm:$0x1] %v3004_v22  ;;  %v5752_v58 = vpack.c.bf16 %v2623_v29, %v2623_v29  ;;  %v2604_v46 = vadd.f32 %v7643_v38, %v2577_v59 }
 0x1c4   : > { %v2578_v27 = vadd.f32 %v2550_v60, %v7630_v48  ;;  %v6017_v25 = vadd.f32 %v6016_v0, %v6015_v9  ;;  %v2880_v55 = vor.u32 %v2878_v6, %v2877_v24  ;;  %v3010_v48 = vld [vmem:[#allocation2 + $0x5c] sm:$0x1]  ;;  %v2881_v43 = vrot.slane %v2877_v24, 4  ;;  %v3024_v0 = vld [vmem:[#allocation2 + $0x74] sm:$0x1] }
 0x1c5   : > { %v6018_v7 = vpop.f32.mrf.mxu0  ;;  %v2883_v51 = vshrl.u32 %v5752_v58, 16  ;;  %v2624_v3 = vmax.f32 %v2604_v46, 0.0  ;;  %v2886_v62 = vshll.u32 %v5752_v58, 16 }
 0x1c6   : > { %v2605_v35 = vadd.f32 %v7643_v38, %v2578_v27  ;;  %v3007_v17 = vsel %vm7657_vm12, %v2880_v55, %v3006_v15  ;;  %v2555_v34 = vadd.f32 %v7735_v18, %v6017_v25 }
 0x1c7   : > { %v6019_v19 = vpop.f32.mrf.mxu0  ;;  %3008 = vst [vmem:[#allocation2 + $0x54] sm:$0xf] %v3007_v17  ;;  %v2885_v33 = vrot.slane %v2883_v51, 7  ;;  %v5753_v61 = vpack.c.bf16 %v2624_v3, %v2624_v3 }
 0x1c8   : > { %v2625_v56 = vmax.f32 %v2605_v35, 0.0  ;;  %v6020_v13 = vadd.f32 %v6019_v19, %v6018_v7  ;;  %v2579_v36 = vadd.f32 %v2555_v34, %v7633_v20  ;;  %v3013_v20 = vld [vmem:[#allocation2 + $0x60] sm:$0xf] }
 0x1c9   : > { %v2888_v26 = vor.u32 %v2886_v62, %v2885_v33  ;;  %v2890_v1 = vrot.slane %v2885_v33, 4  ;;  %v2892_v39 = vshrl.u32 %v5753_v61, 16  ;;  %v2895_v47 = vshll.u32 %v5753_v61, 16 }
 0x1ca   : > { %v5754_v10 = vpack.c.bf16 %v2625_v56, %v2625_v56  ;;  %v2606_v40 = vadd.f32 %v7643_v38, %v2579_v36  ;;  %v2558_v32 = vadd.f32 %v7745_v37, %v6020_v13 }
 0x1cb   : > { %v2889_v18 = vsel %vm7669_vm14, %v2881_v43, %v2888_v26  ;;  %v3011_v23 = vsel %vm7453_vm8, %v2890_v1, %v3010_v48  ;;  %v2894_v28 = vrot.slane %v2892_v39, 7 }
 0x1cc   : > { %3009 = vst [vmem:[#allocation2 + $0x58] sm:$0xf] %v2889_v18  ;;  %3012 = vst [vmem:[#allocation2 + $0x5c] sm:$0x1] %v3011_v23  ;;  %v2900_v11 = vshrl.u32 %v5754_v10, 16  ;;  %v2626_v5 = vmax.f32 %v2606_v40, 0.0  ;;  %v2580_v31 = vadd.f32 %v2558_v32, %v7638_v45 }
 0x1cd   : > { %v2897_v12 = vor.u32 %v2895_v47, %v2894_v28  ;;  %v2903_v30 = vshll.u32 %v5754_v10, 16  ;;  %v2898_v14 = vrot.slane %v2894_v28, 4 }
 0x1ce   : > { %v2902_v57 = vrot.slane %v2900_v11, 7  ;;  %v5755_v52 = vpack.c.bf16 %v2626_v5, %v2626_v5  ;;  %v2607_v37 = vadd.f32 %v7643_v38, %v2580_v31  ;;  %v3020_v38 = vld [vmem:[#allocation2 + $0x6c] sm:$0xf] }
 0x1cf   : > { %v3014_v54 = vsel %vm7657_vm12, %v2897_v12, %v3013_v20 }
 0x1d0   : > { %3015 = vst [vmem:[#allocation2 + $0x60] sm:$0xf] %v3014_v54  ;;  %v2905_v21 = vor.u32 %v2903_v30, %v2902_v57  ;;  %v2907_v44 = vrot.slane %v2902_v57, 4  ;;  %v2909_v8 = vshrl.u32 %v5755_v52, 16  ;;  %v2627_v63 = vmax.f32 %v2607_v37, 0.0 }
 0x1d1   : > { %v2912_v29 = vshll.u32 %v5755_v52, 16 }
 0x1d2   : > { %v2906_v49 = vsel %vm7669_vm14, %v2898_v14, %v2905_v21  ;;  %v3018_v45 = vsel %vm7453_vm8, %v2907_v44, %v3017_v42  ;;  %v2911_v9 = vrot.slane %v2909_v8, 7  ;;  %v5756_v59 = vpack.c.bf16 %v2627_v63, %v2627_v63 }
 0x1d3   : > { %3016 = vst [vmem:[#allocation2 + $0x64] sm:$0xf] %v2906_v49  ;;  %3019 = vst [vmem:[#allocation2 + $0x68] sm:$0x1] %v3018_v45 }
 0x1d4   : > { %v2914_v60 = vor.u32 %v2912_v29, %v2911_v9  ;;  %v2917_v16 = vshrl.u32 %v5756_v59, 16  ;;  %v2920_v6 = vshll.u32 %v5756_v59, 16  ;;  %v2915_v15 = vrot.slane %v2911_v9, 4 }
 0x1d6   : > { %v3021_v22 = vsel %vm7657_vm12, %v2914_v60, %v3020_v38  ;;  %v2919_v24 = vrot.slane %v2917_v16, 7 }
 0x1d7   : > { %3022 = vst [vmem:[#allocation2 + $0x6c] sm:$0xf] %v3021_v22  ;;  %3030 = sbr.rel (%p5502_p7) target bundleno = 479 (0x1df), region = 44 }
 0x1d8   : > { %v2922_v58 = vor.u32 %v2920_v6, %v2919_v24  ;;  %v2924_v46 = vrot.slane %v2919_v24, 4 }
 0x1da   : > { %v2923_v27 = vsel %vm7669_vm14, %v2915_v15, %v2922_v58  ;;  %v3025_v25 = vsel %vm7453_vm8, %v2924_v46, %v3024_v0 }
 0x1db   : > { %3023 = vst [vmem:[#allocation2 + $0x70] sm:$0xf] %v2923_v27  ;;  %3026 = vst [vmem:[#allocation2 + $0x74] sm:$0x1] %v3025_v25 }
 0x1dc   : > { %v6830_v2 = vmov 0  }
 0x1dd   : > { %3031 = vst [vmem:[#allocation2] sm:$0xf] %v6830_v2  ;;  %3032 = vst [vmem:[#allocation2 + $0x4] sm:$0xf] %v6830_v2 }
 0x1de   : > { %3033 = vst [vmem:[#allocation2 + $0x8] sm:$0x1] %v6830_v2 }
 0x1df PF: > { %p5503_p8 = scmp.ne.s32.totalorder %s6812_s18, 1 }
 0x1e1   : > { %3037 = sbr.rel (%p5503_p8) target bundleno = 489 (0x1e9), region = 48 }
 0x1e6   : > { %v6831_v55 = vmov 0  }
 0x1e7   : > { %3039 = vst [vmem:[#allocation2 + $0x6c] sm:$0xf] %v6831_v55  ;;  %3040 = vst [vmem:[#allocation2 + $0x70] sm:$0xf] %v6831_v55 }
 0x1e8   : > { %3041 = vst [vmem:[#allocation2 + $0x74] sm:$0x1] %v6831_v55 }
 0x1e9 PF: > { %v6667_v4 = vld [vmem:[%s8396_s2 + $0x138] sm:$0xff]   ;;  %v6670_v51 = vld [vmem:[%s8396_s2 + $0x130] sm:$0xff]   ;;  %v6673_v17 = vld [vmem:[%s8396_s2 + $0x128] sm:$0xff]  }
 0x1ea   : > { %v6668_v50 = vld [vmem:[%s8396_s2 + $0xf8] sm:$0xff]   ;;  %6039 = vmatprep.subr.bf16.mxu1 %v6667_v4  ;;  %v6671_v3 = vld [vmem:[%s8396_s2 + $0xf0] sm:$0xff]   ;;  %v6674_v62 = vld [vmem:[%s8396_s2 + $0xe8] sm:$0xff]  }
 0x1eb   : > { %v6669_v7 = vld [vmem:[%s8396_s2 + $0x178] sm:$0xff]   ;;  %6040 = vmatpush3.bf16.msra.mxu1 %v6668_v50  ;;  %v6672_v35 = vld [vmem:[%s8396_s2 + $0x170] sm:$0xff]   ;;  %v6675_v34 = vld [vmem:[%s8396_s2 + $0x168] sm:$0xff]  }
 0x1ec   : > { %6387 = vmatprep.subr.bf16.mxu0 %v6669_v7  ;;  %6041 = vmatprep.subr.bf16.mxu1 %v6670_v51  ;;  %v6676_v19 = vld [vmem:[%s8396_s2 + $0x120] sm:$0xff]   ;;  %v6679_v56 = vld [vmem:[%s8396_s2 + $0x118] sm:$0xff]   ;;  %v6682_v36 = vld [vmem:[%s8396_s2 + $0x110] sm:$0xff]  }
 0x1ed   : > { %6388 = vmatpush3.bf16.msra.mxu0 %v6669_v7  ;;  %v6677_v33 = vld [vmem:[%s8396_s2 + $0xe0] sm:$0xff]   ;;  %v6681_v13 = vld [vmem:[%s8396_s2 + $0x158] sm:$0xff]   ;;  %v6684_v43 = vld [vmem:[%s8396_s2 + $0x150] sm:$0xff]  }
 0x1ee   : > { %6389 = vmatprep.subr.bf16.mxu0 %v6672_v35  ;;  %v6678_v61 = vld [vmem:[%s8396_s2 + $0x160] sm:$0xff]   ;;  %v6680_v48 = vld [vmem:[%s8396_s2 + $0xd8] sm:$0xff]   ;;  %v6683_v26 = vld [vmem:[%s8396_s2 + $0xd0] sm:$0xff]  }
 0x1ef   : > { %6042 = vmatpush3.bf16.msra.mxu1 %v6671_v3  ;;  %v6685_v1 = vld [vmem:[%s8396_s2 + $0x108] sm:$0xff]   ;;  %v6688_v40 = vld [vmem:[%s8396_s2 + $0x100] sm:$0xff]   ;;  %v3045_v18 = vld [vmem:[#allocation2 + $0x10] sm:$0xf] }
 0x1f0   : > { %6043 = vmatprep.subr.bf16.mxu1 %v6673_v17  ;;  %v6686_v39 = vld [vmem:[%s8396_s2 + $0xc8] sm:$0xff]   ;;  %v6689_v28 = vld [vmem:[%s8396_s2 + $0xc0] sm:$0xff]   ;;  %3065 = vst [vmem:[#allocation4 + $0x24] sm:$0xf] %v3045_v18  ;;  %v3086_v47 = vld [vmem:[#allocation2 + $0x10] sm:$0xf] }
 0x1f1   : > { %6390 = vmatpush3.bf16.msra.mxu0 %v6672_v35  ;;  %v6687_v10 = vld [vmem:[%s8396_s2 + $0x148] sm:$0xff]   ;;  %v3087_v20 = vld [vmem:[#allocation2 + $0x14] sm:$0x1]  ;;  %v6690_v31 = vld [vmem:[%s8396_s2 + $0x140] sm:$0xff]   ;;  %v3146_v12 = vshll.u32 %v3086_v47, 16  ;;  %v3150_v57 = vshrl.u32 %v3086_v47, 16 }
 0x1f2   : > { %6391 = vmatprep.subr.bf16.mxu0 %v6675_v34  ;;  %v3044_v32 = vld [vmem:[#allocation2 + $0xc] sm:$0xf]  ;;  %v3156_v30 = vshll.u32 %v3087_v20, 16  ;;  %v6694_v21 = vld [vmem:[%s8396_s2 + $0x78] sm:$0xff]   ;;  %v3396_v44 = vld [vmem:[#allocation2 + $0x10] sm:$0xf] }
 0x1f3   : > { %6044 = vmatpush3.bf16.msra.mxu1 %v6674_v62  ;;  %v3085_v23 = vld [vmem:[#allocation2 + $0xc] sm:$0xf]  ;;  %3064 = vst [vmem:[#allocation4 + $0x18] sm:$0xf] %v3044_v32  ;;  %v3148_v42 = vrot.slane %v3146_v12, 5  ;;  %v3152_v14 = vrot.slane %v3150_v57, 4 }
 0x1f4   : > { %6045 = vmatprep.subr.bf16.mxu1 %v6676_v19  ;;  %v3137_v11 = vshrl.u32 %v3085_v23, 16  ;;  %v3140_v5 = vshll.u32 %v3085_v23, 16  ;;  %v3395_v54 = vld [vmem:[#allocation2 + $0xc] sm:$0xe]  ;;  %v3397_v49 = vld [vmem:[#allocation2 + $0x14] sm:$0x1] }
 0x1f5   : > { %6392 = vmatpush3.bf16.msra.mxu0 %v6675_v34  ;;  %v5505_v8 = vrot.slane %v3395_v54, 9  ;;  %v3461_v45 = vrot.slane %v3396_v44, 5  ;;  %v3153_v9 = vor.u32 %v3152_v14, %v3148_v42  ;;  %v3158_v29 = vrot.slane %v3156_v30, 5  ;;  %v3398_v59 = vld [vmem:[#allocation2 + $0x18] sm:$0xe]  ;;  %v6701_v54 = vld [vmem:[%s8396_s2 + $0x70] sm:$0xff]  }
 0x1f6   : > { %6393 = vmatprep.subr.bf16.mxu0 %v6678_v61  ;;  %v3139_v52 = vrot.slane %v3137_v11, 4  ;;  %v3142_v37 = vrot.slane %v3140_v5, 5  ;;  %v3464_v38 = vrot.slane %v3397_v49, 5  ;;  %v3399_v24 = vld [vmem:[#allocation2 + $0x1c] sm:$0xf]  ;;  %v5506_v15 = vrot.slane %v3398_v59, 9 }
 0x1f7   : > { %6046 = vmatpush3.bf16.msra.mxu1 %v6677_v33  ;;  %v3462_v16 = vsel %vm6997_vm4, %v5505_v8, %v3461_v45  ;;  %v3463_v22 = vrot.slane %v3461_v45, 4  ;;  %v3400_v6 = vld [vmem:[#allocation2 + $0x20] sm:$0x1]  ;;  %v3154_v0 = vrot.slane %v3153_v9, 4  ;;  %v3468_v58 = vrot.slane %v3399_v24, 5 }
 0x1f8   : > { %6047 = vmatprep.subr.bf16.mxu1 %v6679_v56  ;;  %v3143_v63 = vor.u32 %v3142_v37, %v3139_v52  ;;  %3544 = vst [vmem:[#allocation4 + $0x20] sm:$0xf] %v3462_v16  ;;  %v3471_v46 = vrot.slane %v3400_v6, 5  ;;  %v3046_v27 = vld [vmem:[#allocation2 + $0x18] sm:$0xf] }
 0x1f9   : > { %6394 = vmatpush3.bf16.msra.mxu0 %v6678_v61  ;;  %v3465_v2 = vsel %vm6997_vm4, %v3463_v22, %v3464_v38  ;;  %v3047_v55 = vld [vmem:[#allocation2 + $0x1c] sm:$0xf]  ;;  %3066 = vst [vmem:[#allocation4 + $0x30] sm:$0xf] %v3046_v27  ;;  %v3088_v4 = vld [vmem:[#allocation2 + $0x18] sm:$0xf]  ;;  %v3159_v7 = vsel %vm7009_vm5, %v3154_v0, %v3158_v29  ;;  %v3469_v51 = vsel %vm6997_vm4, %v5506_v15, %v3468_v58 }
 0x1fa   : > { %6395 = vmatprep.subr.bf16.mxu0 %v6681_v13  ;;  %v3144_v60 = vrot.slane %v3143_v63, 4  ;;  %v3089_v50 = vld [vmem:[#allocation2 + $0x1c] sm:$0xf]  ;;  %3545 = vst [vmem:[#allocation4 + $0x2c] sm:$0xf] %v3465_v2  ;;  %v3470_v3 = vrot.slane %v3468_v58, 4 }
 0x1fb   : > { %6048 = vmatpush3.bf16.msra.mxu1 %v6680_v48  ;;  %3067 = vst [vmem:[#allocation4 + $0x3c] sm:$0xf] %v3047_v55  ;;  %v3090_v35 = vld [vmem:[#allocation2 + $0x20] sm:$0x1]  ;;  %v3161_v17 = vshrl.u32 %v3088_v4, 16  ;;  %v3164_v62 = vshll.u32 %v3088_v4, 16 }
 0x1fc   : > { %6049 = vmatprep.subr.bf16.mxu1 %v6682_v36  ;;  %v3149_v25 = vsel %vm7009_vm5, %v3144_v60, %v3148_v42  ;;  %3375 = vst [vmem:[#allocation4 + $0x28] sm:$0xf] %v3159_v7  ;;  %3546 = vst [vmem:[#allocation4 + $0x38] sm:$0xf] %v3469_v51  ;;  %v3170_v34 = vshll.u32 %v3089_v50, 16  ;;  %v3174_v19 = vshrl.u32 %v3089_v50, 16  ;;  %v3472_v33 = vsel %vm6997_vm4, %v3470_v3, %v3471_v46 }
 0x1fd   : > { %6396 = vmatpush3.bf16.msra.mxu0 %v6681_v13  ;;  %3374 = vst [vmem:[#allocation4 + $0x1c] sm:$0xf] %v3149_v25  ;;  %v3163_v61 = vrot.slane %v3161_v17, 4  ;;  %v3180_v56 = vshll.u32 %v3090_v35, 16  ;;  %3547 = vst [vmem:[#allocation4 + $0x44] sm:$0xf] %v3472_v33 }
 0x1fe   : > { %6397 = vmatprep.subr.bf16.mxu0 %v6684_v43  ;;  %v3166_v13 = vrot.slane %v3164_v62, 5  ;;  %v3172_v48 = vrot.slane %v3170_v34, 5  ;;  %v3176_v36 = vrot.slane %v3174_v19, 4  ;;  %v3093_v32 = vld [vmem:[#allocation2 + $0x2c] sm:$0x1]  ;;  %v6702_v63 = vld [vmem:[%s8396_s2 + $0x30] sm:$0xff]  }
 0x1ff   : > { %6050 = vmatpush3.bf16.msra.mxu1 %v6683_v26  ;;  %v3049_v26 = vld [vmem:[#allocation2 + $0x28] sm:$0xf]  ;;  %v3182_v47 = vrot.slane %v3180_v56, 5  ;;  %v3204_v5 = vshll.u32 %v3093_v32, 16  ;;  %v6691_v57 = vld [vmem:[#allocation4 + $0x18] ss:$12 sps:$4 sm:$0xff]  }
 0x200   : > { %6051 = vmatprep.subr.bf16.mxu1 %v6685_v1  ;;  %v3091_v1 = vld [vmem:[#allocation2 + $0x24] sm:$0xf]  ;;  %3069 = vst [vmem:[#allocation4 + $0x54] sm:$0xf] %v3049_v26  ;;  %v6706_v29 = vld [vmem:[%s8396_s2 + $0x68] sm:$0xff]  }
 0x201   : > { %6398 = vmatpush3.bf16.msra.mxu0 %v6684_v43  ;;  %v3048_v43 = vld [vmem:[#allocation2 + $0x24] sm:$0xf]  ;;  %v3185_v18 = vshrl.u32 %v3091_v1, 16  ;;  %v3188_v23 = vshll.u32 %v3091_v1, 16  ;;  %v3206_v45 = vrot.slane %v3204_v5, 5  ;;  %v6708_v25 = vld [vmem:[%s8396_s2 + $0x28] sm:$0xff]  }
 0x202   : > { %6399 = vmatprep.subr.bf16.mxu0 %v6687_v10  ;;  %3068 = vst [vmem:[#allocation4 + $0x48] sm:$0xf] %v3048_v43  ;;  %v3401_v38 = vld [vmem:[#allocation2 + $0x24] sm:$0xe]  ;;  %v3402_v59 = vld [vmem:[#allocation2 + $0x28] sm:$0xf] }
 0x203   : > { %6052 = vmatpush3.bf16.msra.mxu1 %v6686_v39  ;;  %v3092_v39 = vld [vmem:[#allocation2 + $0x28] sm:$0xf]  ;;  %v3187_v42 = vrot.slane %v3185_v18, 4  ;;  %v3190_v14 = vrot.slane %v3188_v23, 5  ;;  %v3403_v16 = vld [vmem:[#allocation2 + $0x2c] sm:$0x1] }
 0x204   : > { %6053 = vmatprep.subr.bf16.mxu1 %v6688_v40  ;;  %v3177_v40 = vor.u32 %v3176_v36, %v3172_v48  ;;  %v3194_v20 = vshll.u32 %v3092_v39, 16  ;;  %v3198_v11 = vshrl.u32 %v3092_v39, 16  ;;  %v7881_v30 = vld [vmem:[#allocation4 + $0x1c] ss:$12 sps:$4 sm:$0xff]   ;;  %v7890_v44 = vld [vmem:[#allocation4 + $0x38] ss:$12 sps:$4 sm:$0xff]  }
 0x205   : > { %6400 = vmatpush3.bf16.msra.mxu0 %v6687_v10  ;;  %v3167_v10 = vor.u32 %v3166_v13, %v3163_v61  ;;  %3999 = vmatprep.mubr.bf16.mxu1 %v7881_v30  ;;  %v3191_v9 = vor.u32 %v3190_v14, %v3187_v42  ;;  %v5507_v22 = vrot.slane %v3401_v38, 9  ;;  %v3475_v24 = vrot.slane %v3402_v59, 5  ;;  %v3404_v15 = vld [vmem:[#allocation2 + $0x30] sm:$0xe]  ;;  %v3405_v2 = vld [vmem:[#allocation2 + $0x34] sm:$0xf] }
 0x206   : > { %6401 = vmatprep.subr.bf16.mxu0 %v6690_v31  ;;  %v3178_v52 = vrot.slane %v3177_v40, 4  ;;  %v3200_v49 = vrot.slane %v3198_v11, 4  ;;  %v3478_v0 = vrot.slane %v3403_v16, 5  ;;  %v3406_v55 = vld [vmem:[#allocation2 + $0x38] sm:$0x1]  ;;  %v5508_v50 = vrot.slane %v3404_v15, 9 }
 0x207   : > { %6054 = vmatpush3.bf16.msra.mxu1 %v6689_v28  ;;  %v6696_v28 = vld [vmem:[%s8396_s2 + $0x38] sm:$0xff]   ;;  %v3168_v12 = vrot.slane %v3167_v10, 4  ;;  %v3192_v6 = vrot.slane %v3191_v9, 4  ;;  %v3476_v46 = vsel %vm6997_vm4, %v5507_v22, %v3475_v24  ;;  %v3477_v27 = vrot.slane %v3475_v24, 4  ;;  %v3050_v3 = vld [vmem:[#allocation2 + $0x30] sm:$0xf] }
 0x208   : > { %6119 = vmatprep.subr.bf16.mxu1 %v6694_v21  ;;  %v3196_v21 = vrot.slane %v3194_v20, 5  ;;  %v3183_v8 = vsel %vm7009_vm5, %v3178_v52, %v3182_v47  ;;  %3548 = vst [vmem:[#allocation4 + $0x50] sm:$0xf] %v3476_v46  ;;  %v3482_v7 = vrot.slane %v3405_v2, 5  ;;  %v3485_v51 = vrot.slane %v3406_v55, 5  ;;  %v6713_v35 = vld [vmem:[%s8396_s2 + $0x60] sm:$0xff]  }
 0x209   : > { %6402 = vmatpush3.bf16.msra.mxu0 %v6690_v31  ;;  %v7879_v31 = vld [vmem:[#allocation4 + $0x20] ss:$12 sps:$4 sm:$0xff]   ;;  %v3173_v37 = vsel %vm7009_vm5, %v3168_v12, %v3172_v48  ;;  %3377 = vst [vmem:[#allocation4 + $0x40] sm:$0xf] %v3183_v8  ;;  %v3479_v62 = vsel %vm6997_vm4, %v3477_v27, %v3478_v0  ;;  %v3051_v34 = vld [vmem:[#allocation2 + $0x34] sm:$0xf] }
 0x20a   : > { %6403 = vmatprep.mubr.bf16.mxu0 %v7879_v31  ;;  %3376 = vst [vmem:[#allocation4 + $0x34] sm:$0xf] %v3173_v37  ;;  %4000 = vmatmul.mubr.bf16.vlgmr.msra.gmra.mxu1 %v6691_v57  ;;  %v3201_v60 = vor.u32 %v3200_v49, %v3196_v21  ;;  %v3197_v4 = vsel %vm7009_vm5, %v3192_v6, %v3196_v21  ;;  %3070 = vst [vmem:[#allocation4 + $0x60] sm:$0xf] %v3050_v3  ;;  %v3094_v19 = vld [vmem:[#allocation2 + $0x30] sm:$0xf] }
 0x20b   : > { %6120 = vmatpush3.bf16.msra.mxu1 %v6696_v28  ;;  %3378 = vst [vmem:[#allocation4 + $0x4c] sm:$0xf] %v3197_v4  ;;  %v3095_v33 = vld [vmem:[#allocation2 + $0x34] sm:$0xf]  ;;  %3549 = vst [vmem:[#allocation4 + $0x5c] sm:$0xf] %v3479_v62  ;;  %v3483_v61 = vsel %vm6997_vm4, %v5508_v50, %v3482_v7 }
 0x20c   : > { %6404 = vmatmul.mubr.bf16.vlgmr.msra.gmra.mxu0 %v7890_v44  ;;  %6121 = vmatprep.subr.bf16.mxu1 %v6701_v54  ;;  %v3202_v58 = vrot.slane %v3201_v60, 4  ;;  %v3484_v56 = vrot.slane %v3482_v7, 4  ;;  %3071 = vst [vmem:[#allocation4 + $0x6c] sm:$0xf] %v3051_v34  ;;  %v3096_v13 = vld [vmem:[#allocation2 + $0x38] sm:$0x1] }
 0x20d   : > { %v3209_v48 = vshrl.u32 %v3094_v19, 16  ;;  %v3212_v36 = vshll.u32 %v3094_v19, 16  ;;  %v7919_v26 = vld [vmem:[#allocation4 + $0x30] ss:$12 sps:$4 sm:$0xff]   ;;  %3550 = vst [vmem:[#allocation4 + $0x68] sm:$0xf] %v3483_v61 }
 0x20e   : > { %v3207_v17 = vsel %vm7009_vm5, %v3202_v58, %v3206_v45  ;;  %v3218_v1 = vshll.u32 %v3095_v33, 16  ;;  %v3486_v39 = vsel %vm6997_vm4, %v3484_v56, %v3485_v51  ;;  %v3222_v32 = vshrl.u32 %v3095_v33, 16  ;;  %v6714_v18 = vld [vmem:[%s8396_s2 + $0x20] sm:$0xff]   ;;  %v6715_v11 = vld [vmem:[%s8396_s2 + $0xb8] sm:$0xff]   ;;  %v6716_v5 = vld [vmem:[%s8396_s2 + $0xb0] sm:$0xff]  }
 0x20f   : > { %6122 = vmatpush3.bf16.msra.mxu1 %v6702_v63  ;;  %3379 = vst [vmem:[#allocation4 + $0x58] sm:$0xf] %v3207_v17  ;;  %v3211_v10 = vrot.slane %v3209_v48, 4  ;;  %v3214_v40 = vrot.slane %v3212_v36, 5  ;;  %3551 = vst [vmem:[#allocation4 + $0x74] sm:$0xf] %v3486_v39  ;;  %6419 = vmatprep.subr.bf16.mxu0 %v6715_v11 }
 0x210   : > { %6123 = vmatprep.subr.bf16.mxu1 %v6706_v29  ;;  %v3220_v23 = vrot.slane %v3218_v1, 5  ;;  %v3228_v28 = vshll.u32 %v3096_v13, 16  ;;  %v3224_v20 = vrot.slane %v3222_v32, 4  ;;  %v7936_v37 = vld [vmem:[#allocation4 + $0x48] ss:$12 sps:$4 sm:$0xff]   ;;  %6420 = vmatpush3.bf16.msra.mxu0 %v6715_v11  ;;  %v6720_v49 = vld [vmem:[%s8396_s2 + $0x58] sm:$0xff]  }
 0x211   : > { %v7917_v43 = vld [vmem:[#allocation4 + $0x34] ss:$12 sps:$4 sm:$0xff]   ;;  %v3215_v47 = vor.u32 %v3214_v40, %v3211_v10  ;;  %6421 = vmatprep.subr.bf16.mxu0 %v6716_v5  ;;  %v3052_v8 = vld [vmem:[#allocation2 + $0x3c] sm:$0xf]  ;;  %v3053_v63 = vld [vmem:[#allocation2 + $0x40] sm:$0xf] }
 0x212   : > { %4007 = vmatprep.mubr.bf16.mxu1 %v7917_v43  ;;  %v3225_v57 = vor.u32 %v3224_v20, %v3220_v23  ;;  %v3230_v54 = vrot.slane %v3228_v28, 5  ;;  %v7938_v42 = vld [vmem:[#allocation4 + $0x50] ss:$12 sps:$4 sm:$0xff]   ;;  %3072 = vst [vmem:[#allocation4 + $0x78] sm:$0xf] %v3052_v8  ;;  %v6722_v0 = vld [vmem:[%s8396_s2 + $0x18] sm:$0xff]  }
 0x213   : > { %6124 = vmatpush3.bf16.msra.mxu1 %v6708_v25  ;;  %v3216_v12 = vrot.slane %v3215_v47, 4  ;;  %6407 = vmatprep.mubr.bf16.mxu0 %v7938_v42  ;;  %3073 = vst [vmem:[#allocation4 + $0x84] sm:$0xf] %v3053_v63  ;;  %v3097_v9 = vld [vmem:[#allocation2 + $0x3c] sm:$0xf]  ;;  %v6723_v3 = vld [vmem:[%s8396_s2 + $0xa8] sm:$0xff]  }
 0x214   : > { %4008 = vmatmul.mubr.bf16.gmra.mxu1 %v7919_v26  ;;  %6125 = vmatprep.subr.bf16.mxu1 %v6713_v35  ;;  %v3226_v21 = vrot.slane %v3225_v57, 4  ;;  %v3098_v38 = vld [vmem:[#allocation2 + $0x40] sm:$0xf]  ;;  %v3099_v59 = vld [vmem:[#allocation2 + $0x44] sm:$0x1]  ;;  %v3233_v60 = vshrl.u32 %v3097_v9, 16 }
 0x215   : > { %v3221_v14 = vsel %vm7009_vm5, %v3216_v12, %v3220_v23  ;;  %6422 = vmatpush3.bf16.msra.mxu0 %v6716_v5  ;;  %v3236_v16 = vshll.u32 %v3097_v9, 16  ;;  %v3242_v22 = vshll.u32 %v3098_v38, 16  ;;  %v3246_v24 = vshrl.u32 %v3098_v38, 16  ;;  %v3407_v46 = vld [vmem:[#allocation2 + $0x3c] sm:$0xe]  ;;  %v6725_v23 = vld [vmem:[%s8396_s2 + $0xa0] sm:$0xff]  }
 0x216   : > { %v7934_v52 = vld [vmem:[#allocation4 + $0x4c] ss:$12 sps:$4 sm:$0xff]   ;;  %3380 = vst [vmem:[#allocation4 + $0x64] sm:$0xf] %v3221_v14  ;;  %v7947_v45 = vld [vmem:[#allocation4 + $0x68] ss:$12 sps:$4 sm:$0xff]   ;;  %v3231_v29 = vsel %vm7009_vm5, %v3226_v21, %v3230_v54  ;;  %6423 = vmatprep.subr.bf16.mxu0 %v6723_v3 }
 0x217   : > { %6126 = vmatpush3.bf16.msra.mxu1 %v6714_v18  ;;  %4015 = vmatprep.mubr.bf16.mxu1 %v7934_v52  ;;  %3381 = vst [vmem:[#allocation4 + $0x70] sm:$0xf] %v3231_v29  ;;  %v3252_v6 = vshll.u32 %v3099_v59, 16  ;;  %v3235_v15 = vrot.slane %v3233_v60, 4  ;;  %v3238_v58 = vrot.slane %v3236_v16, 5  ;;  %v3244_v27 = vrot.slane %v3242_v22, 5 }
 0x218   : > { %6127 = vmatprep.subr.bf16.mxu1 %v6720_v49  ;;  %6408 = vmatmul.mubr.bf16.gmra.mxu0 %v7947_v45  ;;  %v3248_v25 = vrot.slane %v3246_v24, 4  ;;  %v3408_v55 = vld [vmem:[#allocation2 + $0x40] sm:$0xf]  ;;  %v5509_v4 = vrot.slane %v3407_v46, 9  ;;  %v3409_v7 = vld [vmem:[#allocation2 + $0x44] sm:$0x1] }
 0x219   : > { %v3254_v2 = vrot.slane %v3252_v6, 5  ;;  %v3239_v50 = vor.u32 %v3238_v58, %v3235_v15  ;;  %v3489_v51 = vrot.slane %v3408_v55, 5  ;;  %v3492_v17 = vrot.slane %v3409_v7, 5  ;;  %v3410_v33 = vld [vmem:[#allocation2 + $0x48] sm:$0xe]  ;;  %6424 = vmatpush3.bf16.msra.mxu0 %v6723_v3  ;;  %v6729_v5 = vld [vmem:[%s8396_s2 + $0x50] sm:$0xff]  }
 0x21a   : > { %v3249_v35 = vor.u32 %v3248_v25, %v3244_v27  ;;  %v3411_v56 = vld [vmem:[#allocation2 + $0x4c] sm:$0xf]  ;;  %v3412_v13 = vld [vmem:[#allocation2 + $0x50] sm:$0x1]  ;;  %v5510_v48 = vrot.slane %v3410_v33, 9  ;;  %6425 = vmatprep.subr.bf16.mxu0 %v6725_v23  ;;  %v6731_v16 = vld [vmem:[%s8396_s2 + $0x98] sm:$0xff]  }
 0x21b   : > { %6128 = vmatpush3.bf16.msra.mxu1 %v6722_v0  ;;  %v3240_v62 = vrot.slane %v3239_v50, 4  ;;  %v3490_v34 = vsel %vm6997_vm4, %v5509_v4, %v3489_v51  ;;  %v3491_v19 = vrot.slane %v3489_v51, 4  ;;  %v7963_v1 = vld [vmem:[#allocation4 + $0x60] ss:$12 sps:$4 sm:$0xff]   ;;  %v3496_v40 = vrot.slane %v3411_v56, 5  ;;  %v6730_v49 = vld [vmem:[%s8396_s2 + $0x10] sm:$0xff]  }
 0x21c   : > { %4016 = vmatmul.mubr.bf16.gmra.mxu1 %v7936_v37  ;;  %v3250_v61 = vrot.slane %v3249_v35, 4  ;;  %3552 = vst [vmem:[#allocation4 + $0x80] sm:$0xf] %v3490_v34  ;;  %v3499_v18 = vrot.slane %v3412_v13, 5  ;;  %v3054_v20 = vld [vmem:[#allocation2 + $0x48] sm:$0xf]  ;;  %6129 = vmatprep.subr.bf16.mxu1 %v6729_v5 }
 0x21d   : > { %v3245_v39 = vsel %vm7009_vm5, %v3240_v62, %v3244_v27  ;;  %v3493_v10 = vsel %vm6997_vm4, %v3491_v19, %v3492_v17  ;;  %v3497_v28 = vsel %vm6997_vm4, %v5510_v48, %v3496_v40  ;;  %v3498_v47 = vrot.slane %v3496_v40, 4  ;;  %v3055_v11 = vld [vmem:[#allocation2 + $0x4c] sm:$0xf]  ;;  %3074 = vst [vmem:[#allocation4 + $0x90] sm:$0xf] %v3054_v20  ;;  %6426 = vmatpush3.bf16.msra.mxu0 %v6725_v23  ;;  %v6732_v25 = vld [vmem:[%s8396_s2 + $0x90] sm:$0xff]  }
 0x21e   : > { %v7961_v36 = vld [vmem:[#allocation4 + $0x64] ss:$12 sps:$4 sm:$0xff]   ;;  %v3255_v32 = vsel %vm7009_vm5, %v3250_v61, %v3254_v2  ;;  %3382 = vst [vmem:[#allocation4 + $0x7c] sm:$0xf] %v3245_v39  ;;  %3553 = vst [vmem:[#allocation4 + $0x8c] sm:$0xf] %v3493_v10  ;;  %6427 = vmatprep.subr.bf16.mxu0 %v6731_v16 }
 0x21f   : > { %4023 = vmatprep.mubr.bf16.mxu1 %v7961_v36  ;;  %3383 = vst [vmem:[#allocation4 + $0x88] sm:$0xf] %v3255_v32  ;;  %3554 = vst [vmem:[#allocation4 + $0x98] sm:$0xf] %v3497_v28  ;;  %v3100_v12 = vld [vmem:[#allocation2 + $0x48] sm:$0xf]  ;;  %v3500_v14 = vsel %vm6997_vm4, %v3498_v47, %v3499_v18  ;;  %6130 = vmatpush3.bf16.msra.mxu1 %v6730_v49 }
 0x220   : > { %3075 = vst [vmem:[#allocation4 + $0x9c] sm:$0xf] %v3055_v11  ;;  %v3101_v57 = vld [vmem:[#allocation2 + $0x4c] sm:$0xf]  ;;  %v3102_v54 = vld [vmem:[#allocation2 + $0x50] sm:$0x1] }
 0x221   : > { %v3257_v21 = vshrl.u32 %v3100_v12, 16  ;;  %v3260_v8 = vshll.u32 %v3100_v12, 16  ;;  %v3266_v63 = vshll.u32 %v3101_v57, 16  ;;  %3555 = vst [vmem:[#allocation4 + $0xa4] sm:$0xf] %v3500_v14  ;;  %v3270_v9 = vshrl.u32 %v3101_v57, 16  ;;  %6428 = vmatpush3.bf16.msra.mxu0 %v6731_v16 }
 0x222   : > { %v3276_v29 = vshll.u32 %v3102_v54, 16  ;;  %v7993_v15 = vld [vmem:[#allocation4 + $0x78] ss:$12 sps:$4 sm:$0xff]   ;;  %v6737_v55 = vld [vmem:[%s8396_s2 + $0x48] sm:$0xff]   ;;  %6429 = vmatprep.subr.bf16.mxu0 %v6732_v25  ;;  %v3056_v7 = vld [vmem:[#allocation2 + $0x54] sm:$0xf] }
 0x223   : > { %v3259_v38 = vrot.slane %v3257_v21, 4  ;;  %v3262_v59 = vrot.slane %v3260_v8, 5  ;;  %v3268_v60 = vrot.slane %v3266_v63, 5  ;;  %v3272_v22 = vrot.slane %v3270_v9, 4  ;;  %v3057_v3 = vld [vmem:[#allocation2 + $0x58] sm:$0xf]  ;;  %6131 = vmatprep.subr.bf16.mxu1 %v6737_v55 }
 0x224   : > { %4024 = vmatmul.mubr.bf16.gmra.mxu1 %v7963_v1  ;;  %v3278_v46 = vrot.slane %v3276_v29, 5  ;;  %3076 = vst [vmem:[#allocation4 + $0xa8] sm:$0xf] %v3056_v7  ;;  %v3103_v35 = vld [vmem:[#allocation2 + $0x54] sm:$0xf]  ;;  %v6739_v39 = vld [vmem:[%s8396_s2 + $0x8] sm:$0xff]  }
 0x225   : > { %v7989_v24 = vld [vmem:[#allocation4 + $0x80] ss:$12 sps:$4 sm:$0xff]   ;;  %v3263_v6 = vor.u32 %v3262_v59, %v3259_v38  ;;  %v3273_v58 = vor.u32 %v3272_v22, %v3268_v60  ;;  %6430 = vmatpush3.bf16.msra.mxu0 %v6732_v25  ;;  %3077 = vst [vmem:[#allocation4 + $0xb4] sm:$0xf] %v3057_v3  ;;  %v3105_v62 = vld [vmem:[#allocation2 + $0x5c] sm:$0x1]  ;;  %6132 = vmatpush3.bf16.msra.mxu1 %v6739_v39 }
 0x226   : > { %v7991_v0 = vld [vmem:[#allocation4 + $0x7c] ss:$12 sps:$4 sm:$0xff]   ;;  %6411 = vmatprep.mubr.bf16.mxu0 %v7989_v24  ;;  %v3104_v17 = vld [vmem:[#allocation2 + $0x58] sm:$0xf]  ;;  %v3281_v34 = vshrl.u32 %v3103_v35, 16  ;;  %v3284_v19 = vshll.u32 %v3103_v35, 16 }
 0x227   : > { %v3264_v27 = vrot.slane %v3263_v6, 4  ;;  %4031 = vmatprep.mubr.bf16.mxu1 %v7991_v0  ;;  %v3274_v2 = vrot.slane %v3273_v58, 4  ;;  %v3290_v33 = vshll.u32 %v3104_v17, 16  ;;  %v3294_v61 = vshrl.u32 %v3104_v17, 16  ;;  %v3413_v13 = vld [vmem:[#allocation2 + $0x54] sm:$0xe] }
 0x228   : > { %v8004_v4 = vld [vmem:[#allocation4 + $0x98] ss:$12 sps:$4 sm:$0xff]   ;;  %v3300_v56 = vshll.u32 %v3105_v62, 16  ;;  %v3414_v48 = vld [vmem:[#allocation2 + $0x58] sm:$0xf]  ;;  %v3283_v10 = vrot.slane %v3281_v34, 4 }
 0x229   : > { %v3269_v50 = vsel %vm7009_vm5, %v3264_v27, %v3268_v60  ;;  %v3279_v51 = vsel %vm7009_vm5, %v3274_v2, %v3278_v46  ;;  %6412 = vmatmul.mubr.bf16.gmra.mxu0 %v8004_v4  ;;  %v3286_v40 = vrot.slane %v3284_v19, 5  ;;  %v3292_v32 = vrot.slane %v3290_v33, 5  ;;  %v3415_v23 = vld [vmem:[#allocation2 + $0x5c] sm:$0x1]  ;;  %v3416_v57 = vld [vmem:[#allocation2 + $0x60] sm:$0xe] }
 0x22a   : > { %3384 = vst [vmem:[#allocation4 + $0x94] sm:$0xf] %v3269_v50  ;;  %3385 = vst [vmem:[#allocation4 + $0xa0] sm:$0xf] %v3279_v51  ;;  %v3296_v18 = vrot.slane %v3294_v61, 4  ;;  %v3302_v28 = vrot.slane %v3300_v56, 5 }
 0x22b   : > { %v5511_v47 = vrot.slane %v3413_v13, 9  ;;  %v3503_v20 = vrot.slane %v3414_v48, 5  ;;  %v3506_v11 = vrot.slane %v3415_v23, 5  ;;  %v3287_v5 = vor.u32 %v3286_v40, %v3283_v10  ;;  %v3417_v54 = vld [vmem:[#allocation2 + $0x64] sm:$0xf]  ;;  %v6740_v9 = vld [vmem:[%s8396_s2 + $0x88] sm:$0xff]  }
 0x22c   : > { %4032 = vmatmul.mubr.bf16.gmra.mxu1 %v7993_v15  ;;  %v3297_v12 = vor.u32 %v3296_v18, %v3292_v32  ;;  %v3418_v8 = vld [vmem:[#allocation2 + $0x68] sm:$0x1]  ;;  %v5512_v63 = vrot.slane %v3416_v57, 9  ;;  %v3510_v49 = vrot.slane %v3417_v54, 5  ;;  %6431 = vmatprep.subr.bf16.mxu0 %v6740_v9  ;;  %v6741_v2 = vld [vmem:[%s8396_s2 + $0x80] sm:$0xff]  }
 0x22d   : > { %v3504_v14 = vsel %vm6997_vm4, %v5511_v47, %v3503_v20  ;;  %v3505_v21 = vrot.slane %v3503_v20, 4  ;;  %v3288_v29 = vrot.slane %v3287_v5, 4  ;;  %v3513_v59 = vrot.slane %v3418_v8, 5  ;;  %v8021_v16 = vld [vmem:[#allocation4 + $0x90] ss:$12 sps:$4 sm:$0xff]   ;;  %6432 = vmatpush3.bf16.msra.mxu0 %v6740_v9  ;;  %v6745_v33 = vld [vmem:[%s8396_s2 + $0x40] sm:$0xff]  }
 0x22e   : > { %v3298_v38 = vrot.slane %v3297_v12, 4  ;;  %3556 = vst [vmem:[#allocation4 + $0xb0] sm:$0xf] %v3504_v14  ;;  %v3511_v6 = vsel %vm6997_vm4, %v5512_v63, %v3510_v49  ;;  %v3512_v58 = vrot.slane %v3510_v49, 4  ;;  %v3058_v55 = vld [vmem:[#allocation2 + $0x60] sm:$0xf]  ;;  %6433 = vmatprep.subr.bf16.mxu0 %v6741_v2  ;;  %6133 = vmatprep.subr.bf16.mxu1 %v6745_v33 }
 0x22f   : > { %v3507_v22 = vsel %vm6997_vm4, %v3505_v21, %v3506_v11  ;;  %v3293_v46 = vsel %vm7009_vm5, %v3288_v29, %v3292_v32  ;;  %3558 = vst [vmem:[#allocation4 + $0xc8] sm:$0xf] %v3511_v6  ;;  %v3059_v50 = vld [vmem:[#allocation2 + $0x64] sm:$0xf]  ;;  %v3106_v7 = vld [vmem:[#allocation2 + $0x60] sm:$0xf] }
 0x230   : > { %v3303_v27 = vsel %vm7009_vm5, %v3298_v38, %v3302_v28  ;;  %3557 = vst [vmem:[#allocation4 + $0xbc] sm:$0xf] %v3507_v22  ;;  %3386 = vst [vmem:[#allocation4 + $0xac] sm:$0xf] %v3293_v46  ;;  %v3514_v25 = vsel %vm6997_vm4, %v3512_v58, %v3513_v59  ;;  %v3107_v51 = vld [vmem:[#allocation2 + $0x64] sm:$0xf] }
 0x231   : > { %v8019_v60 = vld [vmem:[#allocation4 + $0x94] ss:$12 sps:$4 sm:$0xff]   ;;  %3387 = vst [vmem:[#allocation4 + $0xb8] sm:$0xf] %v3303_v27  ;;  %3559 = vst [vmem:[#allocation4 + $0xd4] sm:$0xf] %v3514_v25  ;;  %6434 = vmatpush3.bf16.msra.mxu0 %v6741_v2 }
 0x232   : > { %4039 = vmatprep.mubr.bf16.mxu1 %v8019_v60  ;;  %3078 = vst [vmem:[#allocation4 + $0xc0] sm:$0xf] %v3058_v55  ;;  %3079 = vst [vmem:[#allocation4 + $0xcc] sm:$0xf] %v3059_v50  ;;  %v3108_v3 = vld [vmem:[#allocation2 + $0x68] sm:$0x1] }
 0x233   : > { %v3305_v35 = vshrl.u32 %v3106_v7, 16  ;;  %v3308_v17 = vshll.u32 %v3106_v7, 16  ;;  %v3314_v62 = vshll.u32 %v3107_v51, 16  ;;  %v3318_v34 = vshrl.u32 %v3107_v51, 16  ;;  %v3392_v39 = vld [vmem:[#allocation2] sm:$0xe] }
 0x234   : > { %4040 = vmatmul.mubr.bf16.gmra.mxu1 %v8021_v16  ;;  %v3324_v19 = vshll.u32 %v3108_v3, 16  ;;  %v6747_v10 = vld [vmem:[%s8396_s2] sm:$0xff]   ;;  %v5504_v47 = vrot.slane %v3392_v39, 9  ;;  %v3394_v54 = vld [vmem:[#allocation2 + $0x8] sm:$0x1]  ;;  %v6748_v49 = vld [vmem:[%s8396_s2 + $0x1f8] sm:$0xff]  }
 0x235   : > { %v3307_v61 = vrot.slane %v3305_v35, 4  ;;  %v3310_v56 = vrot.slane %v3308_v17, 5  ;;  %v3316_v13 = vrot.slane %v3314_v62, 5  ;;  %v3320_v48 = vrot.slane %v3318_v34, 4  ;;  %6134 = vmatpush3.bf16.msra.mxu1 %v6747_v10  ;;  %v8048_v20 = vld [vmem:[#allocation4 + $0xa8] ss:$12 sps:$4 sm:$0xff]   ;;  %6199 = vmatprep.subr.bf16.mxu0 %v6748_v49 }
 0x236   : > { %v3326_v28 = vrot.slane %v3324_v19, 5  ;;  %v3393_v57 = vld [vmem:[#allocation2 + $0x4] sm:$0xf]  ;;  %v3457_v21 = vrot.slane %v3394_v54, 5  ;;  %v3042_v59 = vld [vmem:[#allocation2] sm:$0xf] }
 0x237   : > { %v8044_v40 = vld [vmem:[#allocation4 + $0xb0] ss:$12 sps:$4 sm:$0xff]   ;;  %v3311_v32 = vor.u32 %v3310_v56, %v3307_v61  ;;  %v3321_v23 = vor.u32 %v3320_v48, %v3316_v13  ;;  %v3454_v14 = vrot.slane %v3393_v57, 5  ;;  %v3043_v22 = vld [vmem:[#allocation2 + $0x4] sm:$0xf]  ;;  %v6755_v7 = vld [vmem:[%s8396_s2 + $0x238] sm:$0xff]  }
 0x238   : > { %v8046_v18 = vld [vmem:[#allocation4 + $0xac] ss:$12 sps:$4 sm:$0xff]   ;;  %6415 = vmatprep.mubr.bf16.mxu0 %v8044_v40  ;;  %v6738_v11 = vld [vmem:[#allocation4 + $0xc8] ss:$12 sps:$4 sm:$0xff]   ;;  %3062 = vst [vmem:[#allocation4] sm:$0xf] %v3042_v59  ;;  %6451 = vmatprep.subr.bf16.mxu1 %v6755_v7 }
 0x239   : > { %4047 = vmatprep.mubr.bf16.mxu1 %v8046_v18  ;;  %v3312_v5 = vrot.slane %v3311_v32, 4  ;;  %v3322_v12 = vrot.slane %v3321_v23, 4  ;;  %6416 = vmatmul.mubr.bf16.gmra.mxu0 %v6738_v11  ;;  %v3455_v9 = vsel %vm6997_vm4, %v5504_v47, %v3454_v14  ;;  %v3456_v29 = vrot.slane %v3454_v14, 4  ;;  %v3082_v6 = vld [vmem:[#allocation2] sm:$0xf]  ;;  %v6750_v39 = vld [vmem:[%s8396_s2 + $0x1f0] sm:$0xff]  }
 0x23a   : > { %3542 = vst [vmem:[#allocation4 + $0x8] sm:$0xf] %v3455_v9  ;;  %3063 = vst [vmem:[#allocation4 + $0xc] sm:$0xf] %v3043_v22  ;;  %v3083_v58 = vld [vmem:[#allocation2 + $0x4] sm:$0xf] }
 0x23b   : > { %v3317_v8 = vsel %vm7009_vm5, %v3312_v5, %v3316_v13  ;;  %v3327_v63 = vsel %vm7009_vm5, %v3322_v12, %v3326_v28  ;;  %v3458_v38 = vsel %vm6997_vm4, %v3456_v29, %v3457_v21  ;;  %v3084_v46 = vld [vmem:[#allocation2 + $0x8] sm:$0x1]  ;;  %v3113_v27 = vshrl.u32 %v3082_v6, 16  ;;  %v8069_v34 = vld [vmem:[#allocation4 + $0xc0] ss:$12 sps:$4 sm:$0xff]   ;;  %v6751_v28 = vld [vmem:[%s8396_s2 + $0x1b0] sm:$0xff]  }
 0x23c   : > { %4048 = vmatmul.mubr.bf16.gmra.mxu1 %v8048_v20  ;;  %3388 = vst [vmem:[#allocation4 + $0xc4] sm:$0xf] %v3317_v8  ;;  %3389 = vst [vmem:[#allocation4 + $0xd0] sm:$0xf] %v3327_v63  ;;  %v3116_v25 = vshll.u32 %v3082_v6, 16  ;;  %v3122_v2 = vshll.u32 %v3083_v58, 16 }
 0x23d   : > { %3543 = vst [vmem:[#allocation4 + $0x14] sm:$0xf] %v3458_v38  ;;  %v3126_v55 = vshrl.u32 %v3083_v58, 16  ;;  %v3132_v50 = vshll.u32 %v3084_v46, 16  ;;  %v3115_v51 = vrot.slane %v3113_v27, 4  ;;  %v6749_v13 = vld [vmem:[%s8396_s2 + $0x1b8] sm:$0xff]  }
 0x23e   : > { %v3118_v3 = vrot.slane %v3116_v25, 5  ;;  %v3124_v17 = vrot.slane %v3122_v2, 5  ;;  %v6756_v47 = vld [vmem:[%s8396_s2 + $0x1e8] sm:$0xff]   ;;  %v6758_v11 = vld [vmem:[%s8396_s2 + $0x1e0] sm:$0xff]   ;;  %v6760_v57 = vld [vmem:[%s8396_s2 + $0x230] sm:$0xff]  }
 0x23f   : > { %v3128_v62 = vrot.slane %v3126_v55, 4  ;;  %v3134_v33 = vrot.slane %v3132_v50, 5  ;;  %v6759_v5 = vld [vmem:[%s8396_s2 + $0x1a0] sm:$0xff]   ;;  %v6761_v54 = vld [vmem:[%s8396_s2 + $0x1d8] sm:$0xff]   ;;  %v6765_v14 = vld [vmem:[%s8396_s2 + $0x228] sm:$0xff]  }
 0x240   : > { %v3119_v19 = vor.u32 %v3118_v3, %v3115_v51  ;;  %v6773_v21 = vld [vmem:[%s8396_s2 + $0x220] sm:$0xff]   ;;  %v6766_v8 = vld [vmem:[%s8396_s2 + $0x1c8] sm:$0xff]   ;;  %v6789_v63 = vld [vmem:[#allocation4 + $0x18] ss:$12 sps:$4 sm:$0xff]  }
 0x241   : > { %v3129_v61 = vor.u32 %v3128_v62, %v3124_v17  ;;  %v6772_v49 = vld [vmem:[#allocation4 + $0x34] ss:$12 sps:$4 sm:$0xff]   ;;  %v6769_v38 = vld [vmem:[%s8396_s2 + $0x180] sm:$0xff]   ;;  %v3061_v59 = vld [vmem:[#allocation2 + $0x70] sm:$0xf] }
 0x242   : > { %v3120_v48 = vrot.slane %v3119_v19, 4  ;;  %v6774_v9 = vld [vmem:[%s8396_s2 + $0x218] sm:$0xff]   ;;  %v3060_v29 = vld [vmem:[#allocation2 + $0x6c] sm:$0xf]  ;;  %v3110_v22 = vld [vmem:[#allocation2 + $0x70] sm:$0xf] }
 0x243   : > { %v8067_v35 = vld [vmem:[#allocation4 + $0xc4] ss:$12 sps:$4 sm:$0xff]   ;;  %v3130_v10 = vrot.slane %v3129_v61, 4  ;;  %3080 = vst [vmem:[#allocation4 + $0xd8] sm:$0xf] %v3060_v29  ;;  %v3338_v27 = vshll.u32 %v3110_v22, 16 }
 0x244   : > { %4055 = vmatprep.mubr.bf16.mxu1 %v8067_v35  ;;  %v6746_v56 = vld [vmem:[#allocation4 + $0x8] ss:$12 sps:$4 sm:$0xff]   ;;  %v3125_v32 = vsel %vm7009_vm5, %v3120_v48, %v3124_v17  ;;  %3081 = vst [vmem:[#allocation4 + $0xe4] sm:$0xf] %v3061_v59  ;;  %v3111_v6 = vld [vmem:[#allocation2 + $0x74] sm:$0x1] }
 0x245   : > { %4056 = vmatmul.mubr.bf16.gmra.mxu1 %v8069_v34  ;;  %6435 = vmatprep.mubr.bf16.mxu0 %v6746_v56  ;;  %v3135_v23 = vsel %vm7009_vm5, %v3130_v10, %v3134_v33  ;;  %3372 = vst [vmem:[#allocation4 + $0x4] sm:$0xf] %v3125_v32  ;;  %v3342_v25 = vshrl.u32 %v3110_v22, 16  ;;  %v6775_v2 = vld [vmem:[%s8396_s2 + $0x210] sm:$0xff]   ;;  %v3348_v55 = vshll.u32 %v3111_v6, 16  ;;  %v3340_v51 = vrot.slane %v3338_v27, 5 }
 0x246   : > { %6436 = vmatmul.mubr.bf16.vlgmr.msra.gmra.mxu0 %v7879_v31  ;;  %3373 = vst [vmem:[#allocation4 + $0x10] sm:$0xf] %v3135_v23  ;;  %v6757_v31 = vld [vmem:[%s8396_s2 + $0x1a8] sm:$0xff]   ;;  %v3420_v61 = vld [vmem:[#allocation2 + $0x70] sm:$0xf] }
 0x247   : > { %6200 = vmatpush3.bf16.msra.mxu0 %v6749_v13  ;;  %6439 = vmatprep.mubr.bf16.mxu0 %v7890_v44  ;;  %v6752_v44 = vld [vmem:[#allocation4] ss:$12 sps:$4 sm:$0xff]   ;;  %v6770_v3 = vld [vmem:[#allocation4 + $0x30] ss:$12 sps:$4 sm:$0xff]   ;;  %v3350_v19 = vrot.slane %v3348_v55, 5 }
 0x248   : > { %6201 = vmatprep.subr.bf16.mxu0 %v6750_v39  ;;  %v3419_v33 = vld [vmem:[#allocation2 + $0x6c] sm:$0xe]  ;;  %v3421_v13 = vld [vmem:[#allocation2 + $0x74] sm:$0x1]  ;;  %v3517_v39 = vrot.slane %v3420_v61, 5 }
 0x249   : > { %v6776_v56 = vld [vmem:[%s8396_s2 + $0x208] sm:$0xff]   ;;  %v5513_v48 = vrot.slane %v3419_v33, 9  ;;  %v3520_v32 = vrot.slane %v3421_v13, 5  ;;  %v6778_v41 = vld [vmem:[#allocation4 + $0x38] ss:$12 sps:$4 sm:$0xff]  }
 0x24a   : > { %v6779_v53 = vld [vmem:[#allocation4 + $0x50] ss:$12 sps:$4 sm:$0xff]  }
 0x24b   : > { %6202 = vmatpush3.bf16.msra.mxu0 %v6751_v28  ;;  %v3518_v23 = vsel %vm6997_vm4, %v5513_v48, %v3517_v39  ;;  %v3519_v28 = vrot.slane %v3517_v39, 4 }
 0x24c   : > { %6203 = vmatprep.subr.bf16.mxu0 %v6756_v47  ;;  %3560 = vst [vmem:[#allocation4 + $0xe0] sm:$0xf] %v3518_v23 }
 0x24d   : > { %v6754_v12 = vld [vmem:[#allocation4 + $0x4] ss:$12 sps:$4 sm:$0xff]  }
 0x24e   : > { %6440 = vmatmul.mubr.bf16.gmra.mxu0 %v7938_v42  ;;  %4353 = vmatprep.mubr.bf16.mxu1 %v6754_v12  ;;  %v6762_v42 = vld [vmem:[%s8396_s2 + $0x198] sm:$0xff]  }
 0x24f   : > { %6204 = vmatpush3.bf16.msra.mxu0 %v6757_v31  ;;  %6443 = vmatprep.mubr.bf16.mxu0 %v7947_v45  ;;  %v6763_v45 = vld [vmem:[%s8396_s2 + $0x1d0] sm:$0xff]  }
 0x250   : > { %6205 = vmatprep.subr.bf16.mxu0 %v6758_v11  ;;  %4354 = vmatmul.mubr.bf16.vlgmr.msra.gmra.mxu1 %v6752_v44  ;;  %v6777_v11 = vld [vmem:[%s8396_s2 + $0x200] sm:$0xff]  }
 0x251   : > { %6452 = vmatpush3.bf16.msra.mxu1 %v6755_v7  ;;  %4361 = vmatprep.mubr.bf16.mxu1 %v7881_v30  ;;  %v6764_v30 = vld [vmem:[%s8396_s2 + $0x190] sm:$0xff]  }
 0x252   : > { %6453 = vmatprep.subr.bf16.mxu1 %v6760_v57 }
 0x253   : > { %6206 = vmatpush3.bf16.msra.mxu0 %v6759_v5  ;;  %v3521_v5 = vsel %vm6997_vm4, %v3519_v28, %v3520_v32 }
 0x254   : > { %6207 = vmatprep.subr.bf16.mxu0 %v6761_v54  ;;  %3561 = vst [vmem:[#allocation4 + $0xec] sm:$0xf] %v3521_v5 }
 0x255   : > { %6454 = vmatpush3.bf16.msra.mxu1 %v6760_v57 }
 0x256   : > { %6444 = vmatmul.mubr.bf16.gmra.mxu0 %v7989_v24  ;;  %6455 = vmatprep.subr.bf16.mxu1 %v6765_v14  ;;  %v6767_v24 = vld [vmem:[%s8396_s2 + $0x188] sm:$0xff]  }
 0x257   : > { %6208 = vmatpush3.bf16.msra.mxu0 %v6762_v42  ;;  %6447 = vmatprep.mubr.bf16.mxu0 %v8004_v4  ;;  %v6768_v4 = vld [vmem:[%s8396_s2 + $0x1c0] sm:$0xff]  }
 0x258   : > { %6209 = vmatprep.subr.bf16.mxu0 %v6763_v45  ;;  %4362 = vmatmul.mubr.bf16.gmra.mxu1 %v6789_v63 }
 0x259   : > { %4369 = vmatprep.mubr.bf16.mxu1 %v7917_v43  ;;  %6456 = vmatpush3.bf16.msra.mxu1 %v6765_v14  ;;  %v3109_v43 = vld [vmem:[#allocation2 + $0x6c] sm:$0xf] }
 0x25a   : > { %6457 = vmatprep.subr.bf16.mxu1 %v6773_v21  ;;  %v3329_v58 = vshrl.u32 %v3109_v43, 16  ;;  %v3332_v46 = vshll.u32 %v3109_v43, 16 }
 0x25b   : > { %6210 = vmatpush3.bf16.msra.mxu0 %v6764_v30 }
 0x25c   : > { %6211 = vmatprep.subr.bf16.mxu0 %v6766_v8  ;;  %v3331_v50 = vrot.slane %v3329_v58, 4  ;;  %v3334_v7 = vrot.slane %v3332_v46, 5 }
 0x25d   : > { %6458 = vmatpush3.bf16.msra.mxu1 %v6773_v21 }
 0x25e   : > { %6448 = vmatmul.mubr.bf16.gmra.mxu0 %v8044_v40  ;;  %6459 = vmatprep.subr.bf16.mxu1 %v6774_v9  ;;  %v3344_v40 = vrot.slane %v3342_v25, 4  ;;  %v3335_v17 = vor.u32 %v3334_v7, %v3331_v50 }
 0x25f   : > { %6212 = vmatpush3.bf16.msra.mxu0 %v6767_v24  ;;  %4900 = vmatprep.mubr.bf16.mxu0 %v6772_v49 }
 0x260   : > { %6213 = vmatprep.subr.bf16.mxu0 %v6768_v4  ;;  %4370 = vmatmul.mubr.bf16.gmra.mxu1 %v7919_v26  ;;  %v3345_v62 = vor.u32 %v3344_v40, %v3340_v51  ;;  %v3336_v10 = vrot.slane %v3335_v17, 4 }
 0x261   : > { %4377 = vmatprep.mubr.bf16.mxu1 %v7934_v52  ;;  %6460 = vmatpush3.bf16.msra.mxu1 %v6774_v9 }
 0x262   : > { %6461 = vmatprep.subr.bf16.mxu1 %v6775_v2  ;;  %v3346_v26 = vrot.slane %v3345_v62, 4  ;;  %v3341_v47 = vsel %vm7009_vm5, %v3336_v10, %v3340_v51 }
 0x263   : > { %6214 = vmatpush3.bf16.msra.mxu0 %v6769_v38  ;;  %3390 = vst [vmem:[#allocation4 + $0xdc] sm:$0xf] %v3341_v47 }
 0x264   : > { %v3351_v31 = vsel %vm7009_vm5, %v3346_v26, %v3350_v19 }
 0x265   : > { %6462 = vmatpush3.bf16.msra.mxu1 %v6775_v2  ;;  %3391 = vst [vmem:[#allocation4 + $0xe8] sm:$0xf] %v3351_v31 }
 0x266   : > { %4901 = vmatmul.mubr.bf16.vlgmr.msra.gmra.mxu0 %v6770_v3  ;;  %6463 = vmatprep.subr.bf16.mxu1 %v6776_v56 }
 0x267   : > { %4908 = vmatprep.mubr.bf16.mxu0 %v7934_v52  ;;  %v6780_v52 = vld [vmem:[#allocation4 + $0x68] ss:$12 sps:$4 sm:$0xff]  }
 0x268   : > { %4378 = vmatmul.mubr.bf16.gmra.mxu1 %v7936_v37 }
 0x269   : > { %4385 = vmatprep.mubr.bf16.mxu1 %v7961_v36  ;;  %6464 = vmatpush3.bf16.msra.mxu1 %v6776_v56 }
 0x26a   : > { %6465 = vmatprep.subr.bf16.mxu1 %v6777_v11 }
 0x26d   : > { %6466 = vmatpush3.bf16.msra.mxu1 %v6777_v11 }
 0x26e   : > { %4909 = vmatmul.mubr.bf16.gmra.mxu0 %v7936_v37  ;;  %v6783_v37 = vld [vmem:[#allocation4 + $0xdc] ss:$12 sps:$4 sm:$0xff]  }
 0x26f   : > { %4916 = vmatprep.mubr.bf16.mxu0 %v7961_v36  ;;  %v6781_v36 = vld [vmem:[#allocation4 + $0x80] ss:$12 sps:$4 sm:$0xff]  }
 0x270   : > { %4386 = vmatmul.mubr.bf16.gmra.mxu1 %v7963_v1 }
 0x271   : > { %4393 = vmatprep.mubr.bf16.mxu1 %v7991_v0 }
 0x276   : > { %4917 = vmatmul.mubr.bf16.gmra.mxu0 %v7963_v1  ;;  %v6782_v1 = vld [vmem:[#allocation4 + $0x98] ss:$12 sps:$4 sm:$0xff]  }
 0x277   : > { %4924 = vmatprep.mubr.bf16.mxu0 %v7991_v0  ;;  %v6786_v0 = vld [vmem:[#allocation4 + $0xd8] ss:$12 sps:$4 sm:$0xff]  }
 0x278   : > { %4394 = vmatmul.mubr.bf16.gmra.mxu1 %v7993_v15 }
 0x279   : > { %4401 = vmatprep.mubr.bf16.mxu1 %v8019_v60 }
 0x27e   : > { %4925 = vmatmul.mubr.bf16.gmra.mxu0 %v7993_v15  ;;  %v6785_v15 = vld [vmem:[#allocation4 + $0xb0] ss:$12 sps:$4 sm:$0xff]  }
 0x27f   : > { %4932 = vmatprep.mubr.bf16.mxu0 %v8019_v60  ;;  %v6787_v60 = vld [vmem:[#allocation4 + $0xc8] ss:$12 sps:$4 sm:$0xff]  }
 0x280   : > { %4402 = vmatmul.mubr.bf16.gmra.mxu1 %v8021_v16 }
 0x281   : > { %4409 = vmatprep.mubr.bf16.mxu1 %v8046_v18 }
 0x286   : > { %4933 = vmatmul.mubr.bf16.gmra.mxu0 %v8021_v16  ;;  %v6788_v16 = vld [vmem:[#allocation4 + $0xe0] ss:$12 sps:$4 sm:$0xff]  }
 0x287   : > { %4940 = vmatprep.mubr.bf16.mxu0 %v8046_v18 }
 0x288   : > { %4410 = vmatmul.mubr.bf16.gmra.mxu1 %v8048_v20 }
 0x289   : > { %6467 = vmatprep.mubr.bf16.mxu1 %v6778_v41 }
 0x28e   : > { %4941 = vmatmul.mubr.bf16.gmra.mxu0 %v8048_v20 }
 0x28f   : > { %4948 = vmatprep.mubr.bf16.mxu0 %v8067_v35 }
 0x290   : > { %6468 = vmatmul.mubr.bf16.vlgmr.msra.gmra.mxu1 %v6779_v53 }
 0x291   : > { %6471 = vmatprep.mubr.bf16.mxu1 %v6780_v52 }
 0x296   : > { %4949 = vmatmul.mubr.bf16.gmra.mxu0 %v8069_v34 }
 0x297   : > { %4956 = vmatprep.mubr.bf16.mxu0 %v6783_v37 }
 0x298   : > { %6472 = vmatmul.mubr.bf16.gmra.mxu1 %v6781_v36 }
 0x299   : > { %6475 = vmatprep.mubr.bf16.mxu1 %v6782_v1 }
 0x29e   : > { %4957 = vmatmul.mubr.bf16.gmra.mxu0 %v6786_v0 }
 0x2a0   : > { %6476 = vmatmul.mubr.bf16.gmra.mxu1 %v6785_v15 }
 0x2a1   : > { %6479 = vmatprep.mubr.bf16.mxu1 %v6787_v60 }
 0x2a8   : > { %6480 = vmatmul.mubr.bf16.gmra.mxu1 %v6788_v16 }
 0x2ca   : > { %v6055_v18 = vpop.f32.mrf.mxu1 }
 0x2cc   : > { %v6405_v20 = vpop.f32.mrf.mxu0  ;;  %v6056_v35 = vpop.f32.mrf.mxu1 }
 0x2cd   : > { %v6057_v44 = vadd.f32 %v6056_v35, %v6055_v18 }
 0x2ce   : > { %v4098_v12 = vpop.f32.mrf.mxu0  ;;  %v6058_v57 = vpop.f32.mrf.mxu1 }
 0x2cf   : > { %v8183_v54 = vadd.f32 %v6057_v44, %v4098_v12 }
 0x2d0   : > { %v6406_v34 = vpop.f32.mrf.mxu0  ;;  %v6059_v42 = vpop.f32.mrf.mxu1 }
 0x2d1   : > { %v6060_v45 = vadd.f32 %v6059_v42, %v6058_v57 }
 0x2d2   : > { %v4101_v14 = vpop.f32.mrf.mxu0 }
 0x2d3   : > { %v8185_v30 = vadd.f32 %v6060_v45, %v4101_v14 }
 0x2d4   : > { %v6061_v21 = vpop.f32.mrf.mxu1 }
 0x2d6   : > { %v6062_v8 = vpop.f32.mrf.mxu1 }
 0x2d7   : > { %v6063_v63 = vadd.f32 %v6062_v8, %v6061_v21 }
 0x2d8   : > { %v6064_v24 = vpop.f32.mrf.mxu1  ;;  %v6409_v38 = vpop.f32.mrf.mxu0 }
 0x2d9   : > { %v8187_v4 = vadd.f32 %v6405_v20, %v6063_v63 }
 0x2da   : > { %v6065_v49 = vpop.f32.mrf.mxu1  ;;  %v4114_v22 = vpop.f32.mrf.mxu0 }
 0x2db   : > { %v6066_v9 = vadd.f32 %v6065_v49, %v6064_v24 }
 0x2dc   : > { %v6067_v29 = vpop.f32.mrf.mxu1  ;;  %v6410_v46 = vpop.f32.mrf.mxu0 }
 0x2dd   : > { %v8189_v59 = vadd.f32 %v6406_v34, %v6066_v9 }
 0x2de   : > { %v6068_v43 = vpop.f32.mrf.mxu1  ;;  %v4117_v2 = vpop.f32.mrf.mxu0 }
 0x2df   : > { %v6069_v6 = vadd.f32 %v6068_v43, %v6067_v29 }
 0x2e0   : > { %v6070_v58 = vpop.f32.mrf.mxu1 }
 0x2e1   : > { %v8191_v27 = vadd.f32 %v6069_v6, %v4114_v22 }
 0x2e2   : > { %v6071_v25 = vpop.f32.mrf.mxu1 }
 0x2e3   : > { %v6072_v55 = vadd.f32 %v6071_v25, %v6070_v58 }
 0x2e4   : > { %v6073_v7 = vpop.f32.mrf.mxu1 }
 0x2e5   : > { %v8193_v50 = vadd.f32 %v6072_v55, %v4117_v2 }
 0x2e6   : > { %v6074_v51 = vpop.f32.mrf.mxu1 }
 0x2e7   : > { %v6075_v40 = vadd.f32 %v6074_v51, %v6073_v7 }
 0x2e8   : > { %v6076_v3 = vpop.f32.mrf.mxu1 }
 0x2e9   : > { %v8195_v17 = vadd.f32 %v6409_v38, %v6075_v40  ;;  %v6413_v13 = vpop.f32.mrf.mxu0 }
 0x2ea   : > { %v6077_v62 = vpop.f32.mrf.mxu1 }
 0x2eb   : > { %v6078_v19 = vadd.f32 %v6077_v62, %v6076_v3  ;;  %v4130_v10 = vpop.f32.mrf.mxu0 }
 0x2ec   : > { %v6079_v61 = vpop.f32.mrf.mxu1 }
 0x2ed   : > { %v8197_v33 = vadd.f32 %v6410_v46, %v6078_v19  ;;  %v6414_v23 = vpop.f32.mrf.mxu0 }
 0x2ee   : > { %v6080_v56 = vpop.f32.mrf.mxu1 }
 0x2ef   : > { %v6081_v48 = vadd.f32 %v6080_v56, %v6079_v61  ;;  %v4133_v47 = vpop.f32.mrf.mxu0 }
 0x2f0   : > { %v6082_v39 = vpop.f32.mrf.mxu1 }
 0x2f1   : > { %v8199_v26 = vadd.f32 %v6081_v48, %v4130_v10 }
 0x2f2   : > { %v6083_v32 = vpop.f32.mrf.mxu1 }
 0x2f3   : > { %v6084_v28 = vadd.f32 %v6083_v32, %v6082_v39 }
 0x2f4   : > { %v6085_v11 = vpop.f32.mrf.mxu1 }
 0x2f5   : > { %v8201_v31 = vadd.f32 %v6084_v28, %v4133_v47 }
 0x2f6   : > { %v6086_v5 = vpop.f32.mrf.mxu1 }
 0x2f7   : > { %v6087_v41 = vadd.f32 %v6086_v5, %v6085_v11 }
 0x2f8   : > { %v6088_v53 = vpop.f32.mrf.mxu1 }
 0x2f9   : > { %v8203_v52 = vadd.f32 %v6413_v13, %v6087_v41  ;;  %v6417_v15 = vpop.f32.mrf.mxu0 }
 0x2fa   : > { %v6089_v37 = vpop.f32.mrf.mxu1 }
 0x2fb   : > { %v6090_v36 = vadd.f32 %v6089_v37, %v6088_v53  ;;  %v4146_v16 = vpop.f32.mrf.mxu0 }
 0x2fc   : > { %v6091_v0 = vpop.f32.mrf.mxu1 }
 0x2fd   : > { %v8205_v1 = vadd.f32 %v6414_v23, %v6090_v36  ;;  %v6418_v35 = vpop.f32.mrf.mxu0 }
 0x2fe   : > { %v6092_v60 = vpop.f32.mrf.mxu1 }
 0x2ff   : > { %v6093_v18 = vadd.f32 %v6092_v60, %v6091_v0  ;;  %v4149_v34 = vpop.f32.mrf.mxu0 }
 0x300   : > { %v6094_v20 = vpop.f32.mrf.mxu1 }
 0x301   : > { %v8207_v44 = vadd.f32 %v6093_v18, %v4146_v16 }
 0x302   : > { %v6095_v12 = vpop.f32.mrf.mxu1 }
 0x303   : > { %v6096_v57 = vadd.f32 %v6095_v12, %v6094_v20 }
 0x305   : > { %v8209_v42 = vadd.f32 %v6096_v57, %v4149_v34  ;;  %v6097_v45 = vpop.f32.mrf.mxu1 }
 0x306   : > { %v6437_v21 = vpop.f32.mrf.mxu0 }
 0x307   : > { %v6098_v14 = vpop.f32.mrf.mxu1 }
 0x308   : > { %v6099_v8 = vadd.f32 %v6098_v14, %v6097_v45  ;;  %v4452_v49 = vpop.f32.mrf.mxu0 }
 0x309   : > { %v6100_v63 = vpop.f32.mrf.mxu1 }
 0x30a   : > { %v8211_v24 = vadd.f32 %v6417_v15, %v6099_v8  ;;  %v6438_v29 = vpop.f32.mrf.mxu0 }
 0x30b   : > { %v6101_v9 = vpop.f32.mrf.mxu1 }
 0x30c   : > { %v6102_v38 = vadd.f32 %v6101_v9, %v6100_v63  ;;  %v4455_v22 = vpop.f32.mrf.mxu0 }
 0x30e   : > { %v8213_v43 = vadd.f32 %v6418_v35, %v6102_v38  ;;  %v6441_v6 = vpop.f32.mrf.mxu0 }
 0x310   : > { %v4468_v58 = vpop.f32.mrf.mxu0  ;;  %v6135_v46 = vpop.f32.mrf.mxu1 }
 0x312   : > { %v6442_v25 = vpop.f32.mrf.mxu0  ;;  %v6136_v2 = vpop.f32.mrf.mxu1 }
 0x313   : > { %v6137_v55 = vadd.f32 %v6136_v2, %v6135_v46 }
 0x314   : > { %v4471_v7 = vpop.f32.mrf.mxu0  ;;  %v6138_v51 = vpop.f32.mrf.mxu1 }
 0x315   : > { %v4356_v40 = vadd.f32 %v6137_v55, %v8183_v54 }
 0x316   : > { %v8216_v3 = vpop.f32.mrf.mxu0  ;;  %v6139_v62 = vpop.f32.mrf.mxu1 }
 0x317   : > { %v6140_v19 = vadd.f32 %v6139_v62, %v6138_v51  ;;  %v8218_v56 = vadd.f32 %v4452_v49, %v4356_v40 }
 0x318   : > { %v4484_v61 = vpop.f32.mrf.mxu0  ;;  %v6141_v13 = vpop.f32.mrf.mxu1 }
 0x319   : > { %v4359_v48 = vadd.f32 %v6140_v19, %v8185_v30 }
 0x31a   : > { %v8221_v39 = vpop.f32.mrf.mxu0  ;;  %v6142_v10 = vpop.f32.mrf.mxu1 }
 0x31b   : > { %v6143_v32 = vadd.f32 %v6142_v10, %v6141_v13  ;;  %v8223_v28 = vadd.f32 %v4455_v22, %v4359_v48 }
 0x31c   : > { %v4487_v23 = vpop.f32.mrf.mxu0  ;;  %v6144_v47 = vpop.f32.mrf.mxu1 }
 0x31d   : > { %v4364_v54 = vadd.f32 %v6143_v32, %v8187_v4 }
 0x31e   : > { %v8226_v11 = vpop.f32.mrf.mxu0  ;;  %v6145_v5 = vpop.f32.mrf.mxu1 }
 0x31f   : > { %v6146_v41 = vadd.f32 %v6145_v5, %v6144_v47  ;;  %v8230_v37 = vadd.f32 %v6437_v21, %v4364_v54 }
 0x320   : > { %v8228_v53 = vpop.f32.mrf.mxu0  ;;  %v6147_v36 = vpop.f32.mrf.mxu1 }
 0x321   : > { %v4367_v30 = vadd.f32 %v6146_v41, %v8189_v59 }
 0x322   : > { %v8233_v0 = vpop.f32.mrf.mxu0  ;;  %v6148_v15 = vpop.f32.mrf.mxu1 }
 0x323   : > { %v6149_v60 = vadd.f32 %v6148_v15, %v6147_v36  ;;  %v8237_v18 = vadd.f32 %v6438_v29, %v4367_v30 }
 0x324   : > { %v8235_v16 = vpop.f32.mrf.mxu0  ;;  %v6150_v4 = vpop.f32.mrf.mxu1 }
 0x325   : > { %v4372_v20 = vadd.f32 %v6149_v60, %v8191_v27 }
 0x326   : > { %v8240_v35 = vpop.f32.mrf.mxu0  ;;  %v6151_v12 = vpop.f32.mrf.mxu1 }
 0x327   : > { %v6152_v57 = vadd.f32 %v6151_v12, %v6150_v4  ;;  %v8244_v45 = vadd.f32 %v4468_v58, %v4372_v20 }
 0x328   : > { %v8242_v34 = vpop.f32.mrf.mxu0  ;;  %v6153_v59 = vpop.f32.mrf.mxu1 }
 0x329   : > { %v4375_v14 = vadd.f32 %v6152_v57, %v8193_v50 }
 0x32a   : > { %v8247_v21 = vpop.f32.mrf.mxu0  ;;  %v6154_v8 = vpop.f32.mrf.mxu1 }
 0x32b   : > { %v6155_v63 = vadd.f32 %v6154_v8, %v6153_v59  ;;  %v8251_v9 = vadd.f32 %v4471_v7, %v4375_v14 }
 0x32c   : > { %v8249_v49 = vpop.f32.mrf.mxu0  ;;  %v6156_v27 = vpop.f32.mrf.mxu1 }
 0x32d   : > { %v4380_v29 = vadd.f32 %v6155_v63, %v8195_v17 }
 0x32e   : > { %v6221_v38 = vpop.f32.mrf.mxu0  ;;  %v6157_v22 = vpop.f32.mrf.mxu1 }
 0x32f   : > { %v6158_v46 = vadd.f32 %v6157_v22, %v6156_v27  ;;  %v8254_v58 = vadd.f32 %v6441_v6, %v4380_v29 }
 0x330   : > { %v6222_v2 = vpop.f32.mrf.mxu0  ;;  %v6159_v55 = vpop.f32.mrf.mxu1 }
 0x331   : > { %v4383_v50 = vadd.f32 %v6158_v46, %v8197_v33 }
 0x332   : > { %v6224_v51 = vpop.f32.mrf.mxu0  ;;  %v6160_v40 = vpop.f32.mrf.mxu1 }
 0x333   : > { %v6161_v62 = vadd.f32 %v6160_v40, %v6159_v55  ;;  %v8257_v13 = vadd.f32 %v6442_v25, %v4383_v50 }
 0x334   : > { %v6225_v19 = vpop.f32.mrf.mxu0  ;;  %v6162_v7 = vpop.f32.mrf.mxu1 }
 0x335   : > { %v4388_v48 = vadd.f32 %v6161_v62, %v8199_v26 }
 0x336   : > { %v8260_v10 = vpop.f32.mrf.mxu0  ;;  %v6163_v17 = vpop.f32.mrf.mxu1 }
 0x337   : > { %v6164_v32 = vadd.f32 %v6163_v17, %v6162_v7  ;;  %v8264_v6 = vadd.f32 %v4484_v61, %v4388_v48 }
 0x338   : > { %v8262_v47 = vpop.f32.mrf.mxu0  ;;  %v6165_v54 = vpop.f32.mrf.mxu1 }
 0x339   : > { %v4391_v33 = vadd.f32 %v6164_v32, %v8201_v31 }
 0x33a   : > { %v8267_v5 = vpop.f32.mrf.mxu0  ;;  %v6166_v41 = vpop.f32.mrf.mxu1 }
 0x33b   : > { %v6167_v36 = vadd.f32 %v6166_v41, %v6165_v54  ;;  %v8271_v30 = vadd.f32 %v4487_v23, %v4391_v33  ;;  %v6223_v33 = vadd.f32 %v6222_v2, %v6221_v38  ;;  %v6226_v38 = vadd.f32 %v6225_v19, %v6224_v51 }
 0x33c   : > { %v8269_v25 = vpop.f32.mrf.mxu0  ;;  %v6168_v26 = vpop.f32.mrf.mxu1 }
 0x33d   : > { %v4396_v15 = vadd.f32 %v6167_v36, %v8203_v52 }
 0x33e   : > { %v6233_v60 = vpop.f32.mrf.mxu0  ;;  %v6169_v4 = vpop.f32.mrf.mxu1 }
 0x33f   : > { %v6170_v20 = vadd.f32 %v6169_v4, %v6168_v26  ;;  %v8275_v61 = vadd.f32 %v8216_v3, %v4396_v15  ;;  %v6217_v26 = vadd.f32 %v8242_v34, %v8240_v35 }
 0x340   : > { %v6234_v12 = vpop.f32.mrf.mxu0  ;;  %v6171_v57 = vpop.f32.mrf.mxu1 }
 0x341   : > { %v4399_v31 = vadd.f32 %v6170_v20, %v8205_v1  ;;  %v6235_v51 = vadd.f32 %v6234_v12, %v6233_v60 }
 0x342   : > { %v6236_v59 = vpop.f32.mrf.mxu0  ;;  %v6172_v14 = vpop.f32.mrf.mxu1 }
 0x343   : > { %v6173_v8 = vadd.f32 %v6172_v14, %v6171_v57  ;;  %v8279_v23 = vadd.f32 %v8221_v39, %v4399_v31 }
 0x344   : > { %v6237_v63 = vpop.f32.mrf.mxu0  ;;  %v6174_v27 = vpop.f32.mrf.mxu1 }
 0x345   : > { %v4404_v52 = vadd.f32 %v6173_v8, %v8207_v44 }
 0x346   : > { %v8282_v29 = vpop.f32.mrf.mxu0  ;;  %v6175_v22 = vpop.f32.mrf.mxu1 }
 0x347   : > { %v6176_v46 = vadd.f32 %v6175_v22, %v6174_v27  ;;  %v8287_v3 = vadd.f32 %v8228_v53, %v4404_v52 }
 0x348   : > { %v8284_v55 = vpop.f32.mrf.mxu0  ;;  %v6177_v1 = vpop.f32.mrf.mxu1 }
 0x349   : > { %v4407_v50 = vadd.f32 %v6176_v46, %v8209_v42 }
 0x34a   : > { %v8290_v40 = vpop.f32.mrf.mxu0  ;;  %v6178_v62 = vpop.f32.mrf.mxu1 }
 0x34b   : > { %v6179_v39 = vadd.f32 %v6178_v62, %v6177_v1  ;;  %v8295_v44 = vadd.f32 %v8235_v16, %v4407_v50  ;;  %v6238_v62 = vadd.f32 %v6237_v63, %v6236_v59 }
 0x34c   : > { %v8292_v7 = vpop.f32.mrf.mxu0  ;;  %v6180_v48 = vpop.f32.mrf.mxu1 }
 0x34d   : > { %v4412_v17 = vadd.f32 %v6179_v39, %v8211_v24  ;;  %v8307_v24 = vld [vmem:[%s8398_s4] ss:$0 sm:$0xff] }
 0x34e   : > { %v6245_v32 = vpop.f32.mrf.mxu0  ;;  %v6181_v54 = vpop.f32.mrf.mxu1 }
 0x34f   : > { %v6182_v53 = vadd.f32 %v6181_v54, %v6180_v48  ;;  %v8299_v36 = vadd.f32 %v8226_v11, %v4412_v17  ;;  %v6232_v54 = vadd.f32 %v8269_v25, %v8267_v5 }
 0x350   : > { %v6246_v41 = vpop.f32.mrf.mxu0  ;;  %v6469_v42 = vpop.f32.mrf.mxu1 }
 0x351   : > { %v4415_v15 = vadd.f32 %v6182_v53, %v8213_v43  ;;  %v5008_v4 = vadd.f32 %v6469_v42, %v6223_v33  ;;  %v6220_v43 = vadd.f32 %v8249_v49, %v8247_v21  ;;  %v6229_v21 = vadd.f32 %v8262_v47, %v8260_v10 }
 0x352   : > { %v6248_v16 = vpop.f32.mrf.mxu0  ;;  %v4999_v20 = vpop.f32.mrf.mxu1 }
 0x353   : > { %v5064_v2 = vadd.f32 %v5008_v4, %v8230_v37  ;;  %v5000_v57 = vadd.f32 %v6217_v26, %v4999_v20  ;;  %v8311_v31 = vadd.f32 %v8233_v0, %v4415_v15  ;;  %v6247_v26 = vadd.f32 %v6246_v41, %v6245_v32 }
 0x354   : > { %v6249_v11 = vpop.f32.mrf.mxu0  ;;  %v6470_v35 = vpop.f32.mrf.mxu1 }
 0x355   : > { %v5087_v34 = vadd.f32 %v8307_v24, %v5064_v2  ;;  %v5062_v14 = vadd.f32 %v5000_v57, %v8218_v56  ;;  %v5011_v8 = vadd.f32 %v6470_v35, %v6226_v38  ;;  %v6241_v38 = vadd.f32 %v8284_v55, %v8282_v29 }
 0x356   : > { %v8317_v27 = vpop.f32.mrf.mxu0  ;;  %v5002_v19 = vpop.f32.mrf.mxu1  ;;  %v6250_v35 = vadd.f32 %v6249_v11, %v6248_v16  ;;  %v6244_v55 = vadd.f32 %v8292_v7, %v8290_v40 }
 0x357   : > { %v5103_v37 = vmax.f32 %v5087_v34, 0.0  ;;  %v5085_v52 = vadd.f32 %v8307_v24, %v5062_v14  ;;  %v5065_v0 = vadd.f32 %v5011_v8, %v8237_v18  ;;  %v5003_v22 = vadd.f32 %v6220_v43, %v5002_v19 }
 0x358   : > { %v8321_v46 = vpop.f32.mrf.mxu0  ;;  %v6473_v49 = vpop.f32.mrf.mxu1 }
 0x359   : > { %5119 = vst [vmem:[%s6934_s11 + $0x10] sm:$0xff] %v5103_v37  ;;  %v5101_v56 = vmax.f32 %v5085_v52, 0.0  ;;  %v5088_v1 = vadd.f32 %v8307_v24, %v5065_v0  ;;  %v5063_v60 = vadd.f32 %v5003_v22, %v8223_v28  ;;  %v5024_v12 = vadd.f32 %v6473_v49, %v6235_v51 }
 0x35a   : > { %v8328_v50 = vpop.f32.mrf.mxu0  ;;  %v5015_v39 = vpop.f32.mrf.mxu1  ;;  %v6253_v7 = vadd.f32 %v8321_v46, %v8317_v27 }
 0x35b   : > { %5117 = vst [vmem:[%s6934_s11] sm:$0xff] %v5101_v56  ;;  %v5104_v18 = vmax.f32 %v5088_v1, 0.0  ;;  %v5086_v48 = vadd.f32 %v8307_v24, %v5063_v60  ;;  %v5068_v10 = vadd.f32 %v5024_v12, %v8254_v58  ;;  %v5016_v47 = vadd.f32 %v6229_v21, %v5015_v39 }
 0x35c   : > { %v6255_v17 = vpop.f32.mrf.mxu0  ;;  %v6474_v33 = vpop.f32.mrf.mxu1 }
 0x35d   : > { %5120 = vst [vmem:[%s6934_s11 + $0x18] sm:$0xff] %v5104_v18  ;;  %v5102_v28 = vmax.f32 %v5086_v48, 0.0  ;;  %v5091_v53 = vadd.f32 %v8307_v24, %v5068_v10  ;;  %v5066_v59 = vadd.f32 %v5016_v47, %v8244_v45  ;;  %v5027_v63 = vadd.f32 %v6474_v33, %v6238_v62 }
 0x35e   : > { %v6257_v42 = vpop.f32.mrf.mxu0  ;;  %v5018_v15 = vpop.f32.mrf.mxu1  ;;  %v6256_v46 = vadd.f32 %v6255_v17, %v8328_v50 }
 0x35f   : > { %5118 = vst [vmem:[%s6934_s11 + $0x8] sm:$0xff] %v5102_v28  ;;  %v5107_v58 = vmax.f32 %v5091_v53, 0.0  ;;  %v5089_v4 = vadd.f32 %v8307_v24, %v5066_v59  ;;  %v5069_v20 = vadd.f32 %v5027_v63, %v8257_v13  ;;  %v5019_v5 = vadd.f32 %v6232_v54, %v5018_v15 }
 0x360   : > { %v6258_v25 = vpop.f32.mrf.mxu0  ;;  %v6477_v2 = vpop.f32.mrf.mxu1 }
 0x361   : > { %5123 = vst [vmem:[%s6934_s11 + $0x30] sm:$0xff] %v5107_v58  ;;  %v5105_v45 = vmax.f32 %v5089_v4, 0.0  ;;  %v5092_v57 = vadd.f32 %v8307_v24, %v5069_v20  ;;  %v5067_v32 = vadd.f32 %v5019_v5, %v8251_v9  ;;  %v5040_v41 = vadd.f32 %v6477_v2, %v6247_v26 }
 0x362   : > { %v5031_v43 = vpop.f32.mrf.mxu1  ;;  %v6260_v29 = vpop.f32.mrf.mxu0  ;;  %v6259_v51 = vadd.f32 %v6258_v25, %v6257_v42 }
 0x363   : > { %5121 = vst [vmem:[%s6934_s11 + $0x20] sm:$0xff] %v5105_v45  ;;  %v5108_v34 = vmax.f32 %v5092_v57, 0.0  ;;  %v5090_v13 = vadd.f32 %v8307_v24, %v5067_v32  ;;  %v5072_v14 = vadd.f32 %v5040_v41, %v8275_v61  ;;  %v5032_v8 = vadd.f32 %v6241_v38, %v5031_v43 }
 0x364   : > { %v6478_v19 = vpop.f32.mrf.mxu1  ;;  %v6261_v40 = vpop.f32.mrf.mxu0 }
 0x365   : > { %5124 = vst [vmem:[%s6934_s11 + $0x38] sm:$0xff] %v5108_v34  ;;  %v5106_v9 = vmax.f32 %v5090_v13, 0.0  ;;  %v5095_v16 = vadd.f32 %v8307_v24, %v5072_v14  ;;  %v5070_v11 = vadd.f32 %v5032_v8, %v8264_v6  ;;  %v5043_v37 = vadd.f32 %v6478_v19, %v6250_v35 }
 0x366   : > { %v5034_v52 = vpop.f32.mrf.mxu1  ;;  %v6262_v12 = vadd.f32 %v6261_v40, %v6260_v29 }
 0x367   : > { %5122 = vst [vmem:[%s6934_s11 + $0x28] sm:$0xff] %v5106_v9  ;;  %v5111_v0 = vmax.f32 %v5095_v16, 0.0  ;;  %v5093_v61 = vadd.f32 %v8307_v24, %v5070_v11  ;;  %v5073_v22 = vadd.f32 %v5043_v37, %v8279_v23  ;;  %v5035_v21 = vadd.f32 %v6244_v55, %v5034_v52 }
 0x368   : > { %v6481_v49 = vpop.f32.mrf.mxu1 }
 0x369   : > { %5127 = vst [vmem:[%s6934_s11 + $0x50] sm:$0xff] %v5111_v0  ;;  %v5109_v56 = vmax.f32 %v5093_v61, 0.0  ;;  %v5096_v6 = vadd.f32 %v8307_v24, %v5073_v22  ;;  %v5071_v1 = vadd.f32 %v5035_v21, %v8271_v30  ;;  %v5056_v60 = vadd.f32 %v6481_v49, %v6259_v51 }
 0x36a   : > { %v5047_v62 = vpop.f32.mrf.mxu1 }
 0x36b   : > { %5125 = vst [vmem:[%s6934_s11 + $0x40] sm:$0xff] %v5109_v56  ;;  %v5112_v39 = vmax.f32 %v5096_v6, 0.0  ;;  %v5094_v23 = vadd.f32 %v8307_v24, %v5071_v1  ;;  %v5076_v18 = vadd.f32 %v5056_v60, %v8299_v36  ;;  %v5048_v27 = vadd.f32 %v6253_v7, %v5047_v62 }
 0x36c   : > { %v6482_v48 = vpop.f32.mrf.mxu1 }
 0x36d   : > { %5128 = vst [vmem:[%s6934_s11 + $0x58] sm:$0xff] %v5112_v39  ;;  %v5110_v10 = vmax.f32 %v5094_v23, 0.0  ;;  %v5099_v30 = vadd.f32 %v8307_v24, %v5076_v18  ;;  %v5074_v47 = vadd.f32 %v5048_v27, %v8287_v3  ;;  %v5059_v54 = vadd.f32 %v6482_v48, %v6262_v12 }
 0x36e   : > { %v5050_v33 = vpop.f32.mrf.mxu1 }
 0x36f   : > { %5126 = vst [vmem:[%s6934_s11 + $0x48] sm:$0xff] %v5110_v10  ;;  %v5115_v28 = vmax.f32 %v5099_v30, 0.0  ;;  %v5097_v53 = vadd.f32 %v8307_v24, %v5074_v47  ;;  %v5077_v36 = vadd.f32 %v5059_v54, %v8311_v31  ;;  %v5051_v59 = vadd.f32 %v6256_v46, %v5050_v33 }
 0x371   : > { %5131 = vst [vmem:[%s6934_s11 + $0x70] sm:$0xff] %v5115_v28  ;;  %v5113_v50 = vmax.f32 %v5097_v53, 0.0  ;;  %v5100_v17 = vadd.f32 %v8307_v24, %v5077_v36  ;;  %v5075_v63 = vadd.f32 %v5051_v59, %v8295_v44 }
 0x373   : > { %5129 = vst [vmem:[%s6934_s11 + $0x60] sm:$0xff] %v5113_v50  ;;  %v5116_v42 = vmax.f32 %v5100_v17, 0.0  ;;  %v5098_v3 = vadd.f32 %v8307_v24, %v5075_v63 }
 0x375   : > { %5132 = vst [vmem:[%s6934_s11 + $0x78] sm:$0xff] %v5116_v42  ;;  %v5114_v26 = vmax.f32 %v5098_v3, 0.0 }
 0x377   : > { %5130 = vst [vmem:[%s6934_s11 + $0x68] sm:$0xff] %v5114_v26 }
 0x378 PF: > { %s15_s22 = sadd.s32 1, %s6828_s22   ;;  %s8412_s18 = smov %s6820_s20 }
 0x379   : > { %p12_p9 = scmp.ge.s32.totalorder %s15_s22, 6   ;;  %s8413_s19 = smov %s6824_s21 }
 0x37a   : > { %s8414_s20 = smov %s8417_s23  ;;  %s8415_s21 = smov %s8421_s24 }
 0x37b   :  { %14 = sbr.rel (!%p12_p9) target bundleno = 3 (0x3), region = 84 }

</bundles_post_ra>
